<compile_context>
chip_gen: v5e
topology: v5e:2x2
jax: 0.10.0
libtpu: 0.0.40
codegen_flags: <defaults>
</compile_context>

<pallas_src>
import functools
import math

import jax
import jax.numpy as jnp
from jax.experimental import pallas as pl
from jax.experimental.pallas import tpu as pltpu


# ---------------------------------------------------------------------------
# Tiling heuristics
# ---------------------------------------------------------------------------
def _choose_chunk(T, B, max_feat, H, budget_bytes=10 * 1024 * 1024):
    """Largest time-chunk CT dividing T whose (double-buffered) blocks fit the
    VMEM budget, preferring nc >= 2 so chunk DMAs overlap the serial loop."""

    def block_bytes(ct):
        fin = 2 * max_feat                    # fwd-chunk + bwd-chunk inputs
        per = ct * B * 4 * (fin + 2 * H)      # input blocks + hseq out blocks
        return 2 * per                        # double buffering

    best = 1
    for ct in range(1, T + 1):
        if T % ct == 0 and block_bytes(ct) <= budget_bytes:
            best = ct
    if best == T and T > 1:
        # keep at least 2 chunks so the pipeline can overlap DMA with compute
        for ct in range(T // 2, 0, -1):
            if T % ct == 0:
                best = ct
                break
    return max(best, 1)


def _choose_unroll(CT, B, H):
    """Adapt the serial-loop unroll factor to register pressure."""
    # rough f32 live bytes per unrolled step (gh, gi_f, gi_b, gates, h_new)
    per_step_bytes = 4 * B * 18 * H
    budget = 128 * 1024                       # ~half the 64 x 4KiB vreg file
    u = max(1, min(8, budget // max(per_step_bytes, 1)))
    if CT <= u:
        return True                           # fully unroll short chunks
    for cand in (8, 4, 2):
        if cand <= u and CT % cand == 0:
            return cand
    return 1


# ---------------------------------------------------------------------------
# Fused per-layer kernel: input projection + bidirectional GRU (+ pooling head)
# ---------------------------------------------------------------------------
def _make_bigru_kernel(n_feat, is_last, unroll):
    """Build the kernel body.

    Inputs (refs, in order):
      n_feat forward-chunk feature refs   (CT, B, Din_t)
      n_feat backward-chunk feature refs  (CT, B, Din_t)
      wpf (sumDin, 3H), wpb (sumDin, 3H)       -- input-projection weights
      whh_blk (2H, 6H)                          -- block-diag recurrent weights
      bgi_f (1, 3H), bgi_b (1, 3H)              -- b_ih + b_hh(r,z) folded
      bgh (1, 6H)                               -- b_hh(n) at n-gate columns
    Outputs:
      mid layer : hsf (CT,B,H), hsb (CT,B,H), hlast (B,2H)
      last layer: pool (B,2H), hlast (B,2H)
    Scratch:
      h_scr (B,2H) carry [hf | hb]  (+ mx_scr (B,2H) running max, last layer)
    """

    def kernel(*refs):
        feat_f = refs[0:n_feat]
        feat_b = refs[n_feat:2 * n_feat]
        (wpf_ref, wpb_ref, whh_ref,
         bgif_ref, bgib_ref, bgh_ref) = refs[2 * n_feat:2 * n_feat + 6]
        rest = refs[2 * n_feat + 6:]
        if is_last:
            pool_ref, hl_ref, h_scr, mx_scr = rest
        else:
            hsf_ref, hsb_ref, hl_ref, h_scr = rest

        CT = feat_f[0].shape[0]
        B = h_scr.shape[0]
        H = h_scr.shape[1] // 2

        @pl.when(pl.program_id(0) == 0)
        def _init_carry():
            h_scr[...] = jnp.zeros_like(h_scr)

        if is_last:
            @pl.when(pl.program_id(0) == 0)
            def _init_max():
                mx_scr[...] = jnp.full_like(mx_scr, -jnp.inf)

        # Hoisted once per chunk (NOT re-emitted per unrolled step).
        wpf = wpf_ref[...]
        wpb = wpb_ref[...]
        whh = whh_ref[...]
        bgi_f = jnp.broadcast_to(bgif_ref[...], (B, 3 * H))
        bgi_b = jnp.broadcast_to(bgib_ref[...], (B, 3 * H))
        bgh = jnp.broadcast_to(bgh_ref[...], (B, 6 * H))

        def gather_feat(feats, s):
            if n_feat == 1:
                return feats[0][s]
            return jnp.concatenate([f[s] for f in feats], axis=-1)

        def gates(gi, gh_half, h_half):
            # r, z are adjacent -> one sigmoid over 2H lanes
            rz = jax.nn.sigmoid(gi[:, :2 * H] + gh_half[:, :2 * H])
            r = rz[:, :H]
            z = rz[:, H:]
            n = jnp.tanh(gi[:, 2 * H:] + r * gh_half[:, 2 * H:])
            return (1.0 - z) * n + z * h_half

        def step(s, carry):
            sb = CT - 1 - s
            h = h_scr[...]                                    # (B, 2H)
            # one MXU op for BOTH directions (block-diagonal W_hh)
            gh = jnp.dot(h, whh, preferred_element_type=jnp.float32) + bgh
            # fused input projections (independent of the carry chain)
            gi_f = jnp.dot(gather_feat(feat_f, s), wpf,
                           preferred_element_type=jnp.float32) + bgi_f
            gi_b = jnp.dot(gather_feat(feat_b, sb), wpb,
                           preferred_element_type=jnp.float32) + bgi_b
            hf = gates(gi_f, gh[:, :3 * H], h[:, :H])
            hb = gates(gi_b, gh[:, 3 * H:], h[:, H:])
            h_new = jnp.concatenate([hf, hb], axis=-1)        # (B, 2H)
            h_scr[...] = h_new
            if is_last:
                # one wide tanh + one wide max per step (fused pooling head)
                mx_scr[...] = jnp.maximum(mx_scr[...], jnp.tanh(h_new))
            else:
                hsf_ref[s] = hf
                hsb_ref[sb] = hb
            return carry

        jax.lax.fori_loop(0, CT, step, 0, unroll=unroll)

        hl_ref[...] = h_scr[...]

        if is_last:
            @pl.when(pl.program_id(0) == pl.num_programs(0) - 1)
            def _finalize():
                pool_ref[...] = jnp.tanh(mx_scr[...])

    return kernel


def _bigru_layer(feats, p, T, B, H, CT, is_last):
    """Run one bidirectional GRU layer as a single fused pallas_call.

    feats: list of time-major (T, B, Din_t) feature streams (1 for layer 0,
           2 -- fwd/bwd hidden sequences -- for deeper layers)."""
    nc = T // CT
    n_feat = len(feats)
    unroll = _choose_unroll(CT, B, H)
    kernel = _make_bigru_kernel(n_feat, is_last, unroll)

    def fwd_chunk(c):
        return (c, 0, 0)

    def bwd_chunk(c):
        return (nc - 1 - c, 0, 0)

    def whole(c):
        return (0, 0)

    in_specs = []
    for a in feats:
        in_specs.append(pl.BlockSpec((CT, B, a.shape[2]), fwd_chunk))
    for a in feats:
        in_specs.append(pl.BlockSpec((CT, B, a.shape[2]), bwd_chunk))
    for name in ("wpf", "wpb", "whh_blk", "bgi_f", "bgi_b", "bgh"):
        in_specs.append(pl.BlockSpec(p[name].shape, whole))

    scratch = [pltpu.VMEM((B, 2 * H), jnp.float32)]           # carry [hf | hb]
    if is_last:
        scratch.append(pltpu.VMEM((B, 2 * H), jnp.float32))   # running max
        out_shape = (jax.ShapeDtypeStruct((B, 2 * H), jnp.float32),   # pool
                     jax.ShapeDtypeStruct((B, 2 * H), jnp.float32))   # h_last
        out_specs = (pl.BlockSpec((B, 2 * H), whole),
                     pl.BlockSpec((B, 2 * H), whole))
    else:
        out_shape = (jax.ShapeDtypeStruct((T, B, H), jnp.float32),    # h fwd
                     jax.ShapeDtypeStruct((T, B, H), jnp.float32),    # h bwd
                     jax.ShapeDtypeStruct((B, 2 * H), jnp.float32))   # h_last
        out_specs = (pl.BlockSpec((CT, B, H), fwd_chunk),
                     pl.BlockSpec((CT, B, H), bwd_chunk),
                     pl.BlockSpec((B, 2 * H), whole))

    return pl.pallas_call(
        kernel,
        out_shape=out_shape,
        grid=(nc,),
        in_specs=in_specs,
        out_specs=out_specs,
        scratch_shapes=scratch,
        compiler_params=pltpu.CompilerParams(
            dimension_semantics=("arbitrary",)),   # carry/max persist over grid
    )(*feats, *feats, p["wpf"], p["wpb"], p["whh_blk"],
      p["bgi_f"], p["bgi_b"], p["bgh"])


# ---------------------------------------------------------------------------
# Forward pass (matches Utterance_net.forward in eval mode)
# ---------------------------------------------------------------------------
def utterance_net_forward(x, params, hidden, num_layers):
    """x: (B, T, input_size) batch-first.
    Returns (gru_out (B, 2H), gru_hid (2L, H, B))."""
    # TODO(synk): nn.Dropout on the input is identity in eval mode; training-mode
    # dropout masking (RNG) is not implemented.
    B, T, Din = x.shape
    H = hidden
    CT = _choose_chunk(T, B, max(Din, 2 * H), H)

    feats = [jnp.transpose(x, (1, 0, 2))]          # time-major (T, B, Din)
    hid_parts = []
    gru_out = None
    for l in range(num_layers):
        is_last = (l == num_layers - 1)
        outs = _bigru_layer(feats, params[l], T, B, H, CT, is_last)
        if is_last:
            gru_out, hl = outs
        else:
            hsf, hsb, hl = outs
            feats = [hsf, hsb]
        hid_parts.append(jnp.transpose(hl[:, :H]))   # (H, B) fwd final hidden
        hid_parts.append(jnp.transpose(hl[:, H:]))   # (H, B) bwd final hidden

    gru_hid = jnp.stack(hid_parts, axis=0)           # (2L, H, B)
    return gru_out, gru_hid


# ---------------------------------------------------------------------------
# Parameters: PyTorch-layout init + one-time kernel-layout preparation
# ---------------------------------------------------------------------------
def init_gru_params(key, input_size, hidden, num_layers):
    k = 1.0 / math.sqrt(hidden)
    params = []
    for l in range(num_layers):
        d_in = input_size if l == 0 else 2 * hidden
        layer = []
        for _ in range(2):  # forward, backward
            key, k1, k2, k3, k4 = jax.random.split(key, 5)
            w_ih = jax.random.uniform(k1, (3 * hidden, d_in), jnp.float32, -k, k)
            w_hh = jax.random.uniform(k2, (3 * hidden, hidden), jnp.float32, -k, k)
            b_ih = jax.random.uniform(k3, (3 * hidden,), jnp.float32, -k, k)
            b_hh = jax.random.uniform(k4, (3 * hidden,), jnp.float32, -k, k)
            layer.append((w_ih, w_hh, b_ih, b_hh))
        params.append(tuple(layer))
    return params


def prepare_params(raw_params, hidden):
    """One-time transpose / block-diagonal build / bias folding."""
    H = hidden
    prepped = []
    for layer in raw_params:
        (wihf, whhf, bihf, bhhf), (wihb, whhb, bihb, bhhb) = layer

        # block-diagonal recurrent weights: [hf | hb] @ whh_blk -> [ghf | ghb]
        whh_blk = jnp.zeros((2 * H, 6 * H), jnp.float32)
        whh_blk = whh_blk.at[:H, :3 * H].set(jnp.transpose(whhf))
        whh_blk = whh_blk.at[H:, 3 * H:].set(jnp.transpose(whhb))

        def fold_gi_bias(bih, bhh):
            # b_ih (all gates) + b_hh (r, z gates); n-gate b_hh stays recurrent
            return (bih + jnp.concatenate(
                [bhh[:2 * H], jnp.zeros((H,), bih.dtype)])).reshape(1, 3 * H)

        bgh = jnp.concatenate([
            jnp.zeros((2 * H,), jnp.float32), bhhf[2 * H:],
            jnp.zeros((2 * H,), jnp.float32), bhhb[2 * H:]]).reshape(1, 6 * H)

        prepped.append({
            "wpf": jnp.transpose(wihf),      # (Din_l, 3H), Din_l in {Din, 2H}
            "wpb": jnp.transpose(wihb),
            "whh_blk": whh_blk,              # (2H, 6H)
            "bgi_f": fold_gi_bias(bihf, bhhf),
            "bgi_b": fold_gi_bias(bihb, bhhb),
            "bgh": bgh,                      # (1, 6H)
        })
    return prepped


# ---------------------------------------------------------------------------
# Pure-JAX reference (mirrors the PyTorch module) for a numerical self-check
# ---------------------------------------------------------------------------
def _reference_forward(x, raw_params, hidden, num_layers):
    B, T, _ = x.shape
    H = hidden
    layer_in = jnp.transpose(x, (1, 0, 2))  # (T, B, D)
    hids = []
    out = None
    for l in range(num_layers):
        (wihf, whhf, bihf, bhhf), (wihb, whhb, bihb, bhhb) = raw_params[l]

        def run(seq_tm, wih, whh, bih, bhh, reverse):
            xs = seq_tm[::-1] if reverse else seq_tm

            def cell(h, x_t):
                gi = x_t @ wih.T + bih
                gh = h @ whh.T + bhh
                r = jax.nn.sigmoid(gi[:, :H] + gh[:, :H])
                z = jax.nn.sigmoid(gi[:, H:2 * H] + gh[:, H:2 * H])
                n = jnp.tanh(gi[:, 2 * H:] + r * gh[:, 2 * H:])
                h_new = (1.0 - z) * n + z * h
                return h_new, h_new

            h0 = jnp.zeros((B, H), jnp.float32)
            h_last, ys = jax.lax.scan(cell, h0, xs)
            if reverse:
                ys = ys[::-1]
            return ys, h_last

        yf, hf = run(layer_in, wihf, whhf, bihf, bhhf, False)
        yb, hb = run(layer_in, wihb, whhb, bihb, bhhb, True)
        out = jnp.concatenate([yf, yb], axis=-1)  # (T, B, 2H)
        layer_in = out
        hids += [hf, hb]

    gru_hid = jnp.transpose(jnp.stack(hids, 0), (0, 2, 1))
    gru_out = jnp.tanh(jnp.max(jnp.tanh(out), axis=0))
    return gru_out, gru_hid


# ---------------------------------------------------------------------------
if __name__ == "__main__":
    batch, seq, input_size = 2, 8, 16
    hidden, num_layers = 32, 2     # args.hidden_layer, args.dia_layers

    root = jax.random.PRNGKey(0)
    kx, kp = jax.random.split(root)
    x = jax.random.normal(kx, (batch, seq, input_size), jnp.float32)
    raw_params = init_gru_params(kp, input_size, hidden, num_layers)
    params = prepare_params(raw_params, hidden)

    fwd = jax.jit(functools.partial(utterance_net_forward,
                                    hidden=hidden, num_layers=num_layers))
    gru_out, gru_hid = fwd(x, params)
    jax.block_until_ready((gru_out, gru_hid))

    assert gru_out.shape == (batch, 2 * hidden)
    assert gru_hid.shape == (num_layers * 2, hidden, batch)

    # Numerical check against a pure-JAX implementation of the PyTorch module.
    # Tolerance bound comes from TPU DEFAULT (bf16-pass) f32 matmul precision
    # shared by kernel and reference (Precision.HIGHEST would allow ~1e-5).
    ref_out, ref_hid = _reference_forward(x, raw_params, hidden, num_layers)
    assert float(jnp.max(jnp.abs(gru_out - ref_out))) < 5e-3
    assert float(jnp.max(jnp.abs(gru_hid - ref_hid))) < 5e-3

    print("KERNEL_OK")
</pallas_src>

<mosaic_0001>
module attributes {stable_mosaic.version = 11 : i64} {
  func.func @kernel(%arg0: i32, %arg1: memref<4x2x32xf32, #tpu.memory_space<vmem>>, %arg2: memref<4x2x32xf32, #tpu.memory_space<vmem>>, %arg3: memref<4x2x32xf32, #tpu.memory_space<vmem>>, %arg4: memref<4x2x32xf32, #tpu.memory_space<vmem>>, %arg5: memref<64x96xf32, #tpu.memory_space<vmem>>, %arg6: memref<64x96xf32, #tpu.memory_space<vmem>>, %arg7: memref<64x192xf32, #tpu.memory_space<vmem>>, %arg8: memref<1x96xf32, #tpu.memory_space<vmem>>, %arg9: memref<1x96xf32, #tpu.memory_space<vmem>>, %arg10: memref<1x192xf32, #tpu.memory_space<vmem>>, %arg11: memref<2x64xf32, #tpu.memory_space<vmem>>, %arg12: memref<2x64xf32, #tpu.memory_space<vmem>>, %arg13: memref<2x64xf32, #tpu.memory_space<vmem>>, %arg14: memref<2x64xf32, #tpu.memory_space<vmem>>) attributes {dimension_semantics = [#tpu.dimension_semantics<arbitrary>], iteration_bounds = array<i64: 2>, scalar_prefetch = 0 : i64, scratch_operands = 2 : i64, tpu.core_type = #tpu.core_type<tc>, window_params = [{transform_indices = @transform_0, window_bounds = array<i64: 4, 2, 32>}, {transform_indices = @transform_1, window_bounds = array<i64: 4, 2, 32>}, {transform_indices = @transform_2, window_bounds = array<i64: 4, 2, 32>}, {transform_indices = @transform_3, window_bounds = array<i64: 4, 2, 32>}, {pipeline_mode = #tpu.pipeline_mode<synchronous>, transform_indices = @transform_4, window_bounds = array<i64: 64, 96>}, {pipeline_mode = #tpu.pipeline_mode<synchronous>, transform_indices = @transform_5, window_bounds = array<i64: 64, 96>}, {pipeline_mode = #tpu.pipeline_mode<synchronous>, transform_indices = @transform_6, window_bounds = array<i64: 64, 192>}, {pipeline_mode = #tpu.pipeline_mode<synchronous>, transform_indices = @transform_7, window_bounds = array<i64: 1, 96>}, {pipeline_mode = #tpu.pipeline_mode<synchronous>, transform_indices = @transform_8, window_bounds = array<i64: 1, 96>}, {pipeline_mode = #tpu.pipeline_mode<synchronous>, transform_indices = @transform_9, window_bounds = array<i64: 1, 192>}, {pipeline_mode = #tpu.pipeline_mode<synchronous>, transform_indices = @transform_10, window_bounds = array<i64: 2, 64>}, {pipeline_mode = #tpu.pipeline_mode<synchronous>, transform_indices = @transform_11, window_bounds = array<i64: 2, 64>}]} {
    %c0_i32 = arith.constant 0 : i32
    %0 = arith.cmpi eq, %arg0, %c0_i32 : i32
    %1 = arith.extui %0 : i1 to i32
    %c0_i32_0 = arith.constant 0 : i32
    %2 = arith.cmpi ne, %1, %c0_i32_0 : i32
    scf.if %2 {
      %cst_116 = arith.constant 0.000000e+00 : f32
      %311 = vector.broadcast %cst_116 : f32 to vector<2x64xf32>
      %c0_117 = arith.constant 0 : index
      %c0_118 = arith.constant 0 : index
      %312 = vector.load %arg13[%c0_117, %c0_118] : memref<2x64xf32, #tpu.memory_space<vmem>>, vector<2x64xf32>
      tpu.vector_store %arg13[%c0_117, %c0_118], %311 {strides = array<i32>} : memref<2x64xf32, #tpu.memory_space<vmem>>, vector<2x64xf32>,
    } else {
    }
    %c0_i32_1 = arith.constant 0 : i32
    %3 = arith.cmpi eq, %arg0, %c0_i32_1 : i32
    %4 = arith.extui %3 : i1 to i32
    %c0_i32_2 = arith.constant 0 : i32
    %5 = arith.cmpi ne, %4, %c0_i32_2 : i32
    scf.if %5 {
      %cst_116 = arith.constant 0xFF800000 : f32
      %311 = vector.broadcast %cst_116 : f32 to vector<2x64xf32>
      %c0_117 = arith.constant 0 : index
      %c0_118 = arith.constant 0 : index
      %312 = vector.load %arg14[%c0_117, %c0_118] : memref<2x64xf32, #tpu.memory_space<vmem>>, vector<2x64xf32>
      tpu.vector_store %arg14[%c0_117, %c0_118], %311 {strides = array<i32>} : memref<2x64xf32, #tpu.memory_space<vmem>>, vector<2x64xf32>,
    } else {
    }
    %c0 = arith.constant 0 : index
    %c0_3 = arith.constant 0 : index
    %6 = vector.load %arg5[%c0, %c0_3] : memref<64x96xf32, #tpu.memory_space<vmem>>, vector<64x96xf32>
    %c0_4 = arith.constant 0 : index
    %c0_5 = arith.constant 0 : index
    %7 = vector.load %arg6[%c0_4, %c0_5] : memref<64x96xf32, #tpu.memory_space<vmem>>, vector<64x96xf32>
    %c0_6 = arith.constant 0 : index
    %c0_7 = arith.constant 0 : index
    %8 = vector.load %arg7[%c0_6, %c0_7] : memref<64x192xf32, #tpu.memory_space<vmem>>, vector<64x192xf32>
    %c0_8 = arith.constant 0 : index
    %c0_9 = arith.constant 0 : index
    %9 = vector.load %arg8[%c0_8, %c0_9] : memref<1x96xf32, #tpu.memory_space<vmem>>, vector<1x96xf32>
    %10 = vector.shape_cast %9 : vector<1x96xf32> to vector<1x96xf32>
    %11 = vector.broadcast %10 : vector<1x96xf32> to vector<2x96xf32>
    %c0_10 = arith.constant 0 : index
    %c0_11 = arith.constant 0 : index
    %12 = vector.load %arg9[%c0_10, %c0_11] : memref<1x96xf32, #tpu.memory_space<vmem>>, vector<1x96xf32>
    %13 = vector.shape_cast %12 : vector<1x96xf32> to vector<1x96xf32>
    %14 = vector.broadcast %13 : vector<1x96xf32> to vector<2x96xf32>
    %c0_12 = arith.constant 0 : index
    %c0_13 = arith.constant 0 : index
    %15 = vector.load %arg10[%c0_12, %c0_13] : memref<1x192xf32, #tpu.memory_space<vmem>>, vector<1x192xf32>
    %16 = vector.shape_cast %15 : vector<1x192xf32> to vector<1x192xf32>
    %17 = vector.broadcast %16 : vector<1x192xf32> to vector<2x192xf32>
    %c0_i32_14 = arith.constant 0 : i32
    %c3_i32 = arith.constant 3 : i32
    %18 = arith.subi %c3_i32, %c0_i32_14 : i32
    %c0_15 = arith.constant 0 : index
    %c0_16 = arith.constant 0 : index
    %19 = vector.load %arg13[%c0_15, %c0_16] : memref<2x64xf32, #tpu.memory_space<vmem>>, vector<2x64xf32>
    %cst = arith.constant dense<0.000000e+00> : vector<2x192xf32>
    %20 = tpu.matmul %19, %8, %cst {dimension_numbers = #tpu.dot_dimension_numbers<[1], [0], [0], [1], [0, 0, 1, 1], [], []>} : vector<2x64xf32>, vector<64x192xf32>, vector<2x192xf32> -> vector<2x192xf32>
    %21 = arith.addf %20, %17 : vector<2x192xf32>
    %22 = arith.index_cast %c0_i32_14 : i32 to index
    %c0_17 = arith.constant 0 : index
    %c0_18 = arith.constant 0 : index
    %23 = vector.load %arg1[%22, %c0_17, %c0_18] : memref<4x2x32xf32, #tpu.memory_space<vmem>>, vector<1x2x32xf32>
    %24 = vector.shape_cast %23 : vector<1x2x32xf32> to vector<2x32xf32>
    %25 = arith.index_cast %c0_i32_14 : i32 to index
    %c0_19 = arith.constant 0 : index
    %c0_20 = arith.constant 0 : index
    %26 = vector.load %arg2[%25, %c0_19, %c0_20] : memref<4x2x32xf32, #tpu.memory_space<vmem>>, vector<1x2x32xf32>
    %27 = vector.shape_cast %26 : vector<1x2x32xf32> to vector<2x32xf32>
    %28 = tpu.concatenate %24, %27 in 1 : vector<2x32xf32>, vector<2x32xf32> -> vector<2x64xf32>
    %cst_21 = arith.constant dense<0.000000e+00> : vector<2x96xf32>
    %29 = tpu.matmul %28, %6, %cst_21 {dimension_numbers = #tpu.dot_dimension_numbers<[1], [0], [0], [1], [0, 0, 1, 1], [], []>} : vector<2x64xf32>, vector<64x96xf32>, vector<2x96xf32> -> vector<2x96xf32>
    %30 = arith.addf %29, %11 : vector<2x96xf32>
    %31 = arith.index_cast %18 : i32 to index
    %c0_22 = arith.constant 0 : index
    %c0_23 = arith.constant 0 : index
    %32 = vector.load %arg3[%31, %c0_22, %c0_23] : memref<4x2x32xf32, #tpu.memory_space<vmem>>, vector<1x2x32xf32>
    %33 = vector.shape_cast %32 : vector<1x2x32xf32> to vector<2x32xf32>
    %34 = arith.index_cast %18 : i32 to index
    %c0_24 = arith.constant 0 : index
    %c0_25 = arith.constant 0 : index
    %35 = vector.load %arg4[%34, %c0_24, %c0_25] : memref<4x2x32xf32, #tpu.memory_space<vmem>>, vector<1x2x32xf32>
    %36 = vector.shape_cast %35 : vector<1x2x32xf32> to vector<2x32xf32>
    %37 = tpu.concatenate %33, %36 in 1 : vector<2x32xf32>, vector<2x32xf32> -> vector<2x64xf32>
    %cst_26 = arith.constant dense<0.000000e+00> : vector<2x96xf32>
    %38 = tpu.matmul %37, %7, %cst_26 {dimension_numbers = #tpu.dot_dimension_numbers<[1], [0], [0], [1], [0, 0, 1, 1], [], []>} : vector<2x64xf32>, vector<64x96xf32>, vector<2x96xf32> -> vector<2x96xf32>
    %39 = arith.addf %38, %14 : vector<2x96xf32>
    %40 = vector.extract_strided_slice %21 {offsets = [0, 0], sizes = [2, 96], strides = [1, 1]} : vector<2x192xf32> to vector<2x96xf32>
    %41 = vector.extract_strided_slice %19 {offsets = [0, 0], sizes = [2, 32], strides = [1, 1]} : vector<2x64xf32> to vector<2x32xf32>
    %42 = vector.extract_strided_slice %30 {offsets = [0, 0], sizes = [2, 64], strides = [1, 1]} : vector<2x96xf32> to vector<2x64xf32>
    %43 = vector.extract_strided_slice %40 {offsets = [0, 0], sizes = [2, 64], strides = [1, 1]} : vector<2x96xf32> to vector<2x64xf32>
    %44 = arith.addf %42, %43 : vector<2x64xf32>
    %45 = arith.negf %44 : vector<2x64xf32>
    %46 = math.exp %45 : vector<2x64xf32>
    %cst_27 = arith.constant 1.000000e+00 : f32
    %47 = vector.broadcast %cst_27 : f32 to vector<2x64xf32>
    %48 = arith.addf %47, %46 : vector<2x64xf32>
    %49 = arith.divf %47, %48 : vector<2x64xf32>
    %50 = vector.extract_strided_slice %49 {offsets = [0, 0], sizes = [2, 32], strides = [1, 1]} : vector<2x64xf32> to vector<2x32xf32>
    %51 = vector.extract_strided_slice %49 {offsets = [0, 32], sizes = [2, 32], strides = [1, 1]} : vector<2x64xf32> to vector<2x32xf32>
    %52 = vector.extract_strided_slice %30 {offsets = [0, 64], sizes = [2, 32], strides = [1, 1]} : vector<2x96xf32> to vector<2x32xf32>
    %53 = vector.extract_strided_slice %40 {offsets = [0, 64], sizes = [2, 32], strides = [1, 1]} : vector<2x96xf32> to vector<2x32xf32>
    %54 = arith.mulf %50, %53 : vector<2x32xf32>
    %55 = arith.addf %52, %54 : vector<2x32xf32>
    %56 = math.tanh %55 : vector<2x32xf32>
    %cst_28 = arith.constant 1.000000e+00 : f32
    %57 = vector.broadcast %cst_28 : f32 to vector<2x32xf32>
    %58 = arith.subf %57, %51 : vector<2x32xf32>
    %59 = arith.mulf %58, %56 : vector<2x32xf32>
    %60 = arith.mulf %51, %41 : vector<2x32xf32>
    %61 = arith.addf %59, %60 : vector<2x32xf32>
    %62 = vector.extract_strided_slice %21 {offsets = [0, 96], sizes = [2, 96], strides = [1, 1]} : vector<2x192xf32> to vector<2x96xf32>
    %63 = vector.extract_strided_slice %19 {offsets = [0, 32], sizes = [2, 32], strides = [1, 1]} : vector<2x64xf32> to vector<2x32xf32>
    %64 = vector.extract_strided_slice %39 {offsets = [0, 0], sizes = [2, 64], strides = [1, 1]} : vector<2x96xf32> to vector<2x64xf32>
    %65 = vector.extract_strided_slice %62 {offsets = [0, 0], sizes = [2, 64], strides = [1, 1]} : vector<2x96xf32> to vector<2x64xf32>
    %66 = arith.addf %64, %65 : vector<2x64xf32>
    %67 = arith.negf %66 : vector<2x64xf32>
    %68 = math.exp %67 : vector<2x64xf32>
    %cst_29 = arith.constant 1.000000e+00 : f32
    %69 = vector.broadcast %cst_29 : f32 to vector<2x64xf32>
    %70 = arith.addf %69, %68 : vector<2x64xf32>
    %71 = arith.divf %69, %70 : vector<2x64xf32>
    %72 = vector.extract_strided_slice %71 {offsets = [0, 0], sizes = [2, 32], strides = [1, 1]} : vector<2x64xf32> to vector<2x32xf32>
    %73 = vector.extract_strided_slice %71 {offsets = [0, 32], sizes = [2, 32], strides = [1, 1]} : vector<2x64xf32> to vector<2x32xf32>
    %74 = vector.extract_strided_slice %39 {offsets = [0, 64], sizes = [2, 32], strides = [1, 1]} : vector<2x96xf32> to vector<2x32xf32>
    %75 = vector.extract_strided_slice %62 {offsets = [0, 64], sizes = [2, 32], strides = [1, 1]} : vector<2x96xf32> to vector<2x32xf32>
    %76 = arith.mulf %72, %75 : vector<2x32xf32>
    %77 = arith.addf %74, %76 : vector<2x32xf32>
    %78 = math.tanh %77 : vector<2x32xf32>
    %cst_30 = arith.constant 1.000000e+00 : f32
    %79 = vector.broadcast %cst_30 : f32 to vector<2x32xf32>
    %80 = arith.subf %79, %73 : vector<2x32xf32>
    %81 = arith.mulf %80, %78 : vector<2x32xf32>
    %82 = arith.mulf %73, %63 : vector<2x32xf32>
    %83 = arith.addf %81, %82 : vector<2x32xf32>
    %84 = tpu.concatenate %61, %83 in 1 : vector<2x32xf32>, vector<2x32xf32> -> vector<2x64xf32>
    %c0_31 = arith.constant 0 : index
    %c0_32 = arith.constant 0 : index
    %85 = vector.load %arg13[%c0_31, %c0_32] : memref<2x64xf32, #tpu.memory_space<vmem>>, vector<2x64xf32>
    tpu.vector_store %arg13[%c0_31, %c0_32], %84 {strides = array<i32>} : memref<2x64xf32, #tpu.memory_space<vmem>>, vector<2x64xf32>,
    %c0_33 = arith.constant 0 : index
    %c0_34 = arith.constant 0 : index
    %86 = vector.load %arg14[%c0_33, %c0_34] : memref<2x64xf32, #tpu.memory_space<vmem>>, vector<2x64xf32>
    %87 = math.tanh %84 : vector<2x64xf32>
    %88 = arith.maximumf %86, %87 : vector<2x64xf32>
    %c0_35 = arith.constant 0 : index
    %c0_36 = arith.constant 0 : index
    %89 = vector.load %arg14[%c0_35, %c0_36] : memref<2x64xf32, #tpu.memory_space<vmem>>, vector<2x64xf32>
    tpu.vector_store %arg14[%c0_35, %c0_36], %88 {strides = array<i32>} : memref<2x64xf32, #tpu.memory_space<vmem>>, vector<2x64xf32>,
    %c1_i32 = arith.constant 1 : i32
    %c3_i32_37 = arith.constant 3 : i32
    %90 = arith.subi %c3_i32_37, %c1_i32 : i32
    %c0_38 = arith.constant 0 : index
    %c0_39 = arith.constant 0 : index
    %91 = vector.load %arg13[%c0_38, %c0_39] : memref<2x64xf32, #tpu.memory_space<vmem>>, vector<2x64xf32>
    %cst_40 = arith.constant dense<0.000000e+00> : vector<2x192xf32>
    %92 = tpu.matmul %91, %8, %cst_40 {dimension_numbers = #tpu.dot_dimension_numbers<[1], [0], [0], [1], [0, 0, 1, 1], [], []>} : vector<2x64xf32>, vector<64x192xf32>, vector<2x192xf32> -> vector<2x192xf32>
    %93 = arith.addf %92, %17 : vector<2x192xf32>
    %94 = arith.index_cast %c1_i32 : i32 to index
    %c0_41 = arith.constant 0 : index
    %c0_42 = arith.constant 0 : index
    %95 = vector.load %arg1[%94, %c0_41, %c0_42] : memref<4x2x32xf32, #tpu.memory_space<vmem>>, vector<1x2x32xf32>
    %96 = vector.shape_cast %95 : vector<1x2x32xf32> to vector<2x32xf32>
    %97 = arith.index_cast %c1_i32 : i32 to index
    %c0_43 = arith.constant 0 : index
    %c0_44 = arith.constant 0 : index
    %98 = vector.load %arg2[%97, %c0_43, %c0_44] : memref<4x2x32xf32, #tpu.memory_space<vmem>>, vector<1x2x32xf32>
    %99 = vector.shape_cast %98 : vector<1x2x32xf32> to vector<2x32xf32>
    %100 = tpu.concatenate %96, %99 in 1 : vector<2x32xf32>, vector<2x32xf32> -> vector<2x64xf32>
    %cst_45 = arith.constant dense<0.000000e+00> : vector<2x96xf32>
    %101 = tpu.matmul %100, %6, %cst_45 {dimension_numbers = #tpu.dot_dimension_numbers<[1], [0], [0], [1], [0, 0, 1, 1], [], []>} : vector<2x64xf32>, vector<64x96xf32>, vector<2x96xf32> -> vector<2x96xf32>
    %102 = arith.addf %101, %11 : vector<2x96xf32>
    %103 = arith.index_cast %90 : i32 to index
    %c0_46 = arith.constant 0 : index
    %c0_47 = arith.constant 0 : index
    %104 = vector.load %arg3[%103, %c0_46, %c0_47] : memref<4x2x32xf32, #tpu.memory_space<vmem>>, vector<1x2x32xf32>
    %105 = vector.shape_cast %104 : vector<1x2x32xf32> to vector<2x32xf32>
    %106 = arith.index_cast %90 : i32 to index
    %c0_48 = arith.constant 0 : index
    %c0_49 = arith.constant 0 : index
    %107 = vector.load %arg4[%106, %c0_48, %c0_49] : memref<4x2x32xf32, #tpu.memory_space<vmem>>, vector<1x2x32xf32>
    %108 = vector.shape_cast %107 : vector<1x2x32xf32> to vector<2x32xf32>
    %109 = tpu.concatenate %105, %108 in 1 : vector<2x32xf32>, vector<2x32xf32> -> vector<2x64xf32>
    %cst_50 = arith.constant dense<0.000000e+00> : vector<2x96xf32>
    %110 = tpu.matmul %109, %7, %cst_50 {dimension_numbers = #tpu.dot_dimension_numbers<[1], [0], [0], [1], [0, 0, 1, 1], [], []>} : vector<2x64xf32>, vector<64x96xf32>, vector<2x96xf32> -> vector<2x96xf32>
    %111 = arith.addf %110, %14 : vector<2x96xf32>
    %112 = vector.extract_strided_slice %93 {offsets = [0, 0], sizes = [2, 96], strides = [1, 1]} : vector<2x192xf32> to vector<2x96xf32>
    %113 = vector.extract_strided_slice %91 {offsets = [0, 0], sizes = [2, 32], strides = [1, 1]} : vector<2x64xf32> to vector<2x32xf32>
    %114 = vector.extract_strided_slice %102 {offsets = [0, 0], sizes = [2, 64], strides = [1, 1]} : vector<2x96xf32> to vector<2x64xf32>
    %115 = vector.extract_strided_slice %112 {offsets = [0, 0], sizes = [2, 64], strides = [1, 1]} : vector<2x96xf32> to vector<2x64xf32>
    %116 = arith.addf %114, %115 : vector<2x64xf32>
    %117 = arith.negf %116 : vector<2x64xf32>
    %118 = math.exp %117 : vector<2x64xf32>
    %cst_51 = arith.constant 1.000000e+00 : f32
    %119 = vector.broadcast %cst_51 : f32 to vector<2x64xf32>
    %120 = arith.addf %119, %118 : vector<2x64xf32>
    %121 = arith.divf %119, %120 : vector<2x64xf32>
    %122 = vector.extract_strided_slice %121 {offsets = [0, 0], sizes = [2, 32], strides = [1, 1]} : vector<2x64xf32> to vector<2x32xf32>
    %123 = vector.extract_strided_slice %121 {offsets = [0, 32], sizes = [2, 32], strides = [1, 1]} : vector<2x64xf32> to vector<2x32xf32>
    %124 = vector.extract_strided_slice %102 {offsets = [0, 64], sizes = [2, 32], strides = [1, 1]} : vector<2x96xf32> to vector<2x32xf32>
    %125 = vector.extract_strided_slice %112 {offsets = [0, 64], sizes = [2, 32], strides = [1, 1]} : vector<2x96xf32> to vector<2x32xf32>
    %126 = arith.mulf %122, %125 : vector<2x32xf32>
    %127 = arith.addf %124, %126 : vector<2x32xf32>
    %128 = math.tanh %127 : vector<2x32xf32>
    %cst_52 = arith.constant 1.000000e+00 : f32
    %129 = vector.broadcast %cst_52 : f32 to vector<2x32xf32>
    %130 = arith.subf %129, %123 : vector<2x32xf32>
    %131 = arith.mulf %130, %128 : vector<2x32xf32>
    %132 = arith.mulf %123, %113 : vector<2x32xf32>
    %133 = arith.addf %131, %132 : vector<2x32xf32>
    %134 = vector.extract_strided_slice %93 {offsets = [0, 96], sizes = [2, 96], strides = [1, 1]} : vector<2x192xf32> to vector<2x96xf32>
    %135 = vector.extract_strided_slice %91 {offsets = [0, 32], sizes = [2, 32], strides = [1, 1]} : vector<2x64xf32> to vector<2x32xf32>
    %136 = vector.extract_strided_slice %111 {offsets = [0, 0], sizes = [2, 64], strides = [1, 1]} : vector<2x96xf32> to vector<2x64xf32>
    %137 = vector.extract_strided_slice %134 {offsets = [0, 0], sizes = [2, 64], strides = [1, 1]} : vector<2x96xf32> to vector<2x64xf32>
    %138 = arith.addf %136, %137 : vector<2x64xf32>
    %139 = arith.negf %138 : vector<2x64xf32>
    %140 = math.exp %139 : vector<2x64xf32>
    %cst_53 = arith.constant 1.000000e+00 : f32
    %141 = vector.broadcast %cst_53 : f32 to vector<2x64xf32>
    %142 = arith.addf %141, %140 : vector<2x64xf32>
    %143 = arith.divf %141, %142 : vector<2x64xf32>
    %144 = vector.extract_strided_slice %143 {offsets = [0, 0], sizes = [2, 32], strides = [1, 1]} : vector<2x64xf32> to vector<2x32xf32>
    %145 = vector.extract_strided_slice %143 {offsets = [0, 32], sizes = [2, 32], strides = [1, 1]} : vector<2x64xf32> to vector<2x32xf32>
    %146 = vector.extract_strided_slice %111 {offsets = [0, 64], sizes = [2, 32], strides = [1, 1]} : vector<2x96xf32> to vector<2x32xf32>
    %147 = vector.extract_strided_slice %134 {offsets = [0, 64], sizes = [2, 32], strides = [1, 1]} : vector<2x96xf32> to vector<2x32xf32>
    %148 = arith.mulf %144, %147 : vector<2x32xf32>
    %149 = arith.addf %146, %148 : vector<2x32xf32>
    %150 = math.tanh %149 : vector<2x32xf32>
    %cst_54 = arith.constant 1.000000e+00 : f32
    %151 = vector.broadcast %cst_54 : f32 to vector<2x32xf32>
    %152 = arith.subf %151, %145 : vector<2x32xf32>
    %153 = arith.mulf %152, %150 : vector<2x32xf32>
    %154 = arith.mulf %145, %135 : vector<2x32xf32>
    %155 = arith.addf %153, %154 : vector<2x32xf32>
    %156 = tpu.concatenate %133, %155 in 1 : vector<2x32xf32>, vector<2x32xf32> -> vector<2x64xf32>
    %c0_55 = arith.constant 0 : index
    %c0_56 = arith.constant 0 : index
    %157 = vector.load %arg13[%c0_55, %c0_56] : memref<2x64xf32, #tpu.memory_space<vmem>>, vector<2x64xf32>
    tpu.vector_store %arg13[%c0_55, %c0_56], %156 {strides = array<i32>} : memref<2x64xf32, #tpu.memory_space<vmem>>, vector<2x64xf32>,
    %c0_57 = arith.constant 0 : index
    %c0_58 = arith.constant 0 : index
    %158 = vector.load %arg14[%c0_57, %c0_58] : memref<2x64xf32, #tpu.memory_space<vmem>>, vector<2x64xf32>
    %159 = math.tanh %156 : vector<2x64xf32>
    %160 = arith.maximumf %158, %159 : vector<2x64xf32>
    %c0_59 = arith.constant 0 : index
    %c0_60 = arith.constant 0 : index
    %161 = vector.load %arg14[%c0_59, %c0_60] : memref<2x64xf32, #tpu.memory_space<vmem>>, vector<2x64xf32>
    tpu.vector_store %arg14[%c0_59, %c0_60], %160 {strides = array<i32>} : memref<2x64xf32, #tpu.memory_space<vmem>>, vector<2x64xf32>,
    %c2_i32 = arith.constant 2 : i32
    %c3_i32_61 = arith.constant 3 : i32
    %162 = arith.subi %c3_i32_61, %c2_i32 : i32
    %c0_62 = arith.constant 0 : index
    %c0_63 = arith.constant 0 : index
    %163 = vector.load %arg13[%c0_62, %c0_63] : memref<2x64xf32, #tpu.memory_space<vmem>>, vector<2x64xf32>
    %cst_64 = arith.constant dense<0.000000e+00> : vector<2x192xf32>
    %164 = tpu.matmul %163, %8, %cst_64 {dimension_numbers = #tpu.dot_dimension_numbers<[1], [0], [0], [1], [0, 0, 1, 1], [], []>} : vector<2x64xf32>, vector<64x192xf32>, vector<2x192xf32> -> vector<2x192xf32>
    %165 = arith.addf %164, %17 : vector<2x192xf32>
    %166 = arith.index_cast %c2_i32 : i32 to index
    %c0_65 = arith.constant 0 : index
    %c0_66 = arith.constant 0 : index
    %167 = vector.load %arg1[%166, %c0_65, %c0_66] : memref<4x2x32xf32, #tpu.memory_space<vmem>>, vector<1x2x32xf32>
    %168 = vector.shape_cast %167 : vector<1x2x32xf32> to vector<2x32xf32>
    %169 = arith.index_cast %c2_i32 : i32 to index
    %c0_67 = arith.constant 0 : index
    %c0_68 = arith.constant 0 : index
    %170 = vector.load %arg2[%169, %c0_67, %c0_68] : memref<4x2x32xf32, #tpu.memory_space<vmem>>, vector<1x2x32xf32>
    %171 = vector.shape_cast %170 : vector<1x2x32xf32> to vector<2x32xf32>
    %172 = tpu.concatenate %168, %171 in 1 : vector<2x32xf32>, vector<2x32xf32> -> vector<2x64xf32>
    %cst_69 = arith.constant dense<0.000000e+00> : vector<2x96xf32>
    %173 = tpu.matmul %172, %6, %cst_69 {dimension_numbers = #tpu.dot_dimension_numbers<[1], [0], [0], [1], [0, 0, 1, 1], [], []>} : vector<2x64xf32>, vector<64x96xf32>, vector<2x96xf32> -> vector<2x96xf32>
    %174 = arith.addf %173, %11 : vector<2x96xf32>
    %175 = arith.index_cast %162 : i32 to index
    %c0_70 = arith.constant 0 : index
    %c0_71 = arith.constant 0 : index
    %176 = vector.load %arg3[%175, %c0_70, %c0_71] : memref<4x2x32xf32, #tpu.memory_space<vmem>>, vector<1x2x32xf32>
    %177 = vector.shape_cast %176 : vector<1x2x32xf32> to vector<2x32xf32>
    %178 = arith.index_cast %162 : i32 to index
    %c0_72 = arith.constant 0 : index
    %c0_73 = arith.constant 0 : index
    %179 = vector.load %arg4[%178, %c0_72, %c0_73] : memref<4x2x32xf32, #tpu.memory_space<vmem>>, vector<1x2x32xf32>
    %180 = vector.shape_cast %179 : vector<1x2x32xf32> to vector<2x32xf32>
    %181 = tpu.concatenate %177, %180 in 1 : vector<2x32xf32>, vector<2x32xf32> -> vector<2x64xf32>
    %cst_74 = arith.constant dense<0.000000e+00> : vector<2x96xf32>
    %182 = tpu.matmul %181, %7, %cst_74 {dimension_numbers = #tpu.dot_dimension_numbers<[1], [0], [0], [1], [0, 0, 1, 1], [], []>} : vector<2x64xf32>, vector<64x96xf32>, vector<2x96xf32> -> vector<2x96xf32>
    %183 = arith.addf %182, %14 : vector<2x96xf32>
    %184 = vector.extract_strided_slice %165 {offsets = [0, 0], sizes = [2, 96], strides = [1, 1]} : vector<2x192xf32> to vector<2x96xf32>
    %185 = vector.extract_strided_slice %163 {offsets = [0, 0], sizes = [2, 32], strides = [1, 1]} : vector<2x64xf32> to vector<2x32xf32>
    %186 = vector.extract_strided_slice %174 {offsets = [0, 0], sizes = [2, 64], strides = [1, 1]} : vector<2x96xf32> to vector<2x64xf32>
    %187 = vector.extract_strided_slice %184 {offsets = [0, 0], sizes = [2, 64], strides = [1, 1]} : vector<2x96xf32> to vector<2x64xf32>
    %188 = arith.addf %186, %187 : vector<2x64xf32>
    %189 = arith.negf %188 : vector<2x64xf32>
    %190 = math.exp %189 : vector<2x64xf32>
    %cst_75 = arith.constant 1.000000e+00 : f32
    %191 = vector.broadcast %cst_75 : f32 to vector<2x64xf32>
    %192 = arith.addf %191, %190 : vector<2x64xf32>
    %193 = arith.divf %191, %192 : vector<2x64xf32>
    %194 = vector.extract_strided_slice %193 {offsets = [0, 0], sizes = [2, 32], strides = [1, 1]} : vector<2x64xf32> to vector<2x32xf32>
    %195 = vector.extract_strided_slice %193 {offsets = [0, 32], sizes = [2, 32], strides = [1, 1]} : vector<2x64xf32> to vector<2x32xf32>
    %196 = vector.extract_strided_slice %174 {offsets = [0, 64], sizes = [2, 32], strides = [1, 1]} : vector<2x96xf32> to vector<2x32xf32>
    %197 = vector.extract_strided_slice %184 {offsets = [0, 64], sizes = [2, 32], strides = [1, 1]} : vector<2x96xf32> to vector<2x32xf32>
    %198 = arith.mulf %194, %197 : vector<2x32xf32>
    %199 = arith.addf %196, %198 : vector<2x32xf32>
    %200 = math.tanh %199 : vector<2x32xf32>
    %cst_76 = arith.constant 1.000000e+00 : f32
    %201 = vector.broadcast %cst_76 : f32 to vector<2x32xf32>
    %202 = arith.subf %201, %195 : vector<2x32xf32>
    %203 = arith.mulf %202, %200 : vector<2x32xf32>
    %204 = arith.mulf %195, %185 : vector<2x32xf32>
    %205 = arith.addf %203, %204 : vector<2x32xf32>
    %206 = vector.extract_strided_slice %165 {offsets = [0, 96], sizes = [2, 96], strides = [1, 1]} : vector<2x192xf32> to vector<2x96xf32>
    %207 = vector.extract_strided_slice %163 {offsets = [0, 32], sizes = [2, 32], strides = [1, 1]} : vector<2x64xf32> to vector<2x32xf32>
    %208 = vector.extract_strided_slice %183 {offsets = [0, 0], sizes = [2, 64], strides = [1, 1]} : vector<2x96xf32> to vector<2x64xf32>
    %209 = vector.extract_strided_slice %206 {offsets = [0, 0], sizes = [2, 64], strides = [1, 1]} : vector<2x96xf32> to vector<2x64xf32>
    %210 = arith.addf %208, %209 : vector<2x64xf32>
    %211 = arith.negf %210 : vector<2x64xf32>
    %212 = math.exp %211 : vector<2x64xf32>
    %cst_77 = arith.constant 1.000000e+00 : f32
    %213 = vector.broadcast %cst_77 : f32 to vector<2x64xf32>
    %214 = arith.addf %213, %212 : vector<2x64xf32>
    %215 = arith.divf %213, %214 : vector<2x64xf32>
    %216 = vector.extract_strided_slice %215 {offsets = [0, 0], sizes = [2, 32], strides = [1, 1]} : vector<2x64xf32> to vector<2x32xf32>
    %217 = vector.extract_strided_slice %215 {offsets = [0, 32], sizes = [2, 32], strides = [1, 1]} : vector<2x64xf32> to vector<2x32xf32>
    %218 = vector.extract_strided_slice %183 {offsets = [0, 64], sizes = [2, 32], strides = [1, 1]} : vector<2x96xf32> to vector<2x32xf32>
    %219 = vector.extract_strided_slice %206 {offsets = [0, 64], sizes = [2, 32], strides = [1, 1]} : vector<2x96xf32> to vector<2x32xf32>
    %220 = arith.mulf %216, %219 : vector<2x32xf32>
    %221 = arith.addf %218, %220 : vector<2x32xf32>
    %222 = math.tanh %221 : vector<2x32xf32>
    %cst_78 = arith.constant 1.000000e+00 : f32
    %223 = vector.broadcast %cst_78 : f32 to vector<2x32xf32>
    %224 = arith.subf %223, %217 : vector<2x32xf32>
    %225 = arith.mulf %224, %222 : vector<2x32xf32>
    %226 = arith.mulf %217, %207 : vector<2x32xf32>
    %227 = arith.addf %225, %226 : vector<2x32xf32>
    %228 = tpu.concatenate %205, %227 in 1 : vector<2x32xf32>, vector<2x32xf32> -> vector<2x64xf32>
    %c0_79 = arith.constant 0 : index
    %c0_80 = arith.constant 0 : index
    %229 = vector.load %arg13[%c0_79, %c0_80] : memref<2x64xf32, #tpu.memory_space<vmem>>, vector<2x64xf32>
    tpu.vector_store %arg13[%c0_79, %c0_80], %228 {strides = array<i32>} : memref<2x64xf32, #tpu.memory_space<vmem>>, vector<2x64xf32>,
    %c0_81 = arith.constant 0 : index
    %c0_82 = arith.constant 0 : index
    %230 = vector.load %arg14[%c0_81, %c0_82] : memref<2x64xf32, #tpu.memory_space<vmem>>, vector<2x64xf32>
    %231 = math.tanh %228 : vector<2x64xf32>
    %232 = arith.maximumf %230, %231 : vector<2x64xf32>
    %c0_83 = arith.constant 0 : index
    %c0_84 = arith.constant 0 : index
    %233 = vector.load %arg14[%c0_83, %c0_84] : memref<2x64xf32, #tpu.memory_space<vmem>>, vector<2x64xf32>
    tpu.vector_store %arg14[%c0_83, %c0_84], %232 {strides = array<i32>} : memref<2x64xf32, #tpu.memory_space<vmem>>, vector<2x64xf32>,
    %c3_i32_85 = arith.constant 3 : i32
    %c3_i32_86 = arith.constant 3 : i32
    %234 = arith.subi %c3_i32_86, %c3_i32_85 : i32
    %c0_87 = arith.constant 0 : index
    %c0_88 = arith.constant 0 : index
    %235 = vector.load %arg13[%c0_87, %c0_88] : memref<2x64xf32, #tpu.memory_space<vmem>>, vector<2x64xf32>
    %cst_89 = arith.constant dense<0.000000e+00> : vector<2x192xf32>
    %236 = tpu.matmul %235, %8, %cst_89 {dimension_numbers = #tpu.dot_dimension_numbers<[1], [0], [0], [1], [0, 0, 1, 1], [], []>} : vector<2x64xf32>, vector<64x192xf32>, vector<2x192xf32> -> vector<2x192xf32>
    %237 = arith.addf %236, %17 : vector<2x192xf32>
    %238 = arith.index_cast %c3_i32_85 : i32 to index
    %c0_90 = arith.constant 0 : index
    %c0_91 = arith.constant 0 : index
    %239 = vector.load %arg1[%238, %c0_90, %c0_91] : memref<4x2x32xf32, #tpu.memory_space<vmem>>, vector<1x2x32xf32>
    %240 = vector.shape_cast %239 : vector<1x2x32xf32> to vector<2x32xf32>
    %241 = arith.index_cast %c3_i32_85 : i32 to index
    %c0_92 = arith.constant 0 : index
    %c0_93 = arith.constant 0 : index
    %242 = vector.load %arg2[%241, %c0_92, %c0_93] : memref<4x2x32xf32, #tpu.memory_space<vmem>>, vector<1x2x32xf32>
    %243 = vector.shape_cast %242 : vector<1x2x32xf32> to vector<2x32xf32>
    %244 = tpu.concatenate %240, %243 in 1 : vector<2x32xf32>, vector<2x32xf32> -> vector<2x64xf32>
    %cst_94 = arith.constant dense<0.000000e+00> : vector<2x96xf32>
    %245 = tpu.matmul %244, %6, %cst_94 {dimension_numbers = #tpu.dot_dimension_numbers<[1], [0], [0], [1], [0, 0, 1, 1], [], []>} : vector<2x64xf32>, vector<64x96xf32>, vector<2x96xf32> -> vector<2x96xf32>
    %246 = arith.addf %245, %11 : vector<2x96xf32>
    %247 = arith.index_cast %234 : i32 to index
    %c0_95 = arith.constant 0 : index
    %c0_96 = arith.constant 0 : index
    %248 = vector.load %arg3[%247, %c0_95, %c0_96] : memref<4x2x32xf32, #tpu.memory_space<vmem>>, vector<1x2x32xf32>
    %249 = vector.shape_cast %248 : vector<1x2x32xf32> to vector<2x32xf32>
    %250 = arith.index_cast %234 : i32 to index
    %c0_97 = arith.constant 0 : index
    %c0_98 = arith.constant 0 : index
    %251 = vector.load %arg4[%250, %c0_97, %c0_98] : memref<4x2x32xf32, #tpu.memory_space<vmem>>, vector<1x2x32xf32>
    %252 = vector.shape_cast %251 : vector<1x2x32xf32> to vector<2x32xf32>
    %253 = tpu.concatenate %249, %252 in 1 : vector<2x32xf32>, vector<2x32xf32> -> vector<2x64xf32>
    %cst_99 = arith.constant dense<0.000000e+00> : vector<2x96xf32>
    %254 = tpu.matmul %253, %7, %cst_99 {dimension_numbers = #tpu.dot_dimension_numbers<[1], [0], [0], [1], [0, 0, 1, 1], [], []>} : vector<2x64xf32>, vector<64x96xf32>, vector<2x96xf32> -> vector<2x96xf32>
    %255 = arith.addf %254, %14 : vector<2x96xf32>
    %256 = vector.extract_strided_slice %237 {offsets = [0, 0], sizes = [2, 96], strides = [1, 1]} : vector<2x192xf32> to vector<2x96xf32>
    %257 = vector.extract_strided_slice %235 {offsets = [0, 0], sizes = [2, 32], strides = [1, 1]} : vector<2x64xf32> to vector<2x32xf32>
    %258 = vector.extract_strided_slice %246 {offsets = [0, 0], sizes = [2, 64], strides = [1, 1]} : vector<2x96xf32> to vector<2x64xf32>
    %259 = vector.extract_strided_slice %256 {offsets = [0, 0], sizes = [2, 64], strides = [1, 1]} : vector<2x96xf32> to vector<2x64xf32>
    %260 = arith.addf %258, %259 : vector<2x64xf32>
    %261 = arith.negf %260 : vector<2x64xf32>
    %262 = math.exp %261 : vector<2x64xf32>
    %cst_100 = arith.constant 1.000000e+00 : f32
    %263 = vector.broadcast %cst_100 : f32 to vector<2x64xf32>
    %264 = arith.addf %263, %262 : vector<2x64xf32>
    %265 = arith.divf %263, %264 : vector<2x64xf32>
    %266 = vector.extract_strided_slice %265 {offsets = [0, 0], sizes = [2, 32], strides = [1, 1]} : vector<2x64xf32> to vector<2x32xf32>
    %267 = vector.extract_strided_slice %265 {offsets = [0, 32], sizes = [2, 32], strides = [1, 1]} : vector<2x64xf32> to vector<2x32xf32>
    %268 = vector.extract_strided_slice %246 {offsets = [0, 64], sizes = [2, 32], strides = [1, 1]} : vector<2x96xf32> to vector<2x32xf32>
    %269 = vector.extract_strided_slice %256 {offsets = [0, 64], sizes = [2, 32], strides = [1, 1]} : vector<2x96xf32> to vector<2x32xf32>
    %270 = arith.mulf %266, %269 : vector<2x32xf32>
    %271 = arith.addf %268, %270 : vector<2x32xf32>
    %272 = math.tanh %271 : vector<2x32xf32>
    %cst_101 = arith.constant 1.000000e+00 : f32
    %273 = vector.broadcast %cst_101 : f32 to vector<2x32xf32>
    %274 = arith.subf %273, %267 : vector<2x32xf32>
    %275 = arith.mulf %274, %272 : vector<2x32xf32>
    %276 = arith.mulf %267, %257 : vector<2x32xf32>
    %277 = arith.addf %275, %276 : vector<2x32xf32>
    %278 = vector.extract_strided_slice %237 {offsets = [0, 96], sizes = [2, 96], strides = [1, 1]} : vector<2x192xf32> to vector<2x96xf32>
    %279 = vector.extract_strided_slice %235 {offsets = [0, 32], sizes = [2, 32], strides = [1, 1]} : vector<2x64xf32> to vector<2x32xf32>
    %280 = vector.extract_strided_slice %255 {offsets = [0, 0], sizes = [2, 64], strides = [1, 1]} : vector<2x96xf32> to vector<2x64xf32>
    %281 = vector.extract_strided_slice %278 {offsets = [0, 0], sizes = [2, 64], strides = [1, 1]} : vector<2x96xf32> to vector<2x64xf32>
    %282 = arith.addf %280, %281 : vector<2x64xf32>
    %283 = arith.negf %282 : vector<2x64xf32>
    %284 = math.exp %283 : vector<2x64xf32>
    %cst_102 = arith.constant 1.000000e+00 : f32
    %285 = vector.broadcast %cst_102 : f32 to vector<2x64xf32>
    %286 = arith.addf %285, %284 : vector<2x64xf32>
    %287 = arith.divf %285, %286 : vector<2x64xf32>
    %288 = vector.extract_strided_slice %287 {offsets = [0, 0], sizes = [2, 32], strides = [1, 1]} : vector<2x64xf32> to vector<2x32xf32>
    %289 = vector.extract_strided_slice %287 {offsets = [0, 32], sizes = [2, 32], strides = [1, 1]} : vector<2x64xf32> to vector<2x32xf32>
    %290 = vector.extract_strided_slice %255 {offsets = [0, 64], sizes = [2, 32], strides = [1, 1]} : vector<2x96xf32> to vector<2x32xf32>
    %291 = vector.extract_strided_slice %278 {offsets = [0, 64], sizes = [2, 32], strides = [1, 1]} : vector<2x96xf32> to vector<2x32xf32>
    %292 = arith.mulf %288, %291 : vector<2x32xf32>
    %293 = arith.addf %290, %292 : vector<2x32xf32>
    %294 = math.tanh %293 : vector<2x32xf32>
    %cst_103 = arith.constant 1.000000e+00 : f32
    %295 = vector.broadcast %cst_103 : f32 to vector<2x32xf32>
    %296 = arith.subf %295, %289 : vector<2x32xf32>
    %297 = arith.mulf %296, %294 : vector<2x32xf32>
    %298 = arith.mulf %289, %279 : vector<2x32xf32>
    %299 = arith.addf %297, %298 : vector<2x32xf32>
    %300 = tpu.concatenate %277, %299 in 1 : vector<2x32xf32>, vector<2x32xf32> -> vector<2x64xf32>
    %c0_104 = arith.constant 0 : index
    %c0_105 = arith.constant 0 : index
    %301 = vector.load %arg13[%c0_104, %c0_105] : memref<2x64xf32, #tpu.memory_space<vmem>>, vector<2x64xf32>
    tpu.vector_store %arg13[%c0_104, %c0_105], %300 {strides = array<i32>} : memref<2x64xf32, #tpu.memory_space<vmem>>, vector<2x64xf32>,
    %c0_106 = arith.constant 0 : index
    %c0_107 = arith.constant 0 : index
    %302 = vector.load %arg14[%c0_106, %c0_107] : memref<2x64xf32, #tpu.memory_space<vmem>>, vector<2x64xf32>
    %303 = math.tanh %300 : vector<2x64xf32>
    %304 = arith.maximumf %302, %303 : vector<2x64xf32>
    %c0_108 = arith.constant 0 : index
    %c0_109 = arith.constant 0 : index
    %305 = vector.load %arg14[%c0_108, %c0_109] : memref<2x64xf32, #tpu.memory_space<vmem>>, vector<2x64xf32>
    tpu.vector_store %arg14[%c0_108, %c0_109], %304 {strides = array<i32>} : memref<2x64xf32, #tpu.memory_space<vmem>>, vector<2x64xf32>,
    %c4_i32 = arith.constant 4 : i32
    %c0_110 = arith.constant 0 : index
    %c0_111 = arith.constant 0 : index
    %306 = vector.load %arg13[%c0_110, %c0_111] : memref<2x64xf32, #tpu.memory_space<vmem>>, vector<2x64xf32>
    %c0_112 = arith.constant 0 : index
    %c0_113 = arith.constant 0 : index
    %307 = vector.load %arg12[%c0_112, %c0_113] : memref<2x64xf32, #tpu.memory_space<vmem>>, vector<2x64xf32>
    tpu.vector_store %arg12[%c0_112, %c0_113], %306 {strides = array<i32>} : memref<2x64xf32, #tpu.memory_space<vmem>>, vector<2x64xf32>,
    %c1_i32_114 = arith.constant 1 : i32
    %308 = arith.cmpi eq, %arg0, %c1_i32_114 : i32
    %309 = arith.extui %308 : i1 to i32
    %c0_i32_115 = arith.constant 0 : i32
    %310 = arith.cmpi ne, %309, %c0_i32_115 : i32
    scf.if %310 {
      %c0_116 = arith.constant 0 : index
      %c0_117 = arith.constant 0 : index
      %311 = vector.load %arg14[%c0_116, %c0_117] : memref<2x64xf32, #tpu.memory_space<vmem>>, vector<2x64xf32>
      %312 = math.tanh %311 : vector<2x64xf32>
      %c0_118 = arith.constant 0 : index
      %c0_119 = arith.constant 0 : index
      %313 = vector.load %arg11[%c0_118, %c0_119] : memref<2x64xf32, #tpu.memory_space<vmem>>, vector<2x64xf32>
      tpu.vector_store %arg11[%c0_118, %c0_119], %312 {strides = array<i32>} : memref<2x64xf32, #tpu.memory_space<vmem>>, vector<2x64xf32>,
    } else {
    }
    return
  }
  func.func @transform_0(%arg0: i32) -> (i32, i32, i32) {
    %c0_i32 = arith.constant 0 : i32
    %c0_i32_0 = arith.constant 0 : i32
    %c0_i32_1 = arith.constant 0 : i32
    return %arg0, %c0_i32, %c0_i32_0 : i32, i32, i32
  }
  func.func @transform_1(%arg0: i32) -> (i32, i32, i32) {
    %c0_i32 = arith.constant 0 : i32
    %c0_i32_0 = arith.constant 0 : i32
    %c0_i32_1 = arith.constant 0 : i32
    return %arg0, %c0_i32, %c0_i32_0 : i32, i32, i32
  }
  func.func @transform_2(%arg0: i32) -> (i32, i32, i32) {
    %c1_i32 = arith.constant 1 : i32
    %0 = arith.subi %c1_i32, %arg0 : i32
    %c0_i32 = arith.constant 0 : i32
    %c0_i32_0 = arith.constant 0 : i32
    %c0_i32_1 = arith.constant 0 : i32
    return %0, %c0_i32, %c0_i32_0 : i32, i32, i32
  }
  func.func @transform_3(%arg0: i32) -> (i32, i32, i32) {
    %c1_i32 = arith.constant 1 : i32
    %0 = arith.subi %c1_i32, %arg0 : i32
    %c0_i32 = arith.constant 0 : i32
    %c0_i32_0 = arith.constant 0 : i32
    %c0_i32_1 = arith.constant 0 : i32
    return %0, %c0_i32, %c0_i32_0 : i32, i32, i32
  }
  func.func @transform_4(%arg0: i32) -> (i32, i32) {
    %c0_i32 = arith.constant 0 : i32
    %c0_i32_0 = arith.constant 0 : i32
    %c0_i32_1 = arith.constant 0 : i32
    return %c0_i32, %c0_i32_0 : i32, i32
  }
  func.func @transform_5(%arg0: i32) -> (i32, i32) {
    %c0_i32 = arith.constant 0 : i32
    %c0_i32_0 = arith.constant 0 : i32
    %c0_i32_1 = arith.constant 0 : i32
    return %c0_i32, %c0_i32_0 : i32, i32
  }
  func.func @transform_6(%arg0: i32) -> (i32, i32) {
    %c0_i32 = arith.constant 0 : i32
    %c0_i32_0 = arith.constant 0 : i32
    %c0_i32_1 = arith.constant 0 : i32
    return %c0_i32, %c0_i32_0 : i32, i32
  }
  func.func @transform_7(%arg0: i32) -> (i32, i32) {
    %c0_i32 = arith.constant 0 : i32
    %c0_i32_0 = arith.constant 0 : i32
    %c0_i32_1 = arith.constant 0 : i32
    return %c0_i32, %c0_i32_0 : i32, i32
  }
  func.func @transform_8(%arg0: i32) -> (i32, i32) {
    %c0_i32 = arith.constant 0 : i32
    %c0_i32_0 = arith.constant 0 : i32
    %c0_i32_1 = arith.constant 0 : i32
    return %c0_i32, %c0_i32_0 : i32, i32
  }
  func.func @transform_9(%arg0: i32) -> (i32, i32) {
    %c0_i32 = arith.constant 0 : i32
    %c0_i32_0 = arith.constant 0 : i32
    %c0_i32_1 = arith.constant 0 : i32
    return %c0_i32, %c0_i32_0 : i32, i32
  }
  func.func @transform_10(%arg0: i32) -> (i32, i32) {
    %c0_i32 = arith.constant 0 : i32
    %c0_i32_0 = arith.constant 0 : i32
    %c0_i32_1 = arith.constant 0 : i32
    return %c0_i32, %c0_i32_0 : i32, i32
  }
  func.func @transform_11(%arg0: i32) -> (i32, i32) {
    %c0_i32 = arith.constant 0 : i32
    %c0_i32_0 = arith.constant 0 : i32
    %c0_i32_1 = arith.constant 0 : i32
    return %c0_i32, %c0_i32_0 : i32, i32
  }
}

module attributes {stable_mosaic.version = 11 : i64} {
  func.func @kernel(%arg0: i32, %arg1: memref<4x2x16xf32, #tpu.memory_space<vmem>>, %arg2: memref<4x2x16xf32, #tpu.memory_space<vmem>>, %arg3: memref<16x96xf32, #tpu.memory_space<vmem>>, %arg4: memref<16x96xf32, #tpu.memory_space<vmem>>, %arg5: memref<64x192xf32, #tpu.memory_space<vmem>>, %arg6: memref<1x96xf32, #tpu.memory_space<vmem>>, %arg7: memref<1x96xf32, #tpu.memory_space<vmem>>, %arg8: memref<1x192xf32, #tpu.memory_space<vmem>>, %arg9: memref<4x2x32xf32, #tpu.memory_space<vmem>>, %arg10: memref<4x2x32xf32, #tpu.memory_space<vmem>>, %arg11: memref<2x64xf32, #tpu.memory_space<vmem>>, %arg12: memref<2x64xf32, #tpu.memory_space<vmem>>) attributes {dimension_semantics = [#tpu.dimension_semantics<arbitrary>], iteration_bounds = array<i64: 2>, scalar_prefetch = 0 : i64, scratch_operands = 1 : i64, tpu.core_type = #tpu.core_type<tc>, window_params = [{transform_indices = @transform_0, window_bounds = array<i64: 4, 2, 16>}, {transform_indices = @transform_1, window_bounds = array<i64: 4, 2, 16>}, {pipeline_mode = #tpu.pipeline_mode<synchronous>, transform_indices = @transform_2, window_bounds = array<i64: 16, 96>}, {pipeline_mode = #tpu.pipeline_mode<synchronous>, transform_indices = @transform_3, window_bounds = array<i64: 16, 96>}, {pipeline_mode = #tpu.pipeline_mode<synchronous>, transform_indices = @transform_4, window_bounds = array<i64: 64, 192>}, {pipeline_mode = #tpu.pipeline_mode<synchronous>, transform_indices = @transform_5, window_bounds = array<i64: 1, 96>}, {pipeline_mode = #tpu.pipeline_mode<synchronous>, transform_indices = @transform_6, window_bounds = array<i64: 1, 96>}, {pipeline_mode = #tpu.pipeline_mode<synchronous>, transform_indices = @transform_7, window_bounds = array<i64: 1, 192>}, {transform_indices = @transform_8, window_bounds = array<i64: 4, 2, 32>}, {transform_indices = @transform_9, window_bounds = array<i64: 4, 2, 32>}, {pipeline_mode = #tpu.pipeline_mode<synchronous>, transform_indices = @transform_10, window_bounds = array<i64: 2, 64>}]} {
    %c0_i32 = arith.constant 0 : i32
    %0 = arith.cmpi eq, %arg0, %c0_i32 : i32
    %1 = arith.extui %0 : i1 to i32
    %c0_i32_0 = arith.constant 0 : i32
    %2 = arith.cmpi ne, %1, %c0_i32_0 : i32
    scf.if %2 {
      %cst_96 = arith.constant 0.000000e+00 : f32
      %289 = vector.broadcast %cst_96 : f32 to vector<2x64xf32>
      %c0_97 = arith.constant 0 : index
      %c0_98 = arith.constant 0 : index
      %290 = vector.load %arg12[%c0_97, %c0_98] : memref<2x64xf32, #tpu.memory_space<vmem>>, vector<2x64xf32>
      tpu.vector_store %arg12[%c0_97, %c0_98], %289 {strides = array<i32>} : memref<2x64xf32, #tpu.memory_space<vmem>>, vector<2x64xf32>,
    } else {
    }
    %c0 = arith.constant 0 : index
    %c0_1 = arith.constant 0 : index
    %3 = vector.load %arg3[%c0, %c0_1] : memref<16x96xf32, #tpu.memory_space<vmem>>, vector<16x96xf32>
    %c0_2 = arith.constant 0 : index
    %c0_3 = arith.constant 0 : index
    %4 = vector.load %arg4[%c0_2, %c0_3] : memref<16x96xf32, #tpu.memory_space<vmem>>, vector<16x96xf32>
    %c0_4 = arith.constant 0 : index
    %c0_5 = arith.constant 0 : index
    %5 = vector.load %arg5[%c0_4, %c0_5] : memref<64x192xf32, #tpu.memory_space<vmem>>, vector<64x192xf32>
    %c0_6 = arith.constant 0 : index
    %c0_7 = arith.constant 0 : index
    %6 = vector.load %arg6[%c0_6, %c0_7] : memref<1x96xf32, #tpu.memory_space<vmem>>, vector<1x96xf32>
    %7 = vector.shape_cast %6 : vector<1x96xf32> to vector<1x96xf32>
    %8 = vector.broadcast %7 : vector<1x96xf32> to vector<2x96xf32>
    %c0_8 = arith.constant 0 : index
    %c0_9 = arith.constant 0 : index
    %9 = vector.load %arg7[%c0_8, %c0_9] : memref<1x96xf32, #tpu.memory_space<vmem>>, vector<1x96xf32>
    %10 = vector.shape_cast %9 : vector<1x96xf32> to vector<1x96xf32>
    %11 = vector.broadcast %10 : vector<1x96xf32> to vector<2x96xf32>
    %c0_10 = arith.constant 0 : index
    %c0_11 = arith.constant 0 : index
    %12 = vector.load %arg8[%c0_10, %c0_11] : memref<1x192xf32, #tpu.memory_space<vmem>>, vector<1x192xf32>
    %13 = vector.shape_cast %12 : vector<1x192xf32> to vector<1x192xf32>
    %14 = vector.broadcast %13 : vector<1x192xf32> to vector<2x192xf32>
    %c0_i32_12 = arith.constant 0 : i32
    %c3_i32 = arith.constant 3 : i32
    %15 = arith.subi %c3_i32, %c0_i32_12 : i32
    %c0_13 = arith.constant 0 : index
    %c0_14 = arith.constant 0 : index
    %16 = vector.load %arg12[%c0_13, %c0_14] : memref<2x64xf32, #tpu.memory_space<vmem>>, vector<2x64xf32>
    %cst = arith.constant dense<0.000000e+00> : vector<2x192xf32>
    %17 = tpu.matmul %16, %5, %cst {dimension_numbers = #tpu.dot_dimension_numbers<[1], [0], [0], [1], [0, 0, 1, 1], [], []>} : vector<2x64xf32>, vector<64x192xf32>, vector<2x192xf32> -> vector<2x192xf32>
    %18 = arith.addf %17, %14 : vector<2x192xf32>
    %19 = arith.index_cast %c0_i32_12 : i32 to index
    %c0_15 = arith.constant 0 : index
    %c0_16 = arith.constant 0 : index
    %20 = vector.load %arg1[%19, %c0_15, %c0_16] : memref<4x2x16xf32, #tpu.memory_space<vmem>>, vector<1x2x16xf32>
    %21 = vector.shape_cast %20 : vector<1x2x16xf32> to vector<2x16xf32>
    %cst_17 = arith.constant dense<0.000000e+00> : vector<2x96xf32>
    %22 = tpu.matmul %21, %3, %cst_17 {dimension_numbers = #tpu.dot_dimension_numbers<[1], [0], [0], [1], [0, 0, 1, 1], [], []>} : vector<2x16xf32>, vector<16x96xf32>, vector<2x96xf32> -> vector<2x96xf32>
    %23 = arith.addf %22, %8 : vector<2x96xf32>
    %24 = arith.index_cast %15 : i32 to index
    %c0_18 = arith.constant 0 : index
    %c0_19 = arith.constant 0 : index
    %25 = vector.load %arg2[%24, %c0_18, %c0_19] : memref<4x2x16xf32, #tpu.memory_space<vmem>>, vector<1x2x16xf32>
    %26 = vector.shape_cast %25 : vector<1x2x16xf32> to vector<2x16xf32>
    %cst_20 = arith.constant dense<0.000000e+00> : vector<2x96xf32>
    %27 = tpu.matmul %26, %4, %cst_20 {dimension_numbers = #tpu.dot_dimension_numbers<[1], [0], [0], [1], [0, 0, 1, 1], [], []>} : vector<2x16xf32>, vector<16x96xf32>, vector<2x96xf32> -> vector<2x96xf32>
    %28 = arith.addf %27, %11 : vector<2x96xf32>
    %29 = vector.extract_strided_slice %18 {offsets = [0, 0], sizes = [2, 96], strides = [1, 1]} : vector<2x192xf32> to vector<2x96xf32>
    %30 = vector.extract_strided_slice %16 {offsets = [0, 0], sizes = [2, 32], strides = [1, 1]} : vector<2x64xf32> to vector<2x32xf32>
    %31 = vector.extract_strided_slice %23 {offsets = [0, 0], sizes = [2, 64], strides = [1, 1]} : vector<2x96xf32> to vector<2x64xf32>
    %32 = vector.extract_strided_slice %29 {offsets = [0, 0], sizes = [2, 64], strides = [1, 1]} : vector<2x96xf32> to vector<2x64xf32>
    %33 = arith.addf %31, %32 : vector<2x64xf32>
    %34 = arith.negf %33 : vector<2x64xf32>
    %35 = math.exp %34 : vector<2x64xf32>
    %cst_21 = arith.constant 1.000000e+00 : f32
    %36 = vector.broadcast %cst_21 : f32 to vector<2x64xf32>
    %37 = arith.addf %36, %35 : vector<2x64xf32>
    %38 = arith.divf %36, %37 : vector<2x64xf32>
    %39 = vector.extract_strided_slice %38 {offsets = [0, 0], sizes = [2, 32], strides = [1, 1]} : vector<2x64xf32> to vector<2x32xf32>
    %40 = vector.extract_strided_slice %38 {offsets = [0, 32], sizes = [2, 32], strides = [1, 1]} : vector<2x64xf32> to vector<2x32xf32>
    %41 = vector.extract_strided_slice %23 {offsets = [0, 64], sizes = [2, 32], strides = [1, 1]} : vector<2x96xf32> to vector<2x32xf32>
    %42 = vector.extract_strided_slice %29 {offsets = [0, 64], sizes = [2, 32], strides = [1, 1]} : vector<2x96xf32> to vector<2x32xf32>
    %43 = arith.mulf %39, %42 : vector<2x32xf32>
    %44 = arith.addf %41, %43 : vector<2x32xf32>
    %45 = math.tanh %44 : vector<2x32xf32>
    %cst_22 = arith.constant 1.000000e+00 : f32
    %46 = vector.broadcast %cst_22 : f32 to vector<2x32xf32>
    %47 = arith.subf %46, %40 : vector<2x32xf32>
    %48 = arith.mulf %47, %45 : vector<2x32xf32>
    %49 = arith.mulf %40, %30 : vector<2x32xf32>
    %50 = arith.addf %48, %49 : vector<2x32xf32>
    %51 = vector.extract_strided_slice %18 {offsets = [0, 96], sizes = [2, 96], strides = [1, 1]} : vector<2x192xf32> to vector<2x96xf32>
    %52 = vector.extract_strided_slice %16 {offsets = [0, 32], sizes = [2, 32], strides = [1, 1]} : vector<2x64xf32> to vector<2x32xf32>
    %53 = vector.extract_strided_slice %28 {offsets = [0, 0], sizes = [2, 64], strides = [1, 1]} : vector<2x96xf32> to vector<2x64xf32>
    %54 = vector.extract_strided_slice %51 {offsets = [0, 0], sizes = [2, 64], strides = [1, 1]} : vector<2x96xf32> to vector<2x64xf32>
    %55 = arith.addf %53, %54 : vector<2x64xf32>
    %56 = arith.negf %55 : vector<2x64xf32>
    %57 = math.exp %56 : vector<2x64xf32>
    %cst_23 = arith.constant 1.000000e+00 : f32
    %58 = vector.broadcast %cst_23 : f32 to vector<2x64xf32>
    %59 = arith.addf %58, %57 : vector<2x64xf32>
    %60 = arith.divf %58, %59 : vector<2x64xf32>
    %61 = vector.extract_strided_slice %60 {offsets = [0, 0], sizes = [2, 32], strides = [1, 1]} : vector<2x64xf32> to vector<2x32xf32>
    %62 = vector.extract_strided_slice %60 {offsets = [0, 32], sizes = [2, 32], strides = [1, 1]} : vector<2x64xf32> to vector<2x32xf32>
    %63 = vector.extract_strided_slice %28 {offsets = [0, 64], sizes = [2, 32], strides = [1, 1]} : vector<2x96xf32> to vector<2x32xf32>
    %64 = vector.extract_strided_slice %51 {offsets = [0, 64], sizes = [2, 32], strides = [1, 1]} : vector<2x96xf32> to vector<2x32xf32>
    %65 = arith.mulf %61, %64 : vector<2x32xf32>
    %66 = arith.addf %63, %65 : vector<2x32xf32>
    %67 = math.tanh %66 : vector<2x32xf32>
    %cst_24 = arith.constant 1.000000e+00 : f32
    %68 = vector.broadcast %cst_24 : f32 to vector<2x32xf32>
    %69 = arith.subf %68, %62 : vector<2x32xf32>
    %70 = arith.mulf %69, %67 : vector<2x32xf32>
    %71 = arith.mulf %62, %52 : vector<2x32xf32>
    %72 = arith.addf %70, %71 : vector<2x32xf32>
    %73 = tpu.concatenate %50, %72 in 1 : vector<2x32xf32>, vector<2x32xf32> -> vector<2x64xf32>
    %c0_25 = arith.constant 0 : index
    %c0_26 = arith.constant 0 : index
    %74 = vector.load %arg12[%c0_25, %c0_26] : memref<2x64xf32, #tpu.memory_space<vmem>>, vector<2x64xf32>
    tpu.vector_store %arg12[%c0_25, %c0_26], %73 {strides = array<i32>} : memref<2x64xf32, #tpu.memory_space<vmem>>, vector<2x64xf32>,
    %75 = arith.index_cast %c0_i32_12 : i32 to index
    %c0_27 = arith.constant 0 : index
    %c0_28 = arith.constant 0 : index
    %76 = vector.load %arg9[%75, %c0_27, %c0_28] : memref<4x2x32xf32, #tpu.memory_space<vmem>>, vector<1x2x32xf32>
    %77 = vector.shape_cast %76 : vector<1x2x32xf32> to vector<2x32xf32>
    %78 = vector.shape_cast %50 : vector<2x32xf32> to vector<1x2x32xf32>
    tpu.vector_store %arg9[%75, %c0_27, %c0_28], %78 {strides = array<i32>} : memref<4x2x32xf32, #tpu.memory_space<vmem>>, vector<1x2x32xf32>,
    %79 = arith.index_cast %15 : i32 to index
    %c0_29 = arith.constant 0 : index
    %c0_30 = arith.constant 0 : index
    %80 = vector.load %arg10[%79, %c0_29, %c0_30] : memref<4x2x32xf32, #tpu.memory_space<vmem>>, vector<1x2x32xf32>
    %81 = vector.shape_cast %80 : vector<1x2x32xf32> to vector<2x32xf32>
    %82 = vector.shape_cast %72 : vector<2x32xf32> to vector<1x2x32xf32>
    tpu.vector_store %arg10[%79, %c0_29, %c0_30], %82 {strides = array<i32>} : memref<4x2x32xf32, #tpu.memory_space<vmem>>, vector<1x2x32xf32>,
    %c1_i32 = arith.constant 1 : i32
    %c3_i32_31 = arith.constant 3 : i32
    %83 = arith.subi %c3_i32_31, %c1_i32 : i32
    %c0_32 = arith.constant 0 : index
    %c0_33 = arith.constant 0 : index
    %84 = vector.load %arg12[%c0_32, %c0_33] : memref<2x64xf32, #tpu.memory_space<vmem>>, vector<2x64xf32>
    %cst_34 = arith.constant dense<0.000000e+00> : vector<2x192xf32>
    %85 = tpu.matmul %84, %5, %cst_34 {dimension_numbers = #tpu.dot_dimension_numbers<[1], [0], [0], [1], [0, 0, 1, 1], [], []>} : vector<2x64xf32>, vector<64x192xf32>, vector<2x192xf32> -> vector<2x192xf32>
    %86 = arith.addf %85, %14 : vector<2x192xf32>
    %87 = arith.index_cast %c1_i32 : i32 to index
    %c0_35 = arith.constant 0 : index
    %c0_36 = arith.constant 0 : index
    %88 = vector.load %arg1[%87, %c0_35, %c0_36] : memref<4x2x16xf32, #tpu.memory_space<vmem>>, vector<1x2x16xf32>
    %89 = vector.shape_cast %88 : vector<1x2x16xf32> to vector<2x16xf32>
    %cst_37 = arith.constant dense<0.000000e+00> : vector<2x96xf32>
    %90 = tpu.matmul %89, %3, %cst_37 {dimension_numbers = #tpu.dot_dimension_numbers<[1], [0], [0], [1], [0, 0, 1, 1], [], []>} : vector<2x16xf32>, vector<16x96xf32>, vector<2x96xf32> -> vector<2x96xf32>
    %91 = arith.addf %90, %8 : vector<2x96xf32>
    %92 = arith.index_cast %83 : i32 to index
    %c0_38 = arith.constant 0 : index
    %c0_39 = arith.constant 0 : index
    %93 = vector.load %arg2[%92, %c0_38, %c0_39] : memref<4x2x16xf32, #tpu.memory_space<vmem>>, vector<1x2x16xf32>
    %94 = vector.shape_cast %93 : vector<1x2x16xf32> to vector<2x16xf32>
    %cst_40 = arith.constant dense<0.000000e+00> : vector<2x96xf32>
    %95 = tpu.matmul %94, %4, %cst_40 {dimension_numbers = #tpu.dot_dimension_numbers<[1], [0], [0], [1], [0, 0, 1, 1], [], []>} : vector<2x16xf32>, vector<16x96xf32>, vector<2x96xf32> -> vector<2x96xf32>
    %96 = arith.addf %95, %11 : vector<2x96xf32>
    %97 = vector.extract_strided_slice %86 {offsets = [0, 0], sizes = [2, 96], strides = [1, 1]} : vector<2x192xf32> to vector<2x96xf32>
    %98 = vector.extract_strided_slice %84 {offsets = [0, 0], sizes = [2, 32], strides = [1, 1]} : vector<2x64xf32> to vector<2x32xf32>
    %99 = vector.extract_strided_slice %91 {offsets = [0, 0], sizes = [2, 64], strides = [1, 1]} : vector<2x96xf32> to vector<2x64xf32>
    %100 = vector.extract_strided_slice %97 {offsets = [0, 0], sizes = [2, 64], strides = [1, 1]} : vector<2x96xf32> to vector<2x64xf32>
    %101 = arith.addf %99, %100 : vector<2x64xf32>
    %102 = arith.negf %101 : vector<2x64xf32>
    %103 = math.exp %102 : vector<2x64xf32>
    %cst_41 = arith.constant 1.000000e+00 : f32
    %104 = vector.broadcast %cst_41 : f32 to vector<2x64xf32>
    %105 = arith.addf %104, %103 : vector<2x64xf32>
    %106 = arith.divf %104, %105 : vector<2x64xf32>
    %107 = vector.extract_strided_slice %106 {offsets = [0, 0], sizes = [2, 32], strides = [1, 1]} : vector<2x64xf32> to vector<2x32xf32>
    %108 = vector.extract_strided_slice %106 {offsets = [0, 32], sizes = [2, 32], strides = [1, 1]} : vector<2x64xf32> to vector<2x32xf32>
    %109 = vector.extract_strided_slice %91 {offsets = [0, 64], sizes = [2, 32], strides = [1, 1]} : vector<2x96xf32> to vector<2x32xf32>
    %110 = vector.extract_strided_slice %97 {offsets = [0, 64], sizes = [2, 32], strides = [1, 1]} : vector<2x96xf32> to vector<2x32xf32>
    %111 = arith.mulf %107, %110 : vector<2x32xf32>
    %112 = arith.addf %109, %111 : vector<2x32xf32>
    %113 = math.tanh %112 : vector<2x32xf32>
    %cst_42 = arith.constant 1.000000e+00 : f32
    %114 = vector.broadcast %cst_42 : f32 to vector<2x32xf32>
    %115 = arith.subf %114, %108 : vector<2x32xf32>
    %116 = arith.mulf %115, %113 : vector<2x32xf32>
    %117 = arith.mulf %108, %98 : vector<2x32xf32>
    %118 = arith.addf %116, %117 : vector<2x32xf32>
    %119 = vector.extract_strided_slice %86 {offsets = [0, 96], sizes = [2, 96], strides = [1, 1]} : vector<2x192xf32> to vector<2x96xf32>
    %120 = vector.extract_strided_slice %84 {offsets = [0, 32], sizes = [2, 32], strides = [1, 1]} : vector<2x64xf32> to vector<2x32xf32>
    %121 = vector.extract_strided_slice %96 {offsets = [0, 0], sizes = [2, 64], strides = [1, 1]} : vector<2x96xf32> to vector<2x64xf32>
    %122 = vector.extract_strided_slice %119 {offsets = [0, 0], sizes = [2, 64], strides = [1, 1]} : vector<2x96xf32> to vector<2x64xf32>
    %123 = arith.addf %121, %122 : vector<2x64xf32>
    %124 = arith.negf %123 : vector<2x64xf32>
    %125 = math.exp %124 : vector<2x64xf32>
    %cst_43 = arith.constant 1.000000e+00 : f32
    %126 = vector.broadcast %cst_43 : f32 to vector<2x64xf32>
    %127 = arith.addf %126, %125 : vector<2x64xf32>
    %128 = arith.divf %126, %127 : vector<2x64xf32>
    %129 = vector.extract_strided_slice %128 {offsets = [0, 0], sizes = [2, 32], strides = [1, 1]} : vector<2x64xf32> to vector<2x32xf32>
    %130 = vector.extract_strided_slice %128 {offsets = [0, 32], sizes = [2, 32], strides = [1, 1]} : vector<2x64xf32> to vector<2x32xf32>
    %131 = vector.extract_strided_slice %96 {offsets = [0, 64], sizes = [2, 32], strides = [1, 1]} : vector<2x96xf32> to vector<2x32xf32>
    %132 = vector.extract_strided_slice %119 {offsets = [0, 64], sizes = [2, 32], strides = [1, 1]} : vector<2x96xf32> to vector<2x32xf32>
    %133 = arith.mulf %129, %132 : vector<2x32xf32>
    %134 = arith.addf %131, %133 : vector<2x32xf32>
    %135 = math.tanh %134 : vector<2x32xf32>
    %cst_44 = arith.constant 1.000000e+00 : f32
    %136 = vector.broadcast %cst_44 : f32 to vector<2x32xf32>
    %137 = arith.subf %136, %130 : vector<2x32xf32>
    %138 = arith.mulf %137, %135 : vector<2x32xf32>
    %139 = arith.mulf %130, %120 : vector<2x32xf32>
    %140 = arith.addf %138, %139 : vector<2x32xf32>
    %141 = tpu.concatenate %118, %140 in 1 : vector<2x32xf32>, vector<2x32xf32> -> vector<2x64xf32>
    %c0_45 = arith.constant 0 : index
    %c0_46 = arith.constant 0 : index
    %142 = vector.load %arg12[%c0_45, %c0_46] : memref<2x64xf32, #tpu.memory_space<vmem>>, vector<2x64xf32>
    tpu.vector_store %arg12[%c0_45, %c0_46], %141 {strides = array<i32>} : memref<2x64xf32, #tpu.memory_space<vmem>>, vector<2x64xf32>,
    %143 = arith.index_cast %c1_i32 : i32 to index
    %c0_47 = arith.constant 0 : index
    %c0_48 = arith.constant 0 : index
    %144 = vector.load %arg9[%143, %c0_47, %c0_48] : memref<4x2x32xf32, #tpu.memory_space<vmem>>, vector<1x2x32xf32>
    %145 = vector.shape_cast %144 : vector<1x2x32xf32> to vector<2x32xf32>
    %146 = vector.shape_cast %118 : vector<2x32xf32> to vector<1x2x32xf32>
    tpu.vector_store %arg9[%143, %c0_47, %c0_48], %146 {strides = array<i32>} : memref<4x2x32xf32, #tpu.memory_space<vmem>>, vector<1x2x32xf32>,
    %147 = arith.index_cast %83 : i32 to index
    %c0_49 = arith.constant 0 : index
    %c0_50 = arith.constant 0 : index
    %148 = vector.load %arg10[%147, %c0_49, %c0_50] : memref<4x2x32xf32, #tpu.memory_space<vmem>>, vector<1x2x32xf32>
    %149 = vector.shape_cast %148 : vector<1x2x32xf32> to vector<2x32xf32>
    %150 = vector.shape_cast %140 : vector<2x32xf32> to vector<1x2x32xf32>
    tpu.vector_store %arg10[%147, %c0_49, %c0_50], %150 {strides = array<i32>} : memref<4x2x32xf32, #tpu.memory_space<vmem>>, vector<1x2x32xf32>,
    %c2_i32 = arith.constant 2 : i32
    %c3_i32_51 = arith.constant 3 : i32
    %151 = arith.subi %c3_i32_51, %c2_i32 : i32
    %c0_52 = arith.constant 0 : index
    %c0_53 = arith.constant 0 : index
    %152 = vector.load %arg12[%c0_52, %c0_53] : memref<2x64xf32, #tpu.memory_space<vmem>>, vector<2x64xf32>
    %cst_54 = arith.constant dense<0.000000e+00> : vector<2x192xf32>
    %153 = tpu.matmul %152, %5, %cst_54 {dimension_numbers = #tpu.dot_dimension_numbers<[1], [0], [0], [1], [0, 0, 1, 1], [], []>} : vector<2x64xf32>, vector<64x192xf32>, vector<2x192xf32> -> vector<2x192xf32>
    %154 = arith.addf %153, %14 : vector<2x192xf32>
    %155 = arith.index_cast %c2_i32 : i32 to index
    %c0_55 = arith.constant 0 : index
    %c0_56 = arith.constant 0 : index
    %156 = vector.load %arg1[%155, %c0_55, %c0_56] : memref<4x2x16xf32, #tpu.memory_space<vmem>>, vector<1x2x16xf32>
    %157 = vector.shape_cast %156 : vector<1x2x16xf32> to vector<2x16xf32>
    %cst_57 = arith.constant dense<0.000000e+00> : vector<2x96xf32>
    %158 = tpu.matmul %157, %3, %cst_57 {dimension_numbers = #tpu.dot_dimension_numbers<[1], [0], [0], [1], [0, 0, 1, 1], [], []>} : vector<2x16xf32>, vector<16x96xf32>, vector<2x96xf32> -> vector<2x96xf32>
    %159 = arith.addf %158, %8 : vector<2x96xf32>
    %160 = arith.index_cast %151 : i32 to index
    %c0_58 = arith.constant 0 : index
    %c0_59 = arith.constant 0 : index
    %161 = vector.load %arg2[%160, %c0_58, %c0_59] : memref<4x2x16xf32, #tpu.memory_space<vmem>>, vector<1x2x16xf32>
    %162 = vector.shape_cast %161 : vector<1x2x16xf32> to vector<2x16xf32>
    %cst_60 = arith.constant dense<0.000000e+00> : vector<2x96xf32>
    %163 = tpu.matmul %162, %4, %cst_60 {dimension_numbers = #tpu.dot_dimension_numbers<[1], [0], [0], [1], [0, 0, 1, 1], [], []>} : vector<2x16xf32>, vector<16x96xf32>, vector<2x96xf32> -> vector<2x96xf32>
    %164 = arith.addf %163, %11 : vector<2x96xf32>
    %165 = vector.extract_strided_slice %154 {offsets = [0, 0], sizes = [2, 96], strides = [1, 1]} : vector<2x192xf32> to vector<2x96xf32>
    %166 = vector.extract_strided_slice %152 {offsets = [0, 0], sizes = [2, 32], strides = [1, 1]} : vector<2x64xf32> to vector<2x32xf32>
    %167 = vector.extract_strided_slice %159 {offsets = [0, 0], sizes = [2, 64], strides = [1, 1]} : vector<2x96xf32> to vector<2x64xf32>
    %168 = vector.extract_strided_slice %165 {offsets = [0, 0], sizes = [2, 64], strides = [1, 1]} : vector<2x96xf32> to vector<2x64xf32>
    %169 = arith.addf %167, %168 : vector<2x64xf32>
    %170 = arith.negf %169 : vector<2x64xf32>
    %171 = math.exp %170 : vector<2x64xf32>
    %cst_61 = arith.constant 1.000000e+00 : f32
    %172 = vector.broadcast %cst_61 : f32 to vector<2x64xf32>
    %173 = arith.addf %172, %171 : vector<2x64xf32>
    %174 = arith.divf %172, %173 : vector<2x64xf32>
    %175 = vector.extract_strided_slice %174 {offsets = [0, 0], sizes = [2, 32], strides = [1, 1]} : vector<2x64xf32> to vector<2x32xf32>
    %176 = vector.extract_strided_slice %174 {offsets = [0, 32], sizes = [2, 32], strides = [1, 1]} : vector<2x64xf32> to vector<2x32xf32>
    %177 = vector.extract_strided_slice %159 {offsets = [0, 64], sizes = [2, 32], strides = [1, 1]} : vector<2x96xf32> to vector<2x32xf32>
    %178 = vector.extract_strided_slice %165 {offsets = [0, 64], sizes = [2, 32], strides = [1, 1]} : vector<2x96xf32> to vector<2x32xf32>
    %179 = arith.mulf %175, %178 : vector<2x32xf32>
    %180 = arith.addf %177, %179 : vector<2x32xf32>
    %181 = math.tanh %180 : vector<2x32xf32>
    %cst_62 = arith.constant 1.000000e+00 : f32
    %182 = vector.broadcast %cst_62 : f32 to vector<2x32xf32>
    %183 = arith.subf %182, %176 : vector<2x32xf32>
    %184 = arith.mulf %183, %181 : vector<2x32xf32>
    %185 = arith.mulf %176, %166 : vector<2x32xf32>
    %186 = arith.addf %184, %185 : vector<2x32xf32>
    %187 = vector.extract_strided_slice %154 {offsets = [0, 96], sizes = [2, 96], strides = [1, 1]} : vector<2x192xf32> to vector<2x96xf32>
    %188 = vector.extract_strided_slice %152 {offsets = [0, 32], sizes = [2, 32], strides = [1, 1]} : vector<2x64xf32> to vector<2x32xf32>
    %189 = vector.extract_strided_slice %164 {offsets = [0, 0], sizes = [2, 64], strides = [1, 1]} : vector<2x96xf32> to vector<2x64xf32>
    %190 = vector.extract_strided_slice %187 {offsets = [0, 0], sizes = [2, 64], strides = [1, 1]} : vector<2x96xf32> to vector<2x64xf32>
    %191 = arith.addf %189, %190 : vector<2x64xf32>
    %192 = arith.negf %191 : vector<2x64xf32>
    %193 = math.exp %192 : vector<2x64xf32>
    %cst_63 = arith.constant 1.000000e+00 : f32
    %194 = vector.broadcast %cst_63 : f32 to vector<2x64xf32>
    %195 = arith.addf %194, %193 : vector<2x64xf32>
    %196 = arith.divf %194, %195 : vector<2x64xf32>
    %197 = vector.extract_strided_slice %196 {offsets = [0, 0], sizes = [2, 32], strides = [1, 1]} : vector<2x64xf32> to vector<2x32xf32>
    %198 = vector.extract_strided_slice %196 {offsets = [0, 32], sizes = [2, 32], strides = [1, 1]} : vector<2x64xf32> to vector<2x32xf32>
    %199 = vector.extract_strided_slice %164 {offsets = [0, 64], sizes = [2, 32], strides = [1, 1]} : vector<2x96xf32> to vector<2x32xf32>
    %200 = vector.extract_strided_slice %187 {offsets = [0, 64], sizes = [2, 32], strides = [1, 1]} : vector<2x96xf32> to vector<2x32xf32>
    %201 = arith.mulf %197, %200 : vector<2x32xf32>
    %202 = arith.addf %199, %201 : vector<2x32xf32>
    %203 = math.tanh %202 : vector<2x32xf32>
    %cst_64 = arith.constant 1.000000e+00 : f32
    %204 = vector.broadcast %cst_64 : f32 to vector<2x32xf32>
    %205 = arith.subf %204, %198 : vector<2x32xf32>
    %206 = arith.mulf %205, %203 : vector<2x32xf32>
    %207 = arith.mulf %198, %188 : vector<2x32xf32>
    %208 = arith.addf %206, %207 : vector<2x32xf32>
    %209 = tpu.concatenate %186, %208 in 1 : vector<2x32xf32>, vector<2x32xf32> -> vector<2x64xf32>
    %c0_65 = arith.constant 0 : index
    %c0_66 = arith.constant 0 : index
    %210 = vector.load %arg12[%c0_65, %c0_66] : memref<2x64xf32, #tpu.memory_space<vmem>>, vector<2x64xf32>
    tpu.vector_store %arg12[%c0_65, %c0_66], %209 {strides = array<i32>} : memref<2x64xf32, #tpu.memory_space<vmem>>, vector<2x64xf32>,
    %211 = arith.index_cast %c2_i32 : i32 to index
    %c0_67 = arith.constant 0 : index
    %c0_68 = arith.constant 0 : index
    %212 = vector.load %arg9[%211, %c0_67, %c0_68] : memref<4x2x32xf32, #tpu.memory_space<vmem>>, vector<1x2x32xf32>
    %213 = vector.shape_cast %212 : vector<1x2x32xf32> to vector<2x32xf32>
    %214 = vector.shape_cast %186 : vector<2x32xf32> to vector<1x2x32xf32>
    tpu.vector_store %arg9[%211, %c0_67, %c0_68], %214 {strides = array<i32>} : memref<4x2x32xf32, #tpu.memory_space<vmem>>, vector<1x2x32xf32>,
    %215 = arith.index_cast %151 : i32 to index
    %c0_69 = arith.constant 0 : index
    %c0_70 = arith.constant 0 : index
    %216 = vector.load %arg10[%215, %c0_69, %c0_70] : memref<4x2x32xf32, #tpu.memory_space<vmem>>, vector<1x2x32xf32>
    %217 = vector.shape_cast %216 : vector<1x2x32xf32> to vector<2x32xf32>
    %218 = vector.shape_cast %208 : vector<2x32xf32> to vector<1x2x32xf32>
    tpu.vector_store %arg10[%215, %c0_69, %c0_70], %218 {strides = array<i32>} : memref<4x2x32xf32, #tpu.memory_space<vmem>>, vector<1x2x32xf32>,
    %c3_i32_71 = arith.constant 3 : i32
    %c3_i32_72 = arith.constant 3 : i32
    %219 = arith.subi %c3_i32_72, %c3_i32_71 : i32
    %c0_73 = arith.constant 0 : index
    %c0_74 = arith.constant 0 : index
    %220 = vector.load %arg12[%c0_73, %c0_74] : memref<2x64xf32, #tpu.memory_space<vmem>>, vector<2x64xf32>
    %cst_75 = arith.constant dense<0.000000e+00> : vector<2x192xf32>
    %221 = tpu.matmul %220, %5, %cst_75 {dimension_numbers = #tpu.dot_dimension_numbers<[1], [0], [0], [1], [0, 0, 1, 1], [], []>} : vector<2x64xf32>, vector<64x192xf32>, vector<2x192xf32> -> vector<2x192xf32>
    %222 = arith.addf %221, %14 : vector<2x192xf32>
    %223 = arith.index_cast %c3_i32_71 : i32 to index
    %c0_76 = arith.constant 0 : index
    %c0_77 = arith.constant 0 : index
    %224 = vector.load %arg1[%223, %c0_76, %c0_77] : memref<4x2x16xf32, #tpu.memory_space<vmem>>, vector<1x2x16xf32>
    %225 = vector.shape_cast %224 : vector<1x2x16xf32> to vector<2x16xf32>
    %cst_78 = arith.constant dense<0.000000e+00> : vector<2x96xf32>
    %226 = tpu.matmul %225, %3, %cst_78 {dimension_numbers = #tpu.dot_dimension_numbers<[1], [0], [0], [1], [0, 0, 1, 1], [], []>} : vector<2x16xf32>, vector<16x96xf32>, vector<2x96xf32> -> vector<2x96xf32>
    %227 = arith.addf %226, %8 : vector<2x96xf32>
    %228 = arith.index_cast %219 : i32 to index
    %c0_79 = arith.constant 0 : index
    %c0_80 = arith.constant 0 : index
    %229 = vector.load %arg2[%228, %c0_79, %c0_80] : memref<4x2x16xf32, #tpu.memory_space<vmem>>, vector<1x2x16xf32>
    %230 = vector.shape_cast %229 : vector<1x2x16xf32> to vector<2x16xf32>
    %cst_81 = arith.constant dense<0.000000e+00> : vector<2x96xf32>
    %231 = tpu.matmul %230, %4, %cst_81 {dimension_numbers = #tpu.dot_dimension_numbers<[1], [0], [0], [1], [0, 0, 1, 1], [], []>} : vector<2x16xf32>, vector<16x96xf32>, vector<2x96xf32> -> vector<2x96xf32>
    %232 = arith.addf %231, %11 : vector<2x96xf32>
    %233 = vector.extract_strided_slice %222 {offsets = [0, 0], sizes = [2, 96], strides = [1, 1]} : vector<2x192xf32> to vector<2x96xf32>
    %234 = vector.extract_strided_slice %220 {offsets = [0, 0], sizes = [2, 32], strides = [1, 1]} : vector<2x64xf32> to vector<2x32xf32>
    %235 = vector.extract_strided_slice %227 {offsets = [0, 0], sizes = [2, 64], strides = [1, 1]} : vector<2x96xf32> to vector<2x64xf32>
    %236 = vector.extract_strided_slice %233 {offsets = [0, 0], sizes = [2, 64], strides = [1, 1]} : vector<2x96xf32> to vector<2x64xf32>
    %237 = arith.addf %235, %236 : vector<2x64xf32>
    %238 = arith.negf %237 : vector<2x64xf32>
    %239 = math.exp %238 : vector<2x64xf32>
    %cst_82 = arith.constant 1.000000e+00 : f32
    %240 = vector.broadcast %cst_82 : f32 to vector<2x64xf32>
    %241 = arith.addf %240, %239 : vector<2x64xf32>
    %242 = arith.divf %240, %241 : vector<2x64xf32>
    %243 = vector.extract_strided_slice %242 {offsets = [0, 0], sizes = [2, 32], strides = [1, 1]} : vector<2x64xf32> to vector<2x32xf32>
    %244 = vector.extract_strided_slice %242 {offsets = [0, 32], sizes = [2, 32], strides = [1, 1]} : vector<2x64xf32> to vector<2x32xf32>
    %245 = vector.extract_strided_slice %227 {offsets = [0, 64], sizes = [2, 32], strides = [1, 1]} : vector<2x96xf32> to vector<2x32xf32>
    %246 = vector.extract_strided_slice %233 {offsets = [0, 64], sizes = [2, 32], strides = [1, 1]} : vector<2x96xf32> to vector<2x32xf32>
    %247 = arith.mulf %243, %246 : vector<2x32xf32>
    %248 = arith.addf %245, %247 : vector<2x32xf32>
    %249 = math.tanh %248 : vector<2x32xf32>
    %cst_83 = arith.constant 1.000000e+00 : f32
    %250 = vector.broadcast %cst_83 : f32 to vector<2x32xf32>
    %251 = arith.subf %250, %244 : vector<2x32xf32>
    %252 = arith.mulf %251, %249 : vector<2x32xf32>
    %253 = arith.mulf %244, %234 : vector<2x32xf32>
    %254 = arith.addf %252, %253 : vector<2x32xf32>
    %255 = vector.extract_strided_slice %222 {offsets = [0, 96], sizes = [2, 96], strides = [1, 1]} : vector<2x192xf32> to vector<2x96xf32>
    %256 = vector.extract_strided_slice %220 {offsets = [0, 32], sizes = [2, 32], strides = [1, 1]} : vector<2x64xf32> to vector<2x32xf32>
    %257 = vector.extract_strided_slice %232 {offsets = [0, 0], sizes = [2, 64], strides = [1, 1]} : vector<2x96xf32> to vector<2x64xf32>
    %258 = vector.extract_strided_slice %255 {offsets = [0, 0], sizes = [2, 64], strides = [1, 1]} : vector<2x96xf32> to vector<2x64xf32>
    %259 = arith.addf %257, %258 : vector<2x64xf32>
    %260 = arith.negf %259 : vector<2x64xf32>
    %261 = math.exp %260 : vector<2x64xf32>
    %cst_84 = arith.constant 1.000000e+00 : f32
    %262 = vector.broadcast %cst_84 : f32 to vector<2x64xf32>
    %263 = arith.addf %262, %261 : vector<2x64xf32>
    %264 = arith.divf %262, %263 : vector<2x64xf32>
    %265 = vector.extract_strided_slice %264 {offsets = [0, 0], sizes = [2, 32], strides = [1, 1]} : vector<2x64xf32> to vector<2x32xf32>
    %266 = vector.extract_strided_slice %264 {offsets = [0, 32], sizes = [2, 32], strides = [1, 1]} : vector<2x64xf32> to vector<2x32xf32>
    %267 = vector.extract_strided_slice %232 {offsets = [0, 64], sizes = [2, 32], strides = [1, 1]} : vector<2x96xf32> to vector<2x32xf32>
    %268 = vector.extract_strided_slice %255 {offsets = [0, 64], sizes = [2, 32], strides = [1, 1]} : vector<2x96xf32> to vector<2x32xf32>
    %269 = arith.mulf %265, %268 : vector<2x32xf32>
    %270 = arith.addf %267, %269 : vector<2x32xf32>
    %271 = math.tanh %270 : vector<2x32xf32>
    %cst_85 = arith.constant 1.000000e+00 : f32
    %272 = vector.broadcast %cst_85 : f32 to vector<2x32xf32>
    %273 = arith.subf %272, %266 : vector<2x32xf32>
    %274 = arith.mulf %273, %271 : vector<2x32xf32>
    %275 = arith.mulf %266, %256 : vector<2x32xf32>
    %276 = arith.addf %274, %275 : vector<2x32xf32>
    %277 = tpu.concatenate %254, %276 in 1 : vector<2x32xf32>, vector<2x32xf32> -> vector<2x64xf32>
    %c0_86 = arith.constant 0 : index
    %c0_87 = arith.constant 0 : index
    %278 = vector.load %arg12[%c0_86, %c0_87] : memref<2x64xf32, #tpu.memory_space<vmem>>, vector<2x64xf32>
    tpu.vector_store %arg12[%c0_86, %c0_87], %277 {strides = array<i32>} : memref<2x64xf32, #tpu.memory_space<vmem>>, vector<2x64xf32>,
    %279 = arith.index_cast %c3_i32_71 : i32 to index
    %c0_88 = arith.constant 0 : index
    %c0_89 = arith.constant 0 : index
    %280 = vector.load %arg9[%279, %c0_88, %c0_89] : memref<4x2x32xf32, #tpu.memory_space<vmem>>, vector<1x2x32xf32>
    %281 = vector.shape_cast %280 : vector<1x2x32xf32> to vector<2x32xf32>
    %282 = vector.shape_cast %254 : vector<2x32xf32> to vector<1x2x32xf32>
    tpu.vector_store %arg9[%279, %c0_88, %c0_89], %282 {strides = array<i32>} : memref<4x2x32xf32, #tpu.memory_space<vmem>>, vector<1x2x32xf32>,
    %283 = arith.index_cast %219 : i32 to index
    %c0_90 = arith.constant 0 : index
    %c0_91 = arith.constant 0 : index
    %284 = vector.load %arg10[%283, %c0_90, %c0_91] : memref<4x2x32xf32, #tpu.memory_space<vmem>>, vector<1x2x32xf32>
    %285 = vector.shape_cast %284 : vector<1x2x32xf32> to vector<2x32xf32>
    %286 = vector.shape_cast %276 : vector<2x32xf32> to vector<1x2x32xf32>
    tpu.vector_store %arg10[%283, %c0_90, %c0_91], %286 {strides = array<i32>} : memref<4x2x32xf32, #tpu.memory_space<vmem>>, vector<1x2x32xf32>,
    %c4_i32 = arith.constant 4 : i32
    %c0_92 = arith.constant 0 : index
    %c0_93 = arith.constant 0 : index
    %287 = vector.load %arg12[%c0_92, %c0_93] : memref<2x64xf32, #tpu.memory_space<vmem>>, vector<2x64xf32>
    %c0_94 = arith.constant 0 : index
    %c0_95 = arith.constant 0 : index
    %288 = vector.load %arg11[%c0_94, %c0_95] : memref<2x64xf32, #tpu.memory_space<vmem>>, vector<2x64xf32>
    tpu.vector_store %arg11[%c0_94, %c0_95], %287 {strides = array<i32>} : memref<2x64xf32, #tpu.memory_space<vmem>>, vector<2x64xf32>,
    return
  }
  func.func @transform_0(%arg0: i32) -> (i32, i32, i32) {
    %c0_i32 = arith.constant 0 : i32
    %c0_i32_0 = arith.constant 0 : i32
    %c0_i32_1 = arith.constant 0 : i32
    return %arg0, %c0_i32, %c0_i32_0 : i32, i32, i32
  }
  func.func @transform_1(%arg0: i32) -> (i32, i32, i32) {
    %c1_i32 = arith.constant 1 : i32
    %0 = arith.subi %c1_i32, %arg0 : i32
    %c0_i32 = arith.constant 0 : i32
    %c0_i32_0 = arith.constant 0 : i32
    %c0_i32_1 = arith.constant 0 : i32
    return %0, %c0_i32, %c0_i32_0 : i32, i32, i32
  }
  func.func @transform_2(%arg0: i32) -> (i32, i32) {
    %c0_i32 = arith.constant 0 : i32
    %c0_i32_0 = arith.constant 0 : i32
    %c0_i32_1 = arith.constant 0 : i32
    return %c0_i32, %c0_i32_0 : i32, i32
  }
  func.func @transform_3(%arg0: i32) -> (i32, i32) {
    %c0_i32 = arith.constant 0 : i32
    %c0_i32_0 = arith.constant 0 : i32
    %c0_i32_1 = arith.constant 0 : i32
    return %c0_i32, %c0_i32_0 : i32, i32
  }
  func.func @transform_4(%arg0: i32) -> (i32, i32) {
    %c0_i32 = arith.constant 0 : i32
    %c0_i32_0 = arith.constant 0 : i32
    %c0_i32_1 = arith.constant 0 : i32
    return %c0_i32, %c0_i32_0 : i32, i32
  }
  func.func @transform_5(%arg0: i32) -> (i32, i32) {
    %c0_i32 = arith.constant 0 : i32
    %c0_i32_0 = arith.constant 0 : i32
    %c0_i32_1 = arith.constant 0 : i32
    return %c0_i32, %c0_i32_0 : i32, i32
  }
  func.func @transform_6(%arg0: i32) -> (i32, i32) {
    %c0_i32 = arith.constant 0 : i32
    %c0_i32_0 = arith.constant 0 : i32
    %c0_i32_1 = arith.constant 0 : i32
    return %c0_i32, %c0_i32_0 : i32, i32
  }
  func.func @transform_7(%arg0: i32) -> (i32, i32) {
    %c0_i32 = arith.constant 0 : i32
    %c0_i32_0 = arith.constant 0 : i32
    %c0_i32_1 = arith.constant 0 : i32
    return %c0_i32, %c0_i32_0 : i32, i32
  }
  func.func @transform_8(%arg0: i32) -> (i32, i32, i32) {
    %c0_i32 = arith.constant 0 : i32
    %c0_i32_0 = arith.constant 0 : i32
    %c0_i32_1 = arith.constant 0 : i32
    return %arg0, %c0_i32, %c0_i32_0 : i32, i32, i32
  }
  func.func @transform_9(%arg0: i32) -> (i32, i32, i32) {
    %c1_i32 = arith.constant 1 : i32
    %0 = arith.subi %c1_i32, %arg0 : i32
    %c0_i32 = arith.constant 0 : i32
    %c0_i32_0 = arith.constant 0 : i32
    %c0_i32_1 = arith.constant 0 : i32
    return %0, %c0_i32, %c0_i32_0 : i32, i32, i32
  }
  func.func @transform_10(%arg0: i32) -> (i32, i32) {
    %c0_i32 = arith.constant 0 : i32
    %c0_i32_0 = arith.constant 0 : i32
    %c0_i32_1 = arith.constant 0 : i32
    return %c0_i32, %c0_i32_0 : i32, i32
  }
}

</mosaic_0001>

<bundles_post_ra>
// kernel: utterance_net_forward.2
= control target key start
LH: loop header
LB: loop body
LE: loop exit
PB: predicated region body
PF: predicated region fallthrough
CT: control target
= control target key end

     0   :  { %16 = vsyncpa [#allocation4], 0  ;;  %s2103_s0 = inlined_call_operand.vmem [shape: f32[8,2,16], index: 0, kind: input, shape index: {}, may-alias: {0,1}]   ;;  %s2104_s1 = inlined_call_operand.vmem [shape: f32[8,2,16], index: 1, kind: input, shape index: {}, may-alias: {0,1}]   ;;  %s2105_s2 = inlined_call_operand.vmem [shape: f32[16,96], index: 2, kind: input, shape index: {}]   ;;  %s2106_s3 = inlined_call_operand.vmem [shape: f32[16,96], index: 3, kind: input, shape index: {}]   ;;  %s2107_s4 = inlined_call_operand.hbm [shape: f32[64,192], index: 4, kind: input, shape index: {}]   ;;  %s2108_s5 = inlined_call_operand.vmem [shape: f32[1,96], index: 5, kind: input, shape index: {}]   ;;  %s2109_s6 = inlined_call_operand.hbm [shape: f32[1,96], index: 6, kind: input, shape index: {}]   ;;  %s2110_s7 = inlined_call_operand.hbm [shape: f32[1,192], index: 7, kind: input, shape index: {}]   ;;  %s2111_s8 = inlined_call_operand.vmem [shape: f32[8,2,32], index: 8, kind: output, shape index: {0}]   ;;  %s2112_s9 = inlined_call_operand.vmem [shape: f32[8,2,32], index: 9, kind: output, shape index: {1}]   ;;  %s2113_s10 = inlined_call_operand.vmem [shape: f32[2,64], index: 10, kind: output, shape index: {2}]  }
   0x1   :  { %17 = vsyncpa [#allocation6], 0  ;;  %s1742_s13 = smov 0  }
   0x2 LB: > { %s318_s16 = sshll.u32 %s2109_s6, 4  ;;  %s1751_s17 = sadd.s32 4294967295, %s1676_s13   ;;  %s1676_s13 = sphi %s1742_s13, %s23_s13   ;;  %s319_s16 = int_to_ptr.hbm [resolvable:$true] %s318_s16 }
   0x3   : > { %p1421_p0 = scmp.ge.s32.totalorder %s1676_s13, 1  ;;  %p283_p1 = scmp.lt.s32.totalorder %s1676_s13, 3 }
   0x4   : > { %p1422_p2 = scmp.ne.s32.totalorder %s1751_s17, 0  ;;  %p1499_p3 = scmp.eq.s32.totalorder %s1751_s17, 0 }
   0x5   : > { %p1757_p4 = pnand %p1421_p0, %p283_p1  ;;  %s1678_s19 = smov [#allocation5]  }
   0x6   : > { %s320_s20 = sshll.u32 %s1678_s19, 4  ;;  %s300_s23 = sshll.u32 %s2107_s4, 4  ;;  %s321_s20 = int_to_ptr.vmem [resolvable:$true] %s320_s20  ;;  %s301_s23 = int_to_ptr.hbm [resolvable:$true] %s300_s23 }
   0x7   : > { %p1489_p5 = pneg %p1757_p4  ;;  %s1679_s24 = smov [#allocation3]  }
   0x8   : > { %s302_s25 = sshll.u32 %s1679_s24, 4  ;;  %s330_s28 = sshll.u32 %s2110_s7, 4  ;;  %s303_s25 = int_to_ptr.vmem [resolvable:$true] %s302_s25  ;;  %s331_s28 = int_to_ptr.hbm [resolvable:$true] %s330_s28 }
   0x9   : > { %p1490_p6 = pnand %p1499_p3, %p1489_p5  ;;  %s1680_s29 = smov 256  }
   0xa   : > { %s1681_s30 = smov 16   ;;  %s1682_s11 = smov [#allocation7]  }
   0xb   : > { %1495 = dma.hbm_to_vmem [thread:$0]  (!%p1490_p6), %s319_s16, 16, %s321_s20, [#allocation6]  }
   0xc   : > { %1492 = dma.hbm_to_vmem [thread:$0]  (!%p1490_p6), %s301_s23, 2048, %s303_s25, [#allocation4], %s1680_s29, %s1680_s29, %s1681_s30  }
   0xd   : > { %s332_s12 = sshll.u32 %s1682_s11, 4  ;;  %365 = sbr.rel (%p1757_p4) target bundleno = 2367 (0x93f), region = 52  ;;  %s333_s12 = int_to_ptr.vmem [resolvable:$true] %s332_s12 }
   0xe   : > { %1498 = dma.hbm_to_vmem [thread:$0]  (!%p1490_p6), %s331_s28, 32, %s333_s12, [#allocation6]  }
  0x12   : > { %1667 = dma.done.wait (%p1499_p3), [#allocation4], 2048  }
  0x13   : > { %1669 = vsyncadd (%p1499_p3), [#allocation4], 4294965248 }
  0x14   : > { %1671 = dma.done.wait (%p1499_p3), [#allocation6], 48  }
  0x15   : > { %1673 = vsyncadd (%p1499_p3), [#allocation6], 4294967248  ;;  %s1430_s14 = sshll.u32 %s1751_s17, 2  ;;  %s432_s15 = ssub.s32 1, %s1751_s17 }
  0x16   : > { %p427_p7 = scmp.lt.s32.totalorder %s1430_s14, 7  ;;  %s1432_s16 = sshll.u32 %s432_s15, 2 }
  0x17   : > { %p434_p8 = scmp.lt.s32.totalorder %s1432_s16, 7 }
  0x18   : > { %s2116_s14 = smov (!%p427_p7, %s1430_s14), 7  ;;  %457 = sbr.rel (%p1422_p2) target bundleno = 31 (0x1f), region = 68 }
  0x19   : > { %s2118_s16 = smov (!%p434_p8, %s1432_s16), 7  ;;  %s1431_s18 = sshll.u32 %s2116_s14, 1 }
  0x1a   : > { %s1786_s21 = scalar_lea.vmem %s2103_s0, %s1431_s18  ;;  %s1433_s22 = sshll.u32 %s2118_s16, 1 }
  0x1b   : > { %s1791_s25 = scalar_lea.vmem %s2104_s1, %s1433_s22  ;;  %s1796_s28 = scalar_lea.vmem %s2111_s8, %s1431_s18 }
  0x1c   : > { %s1801_s11 = scalar_lea.vmem %s2112_s9, %s1433_s22 }
  0x1d   : > { %vm458_vm0 = vcmask 517120   ;;  %v1683_v0 = vmov 0.0  }
  0x1e   : > { %459 = vst.msk [vmem:[#allocation2] sm:$0x3] %vm458_vm0, %v1683_v0 }
  0x1f PF: > { %v1805_v1 = vld [vmem:[#allocation3 + $0x70] sm:$0xff]  ;;  %v1807_v2 = vld [vmem:[#allocation3 + $0x78] sm:$0xff]  ;;  %v1809_v3 = vld [vmem:[#allocation3 + $0x60] sm:$0xff]  ;;  %vm540_vm1 = vcmask 130048   ;;  %vm495_vm2 = vcmask 523264   ;;  %s1684_s22 = smov 32  }
  0x20   : > { %507 = vmatpush.msra.mxu0 %v1805_v1  ;;  %527 = vmatpush.msra.mxu1 %v1807_v2  ;;  %v1813_v4 = vld [vmem:[#allocation3 + $0x68] sm:$0xff]  ;;  %v1815_v5 = vld [vmem:[#allocation3 + $0x50] sm:$0xff]  ;;  %v1817_v6 = vld [vmem:[#allocation3 + $0x58] sm:$0xff]  ;;  %s1685_s23 = smov 64   ;;  %s1686_s24 = smov 96   ;;  %vm636_vm7 = vcmask 261120  }
  0x21   : > { %v1822_v7 = vld [vmem:[%s2105_s2 + $0x8] sm:$0xff]  ;;  %v1829_v8 = vld [vmem:[%s2105_s2] sm:$0xff]  ;;  %v1839_v12 = vld [vmem:[#allocation3 + $0x30] sm:$0xff]  ;;  %vm684_vm12 = vcmask 254976   ;;  %vm682_vm13 = vcmask 517120  }
  0x22   : > { %508 = vmatpush.msra.mxu0 %v1809_v3  ;;  %528 = vmatpush.msra.mxu1 %v1813_v4  ;;  %v1831_v9 = vld [vmem:[#allocation3 + $0x40] sm:$0xff]  ;;  %v1833_v10 = vld [vmem:[#allocation3 + $0x48] sm:$0xff]  ;;  %v539_v11 = vld [vmem:[%s1786_s21] sm:$0x3] }
  0x23   : > { %558 = vmatpush.msra.mxu2 %v1822_v7  ;;  %v1841_v13 = vld [vmem:[#allocation3 + $0x38] sm:$0xff]  ;;  %v1847_v14 = vld [vmem:[%s2106_s3 + $0x8] sm:$0xff]  ;;  %v1442_v18 = vld [vmem:[%s1791_s25 + $0x6] sm:$0x3] }
  0x24   : > { %509 = vmatpush.msra.mxu0 %v1815_v5  ;;  %529 = vmatpush.msra.mxu1 %v1817_v6  ;;  %v1851_v15 = vld [vmem:[#allocation3 + $0x20] sm:$0xff]  ;;  %v1859_v17 = vld [vmem:[#allocation3 + $0x28] sm:$0xff]  ;;  %v1865_v19 = vld [vmem:[#allocation3 + $0x10] sm:$0xff] }
  0x25   : > { %559 = vmatpush.msra.mxu2 %v1829_v8  ;;  %v1856_v16 = vld [vmem:[%s2106_s3] sm:$0xff]  ;;  %583 = vmatpush.msra.mxu3 %v1847_v14  ;;  %v1875_v22 = vld [vmem:[#allocation3 + $0x8] sm:$0xff] }
  0x26   : > { %510 = vmatpush.msra.mxu0 %v1831_v9  ;;  %530 = vmatpush.msra.mxu1 %v1833_v10  ;;  %v1867_v20 = vld [vmem:[#allocation3 + $0x18] sm:$0xff]  ;;  %v1873_v21 = vld [vmem:[#allocation3] sm:$0xff] }
  0x27   : > { %1441 = vmatmul.msk.f32.vlgmr.msra.gmra.mxu2 %vm540_vm1, %v539_v11  ;;  %584 = vmatpush.msra.mxu3 %v1856_v16  ;;  %v1881_v23 = vld [vmem:[#allocation2] sm:$0x3]  ;;  %v488_v24 = vld [vmem:[#allocation7] sm:$0x3]  ;;  %v1945_v50 = vld [vmem:[#allocation5] ss:$0 sm:$0xff] }
  0x28   : > { %511 = vmatpush.msra.mxu0 %v1839_v12  ;;  %531 = vmatpush.msra.mxu1 %v1841_v13  ;;  %v1927_v25 = vperm.slane %v488_v24, 0  ;;  %v1929_v26 = vperm.slane %v488_v24, 1  ;;  %v1942_v31 = vld [vmem:[%s2108_s5] ss:$0 sm:$0xff] }
  0x29   : > { %704 = vmatpush.msrb.mxu2 %v1805_v1  ;;  %1443 = vmatmul.msk.f32.vlgmr.msra.gmra.mxu3 %vm540_vm1, %v1442_v18 }
  0x2a   : > { %512 = vmatpush.msra.mxu0 %v1851_v15  ;;  %532 = vmatpush.msra.mxu1 %v1859_v17 }
  0x2b   : > { %705 = vmatpush.msrb.mxu2 %v1809_v3  ;;  %724 = vmatpush.msrb.mxu3 %v1807_v2 }
  0x2c   : > { %513 = vmatpush.msra.mxu0 %v1865_v19  ;;  %533 = vmatpush.msra.mxu1 %v1867_v20 }
  0x2d   : > { %706 = vmatpush.msrb.mxu2 %v1815_v5  ;;  %725 = vmatpush.msrb.mxu3 %v1813_v4 }
  0x2e   : > { %514 = vmatpush.msra.mxu0 %v1873_v21  ;;  %534 = vmatpush.msra.mxu1 %v1875_v22 }
  0x2f   : > { %1439 = vmatmul.msk.f32.vlgmr.msra.gmra.mxu0 %vm495_vm2, %v1881_v23  ;;  %1440 = vmatmul.msk.f32.vlgmr.msra.gmra.mxu1 %vm495_vm2, %v1881_v23 }
  0x30   : > { %707 = vmatpush.msrb.mxu2 %v1831_v9  ;;  %755 = vmatpush.msrb.mxu0 %v1822_v7 }
  0x31   : > { %780 = vmatpush.msrb.mxu1 %v1847_v14  ;;  %726 = vmatpush.msrb.mxu3 %v1817_v6 }
  0x32   : > { %708 = vmatpush.msrb.mxu2 %v1839_v12  ;;  %756 = vmatpush.msrb.mxu0 %v1829_v8 }
  0x33   : > { %781 = vmatpush.msrb.mxu1 %v1856_v16  ;;  %727 = vmatpush.msrb.mxu3 %v1833_v10 }
  0x34   : > { %709 = vmatpush.msrb.mxu2 %v1851_v15  ;;  %950 = vmatpush.msra.mxu0 %v1822_v7 }
  0x35   : > { %975 = vmatpush.msra.mxu1 %v1847_v14  ;;  %728 = vmatpush.msrb.mxu3 %v1841_v13 }
  0x36   : > { %710 = vmatpush.msrb.mxu2 %v1865_v19  ;;  %951 = vmatpush.msra.mxu0 %v1829_v8 }
  0x37   : > { %976 = vmatpush.msra.mxu1 %v1856_v16  ;;  %729 = vmatpush.msrb.mxu3 %v1859_v17 }
  0x38   : > { %711 = vmatpush.msrb.mxu2 %v1873_v21 }
  0x39   : > { %730 = vmatpush.msrb.mxu3 %v1867_v20 }
  0x3a   : > { %899 = vmatpush.msra.mxu2 %v1805_v1 }
  0x3b   : > { %731 = vmatpush.msrb.mxu3 %v1875_v22 }
  0x3c   : > { %900 = vmatpush.msra.mxu2 %v1809_v3 }
  0x3d   : > { %919 = vmatpush.msra.mxu3 %v1807_v2 }
  0x3e   : > { %901 = vmatpush.msra.mxu2 %v1815_v5 }
  0x3f   : > { %920 = vmatpush.msra.mxu3 %v1813_v4 }
  0x40   : > { %902 = vmatpush.msra.mxu2 %v1831_v9 }
  0x41   : > { %921 = vmatpush.msra.mxu3 %v1817_v6 }
  0x42   : > { %903 = vmatpush.msra.mxu2 %v1839_v12 }
  0x43   : > { %922 = vmatpush.msra.mxu3 %v1833_v10 }
  0x44   : > { %904 = vmatpush.msra.mxu2 %v1851_v15 }
  0x45   : > { %923 = vmatpush.msra.mxu3 %v1841_v13 }
  0x46   : > { %905 = vmatpush.msra.mxu2 %v1865_v19 }
  0x47   : > { %924 = vmatpush.msra.mxu3 %v1859_v17 }
  0x48   : > { %906 = vmatpush.msra.mxu2 %v1873_v21 }
  0x49   : > { %925 = vmatpush.msra.mxu3 %v1867_v20 }
  0x4b   : > { %926 = vmatpush.msra.mxu3 %v1875_v22 }
  0xaa   : > { %v561_v32 = vpop.f32.mrf.mxu2 }
  0xab   : > { %v562_v33 = vadd.f32 %v1942_v31, %v561_v32 }
  0xac   : > { %v516_v27 = vpop.f32.mrf.mxu0  ;;  %v536_v28 = vpop.f32.mrf.mxu1 }
  0xad   : > { %v517_v29 = vadd.f32 %v516_v27, %v1927_v25  ;;  %v537_v30 = vadd.f32 %v536_v28, %v1929_v26  ;;  %v586_v51 = vpop.f32.mrf.mxu3 }
  0xae   : > { %v587_v52 = vadd.f32 %v1945_v50, %v586_v51 }
  0xaf   : > { %634 = vrot.lane.b32.xlu1 %v537_v30, %s1684_s22  ;;  %610 = vrot.lane.b32.xlu0 %v517_v29, %s1685_s23  ;;  %v589_v34 = vadd.f32 %v562_v33, %v517_v29 }
  0xb1   : > { %v1444_v35 = vmul.f32 -1.442695, %v589_v34 }
  0xb3   : > { %1524 = vpow2.f32 %v1444_v35 }
  0xb7   : > { %659 = vrot.lane.b32.xlu1 %v537_v30, %s1686_s24  ;;  %632 = vrot.lane.b32.xlu0 %v517_v29, %s1684_s22 }
  0xb9   : > { %v1525_v36 = vpop.eup %1524 }
  0xba   : > { %v593_v37 = vadd.f32 1.0, %v1525_v36 }
  0xbc   : > { %1526 = vrcp.f32 %v593_v37  ;;  %v605_v43 = vand.u32 2147483648, %v593_v37  ;;  %vm599_vm4 = vweird.f32 %v593_v37  ;;  %v603_v44 = vand.u32 2147483647, %v593_v37 }
  0xbe   : > { %v606_v46 = vor.u32 1.1754944e-38, %v605_v43  ;;  %vm604_vm6 = vcmp.eq.f32.partialorder %v603_v44, 8.507059e+37 }
  0xbf   : > { %626 = vrot.lane.b32.xlu1 %v1881_v23, %s1684_s22 }
  0xc2   : > { %v1527_v38 = vpop.eup %1526 }
  0xc3   : > { %v595_v39 = vmul.f32 %v1527_v38, %v593_v37  ;;  %vm600_vm3 = vweird.f32 %v1527_v38 }
  0xc4   : > { %vm601_vm5 = vmor %vm599_vm4, %vm600_vm3 }
  0xc5   : > { %v596_v40 = vsub.f32 1.0, %v595_v39 }
  0xc7   : > { %v597_v41 = vmul.f32 %v1527_v38, %v596_v40 }
  0xc9   : > { %v598_v42 = vadd.f32 %v1527_v38, %v597_v41 }
  0xcb   : > { %v602_v45 = vsel %vm601_vm5, %v1527_v38, %v598_v42 }
  0xcc   : > { %v607_v48 = vsel %vm604_vm6, %v606_v46, %v602_v45  ;;  %v1451_v45 = vld [vmem:[%s1791_s25 + $0x4] sm:$0x3] }
  0xcd   : > { %v620_v40 = vsub.f32 1.0, %v607_v48  ;;  %1452 = vmatmul.msk.f32.vlgmr.msrb.gmra.mxu1 %vm540_vm1, %v1451_v45 }
  0xce   : > { %1114 = vmatpush.msrb.mxu1 %v1807_v2 }
  0xd0   : > { %1115 = vmatpush.msrb.mxu1 %v1813_v4 }
  0xd2   : > { %1116 = vmatpush.msrb.mxu1 %v1817_v6 }
  0xd4   : > { %1117 = vmatpush.msrb.mxu1 %v1833_v10 }
  0xd6   : > { %1118 = vmatpush.msrb.mxu1 %v1841_v13 }
  0xd8   : > { %1119 = vmatpush.msrb.mxu1 %v1859_v17 }
  0xda   : > { %1120 = vmatpush.msrb.mxu1 %v1867_v20 }
  0xdc   : > { %1121 = vmatpush.msrb.mxu1 %v1875_v22 }
 0x121   : > { %v611_v47 = vpop.permute.xlu0 %610  ;;  %v635_v53 = vpop.permute.xlu1 %634 }
 0x122   : > { %v613_v49 = vmul.f32 %v611_v47, %v607_v48 }
 0x124   : > { %615 = vrot.lane.b32.xlu2 %v613_v49, %s1685_s23 }
 0x129   : > { %v633_v54 = vpop.permute.xlu0 %632  ;;  %v660_v28 = vpop.permute.xlu1 %659 }
 0x12a   : > { %v637_v55 = vsel %vm636_vm7, %v633_v54, %v635_v53 }
 0x12b   : > { %v639_v56 = vadd.f32 %v637_v55, %v587_v52 }
 0x12d   : > { %v1445_v57 = vmul.f32 -1.442695, %v639_v56 }
 0x12f   : > { %1528 = vpow2.f32 %v1445_v57 }
 0x131   : > { %v627_v39 = vpop.permute.xlu1 %626 }
 0x132   : > { %v629_v42 = vmul.f32 %v627_v39, %v607_v48 }
 0x135   : > { %v1529_v58 = vpop.eup %1528 }
 0x136   : > { %v643_v59 = vadd.f32 1.0, %v1529_v58 }
 0x138   : > { %1530 = vrcp.f32 %v643_v59  ;;  %v655_v63 = vand.u32 2147483648, %v643_v59  ;;  %v653_v11 = vand.u32 2147483647, %v643_v59  ;;  %vm649_vm9 = vweird.f32 %v643_v59 }
 0x13a   : > { %v656_v24 = vor.u32 1.1754944e-38, %v655_v63  ;;  %vm654_vm11 = vcmp.eq.f32.partialorder %v653_v11, 8.507059e+37 }
 0x13e   : > { %v1531_v60 = vpop.eup %1530 }
 0x13f   : > { %v645_v61 = vmul.f32 %v1531_v60, %v643_v59  ;;  %vm650_vm8 = vweird.f32 %v1531_v60 }
 0x140   : > { %vm651_vm10 = vmor %vm649_vm9, %vm650_vm8 }
 0x141   : > { %v646_v62 = vsub.f32 1.0, %v645_v61 }
 0x143   : > { %v647_v0 = vmul.f32 %v1531_v60, %v646_v62 }
 0x145   : > { %v648_v18 = vadd.f32 %v1531_v60, %v647_v0 }
 0x147   : > { %v652_v27 = vsel %vm651_vm10, %v1531_v60, %v648_v18 }
 0x148   : > { %v657_v29 = vsel %vm654_vm11, %v656_v24, %v652_v27 }
 0x149   : > { %v662_v30 = vmul.f32 %v660_v28, %v657_v29  ;;  %v669_v2 = vsub.f32 1.0, %v657_v29  ;;  %v675_v4 = vmul.f32 %v657_v29, %v1881_v23 }
 0x14a   : > { %v783_v48 = vpop.f32.mrf.mxu1 }
 0x14b   : > { %664 = vrot.lane.b32.xlu2 %v662_v30, %s1685_s23 }
 0x17e   : > { %v616_v32 = vpop.permute.xlu2 %615 }
 0x17f   : > { %v618_v34 = vadd.f32 %v616_v32, %v562_v33  ;;  %v1449_v33 = vld [vmem:[%s1786_s21 + $0x2] sm:$0x3] }
 0x180   : > { %1450 = vmatmul.msk.f32.vlgmr.msrb.gmra.mxu0 %vm540_vm1, %v1449_v33 }
 0x181   : > { %1532 = vtanh.f32 %v618_v34  ;;  %1094 = vmatpush.msrb.mxu0 %v1805_v1 }
 0x183   : > { %1095 = vmatpush.msrb.mxu0 %v1809_v3 }
 0x185   : > { %1096 = vmatpush.msrb.mxu0 %v1815_v5 }
 0x187   : > { %v1533_v35 = vpop.eup %1532  ;;  %1097 = vmatpush.msrb.mxu0 %v1831_v9 }
 0x188   : > { %622 = vrot.lane.b32.xlu0 %v1533_v35, %s1686_s24 }
 0x189   : > { %1098 = vmatpush.msrb.mxu0 %v1839_v12 }
 0x18b   : > { %1099 = vmatpush.msrb.mxu0 %v1851_v15 }
 0x18d   : > { %1100 = vmatpush.msrb.mxu0 %v1865_v19 }
 0x18f   : > { %1101 = vmatpush.msrb.mxu0 %v1873_v21 }
 0x1a5   : > { %v665_v36 = vpop.permute.xlu2 %664 }
 0x1a6   : > { %v667_v37 = vadd.f32 %v665_v36, %v587_v52  ;;  %v784_v52 = vadd.f32 %v1945_v50, %v783_v48 }
 0x1a8   : > { %1534 = vtanh.f32 %v667_v37 }
 0x1ae   : > { %v1535_v38 = vpop.eup %1534 }
 0x1af   : > { %671 = vrot.lane.b32.xlu2 %v1535_v38, %s1686_s24 }
 0x1fa   : > { %v623_v41 = vpop.permute.xlu0 %622 }
 0x1fb   : > { %v625_v43 = vmul.f32 %v623_v41, %v620_v40 }
 0x1fd   : > { %v630_v44 = vadd.f32 %v629_v42, %v625_v43 }
 0x1ff   : > { %678 = vrot.lane.b32.xlu0 %v630_v44, %s1686_s24 }
 0x209   : > { %v672_v1 = vpop.permute.xlu2 %671 }
 0x20a   : > { %v674_v3 = vmul.f32 %v672_v1, %v669_v2 }
 0x20c   : > { %v1975_v5 = vadd.f32 %v675_v4, %v674_v3  ;;  %v1459_v4 = vld [vmem:[%s1786_s21 + $0x4] sm:$0x3] }
 0x20d   : > { %1460 = vmatmul.msk.f32.vlgmr.msra.gmra.mxu0 %vm540_vm1, %v1459_v4 }
 0x271   : > { %v679_v6 = vpop.permute.xlu0 %678 }
 0x272   : > { %v681_v9 = vsel %vm636_vm7, %v679_v6, %v1975_v5  ;;  %685 = vst.msk [vmem:[%s1796_s28] sm:$0x3] %vm684_vm12, %v679_v6  ;;  %v1461_v6 = vld [vmem:[%s1791_s25 + $0x2] sm:$0x3] }
 0x273   : > { %683 = vst.msk [vmem:[#allocation2] sm:$0x3] %vm682_vm13, %v681_v9  ;;  %1462 = vmatmul.msk.f32.vlgmr.msra.gmra.mxu1 %vm540_vm1, %v1461_v6 }
 0x27a   : > { %v1982_v10 = vld [vmem:[#allocation2] sm:$0x3] }
 0x27b   : > { %1447 = vmatmul.msk.f32.vlgmr.msrb.gmra.mxu2 %vm495_vm2, %v1982_v10  ;;  %1448 = vmatmul.msk.f32.vlgmr.msrb.gmra.mxu3 %vm495_vm2, %v1982_v10 }
 0x27c   : > { %1145 = vmatpush.msrb.mxu2 %v1822_v7  ;;  %1169 = vmatpush.msrb.mxu3 %v1847_v14  ;;  %v758_v7 = vpop.f32.mrf.mxu0 }
 0x27d   : > { %v759_v14 = vadd.f32 %v1942_v31, %v758_v7 }
 0x27e   : > { %1146 = vmatpush.msrb.mxu2 %v1829_v8  ;;  %1170 = vmatpush.msrb.mxu3 %v1856_v16 }
 0x2fe   : > { %v713_v12 = vpop.f32.mrf.mxu2  ;;  %v733_v13 = vpop.f32.mrf.mxu3 }
 0x2ff   : > { %v714_v15 = vadd.f32 %v713_v12, %v1927_v25  ;;  %v734_v17 = vadd.f32 %v733_v13, %v1929_v26 }
 0x301   : > { %831 = vrot.lane.b32.xlu0 %v734_v17, %s1684_s22  ;;  %829 = vrot.lane.b32.xlu2 %v714_v15, %s1684_s22  ;;  %v786_v8 = vadd.f32 %v759_v14, %v714_v15 }
 0x302   : > { %807 = vrot.lane.b32.xlu1 %v714_v15, %s1685_s23 }
 0x303   : > { %v1453_v19 = vmul.f32 -1.442695, %v786_v8 }
 0x305   : > { %1536 = vpow2.f32 %v1453_v19 }
 0x30a   : > { %855 = vrot.lane.b32.xlu1 %v734_v17, %s1686_s24 }
 0x30b   : > { %v1537_v16 = vpop.eup %1536 }
 0x30c   : > { %v790_v20 = vadd.f32 1.0, %v1537_v16 }
 0x30e   : > { %1538 = vrcp.f32 %v790_v20  ;;  %v802_v49 = vand.u32 2147483648, %v790_v20  ;;  %vm796_vm15 = vweird.f32 %v790_v20  ;;  %v800_v51 = vand.u32 2147483647, %v790_v20 }
 0x310   : > { %v803_v54 = vor.u32 1.1754944e-38, %v802_v49  ;;  %vm801_vm3 = vcmp.eq.f32.partialorder %v800_v51, 8.507059e+37 }
 0x314   : > { %v1539_v21 = vpop.eup %1538 }
 0x315   : > { %v792_v22 = vmul.f32 %v1539_v21, %v790_v20  ;;  %vm797_vm14 = vweird.f32 %v1539_v21 }
 0x316   : > { %vm798_vm0 = vmor %vm796_vm15, %vm797_vm14 }
 0x317   : > { %v793_v23 = vsub.f32 1.0, %v792_v22 }
 0x319   : > { %v794_v46 = vmul.f32 %v1539_v21, %v793_v23 }
 0x31b   : > { %v795_v47 = vadd.f32 %v1539_v21, %v794_v46 }
 0x31d   : > { %v799_v53 = vsel %vm798_vm0, %v1539_v21, %v795_v47  ;;  %v953_v21 = vpop.f32.mrf.mxu0 }
 0x31e   : > { %v804_v59 = vsel %vm801_vm3, %v803_v54, %v799_v53  ;;  %v954_v22 = vadd.f32 %v1942_v31, %v953_v21 }
 0x31f   : > { %v817_v33 = vsub.f32 1.0, %v804_v59 }
 0x35b   : > { %v830_v55 = vpop.permute.xlu2 %829 }
 0x373   : > { %v832_v56 = vpop.permute.xlu0 %831 }
 0x374   : > { %v833_v57 = vsel %vm636_vm7, %v830_v55, %v832_v56  ;;  %v808_v58 = vpop.permute.xlu1 %807 }
 0x375   : > { %v835_v60 = vadd.f32 %v833_v57, %v784_v52  ;;  %v810_v61 = vmul.f32 %v808_v58, %v804_v59 }
 0x377   : > { %v1454_v62 = vmul.f32 -1.442695, %v835_v60  ;;  %812 = vrot.lane.b32.xlu2 %v810_v61, %s1685_s23 }
 0x379   : > { %1540 = vpow2.f32 %v1454_v62  ;;  %v978_v62 = vpop.f32.mrf.mxu1 }
 0x37c   : > { %v856_v36 = vpop.permute.xlu1 %855 }
 0x37f   : > { %v1541_v63 = vpop.eup %1540  ;;  %823 = vrot.lane.b32.xlu2 %v1982_v10, %s1684_s22 }
 0x380   : > { %v839_v0 = vadd.f32 1.0, %v1541_v63  ;;  %v979_v63 = vadd.f32 %v1945_v50, %v978_v62 }
 0x382   : > { %1542 = vrcp.f32 %v839_v0  ;;  %v851_v27 = vand.u32 2147483648, %v839_v0  ;;  %v849_v29 = vand.u32 2147483647, %v839_v0  ;;  %vm845_vm5 = vweird.f32 %v839_v0 }
 0x384   : > { %v852_v32 = vor.u32 1.1754944e-38, %v851_v27  ;;  %vm850_vm8 = vcmp.eq.f32.partialorder %v849_v29, 8.507059e+37 }
 0x388   : > { %v1543_v11 = vpop.eup %1542 }
 0x389   : > { %v841_v18 = vmul.f32 %v1543_v11, %v839_v0  ;;  %vm846_vm4 = vweird.f32 %v1543_v11 }
 0x38a   : > { %vm847_vm6 = vmor %vm845_vm5, %vm846_vm4 }
 0x38b   : > { %v842_v24 = vsub.f32 1.0, %v841_v18 }
 0x38d   : > { %v843_v28 = vmul.f32 %v1543_v11, %v842_v24 }
 0x38f   : > { %v844_v30 = vadd.f32 %v1543_v11, %v843_v28 }
 0x391   : > { %v848_v34 = vsel %vm847_vm6, %v1543_v11, %v844_v30 }
 0x392   : > { %v853_v35 = vsel %vm850_vm8, %v852_v32, %v848_v34 }
 0x393   : > { %v858_v37 = vmul.f32 %v856_v36, %v853_v35  ;;  %v865_v12 = vsub.f32 1.0, %v853_v35  ;;  %v871_v15 = vmul.f32 %v853_v35, %v1982_v10 }
 0x395   : > { %860 = vrot.lane.b32.xlu0 %v858_v37, %s1685_s23 }
 0x3d1   : > { %v813_v38 = vpop.permute.xlu2 %812 }
 0x3d2   : > { %v815_v39 = vadd.f32 %v813_v38, %v759_v14 }
 0x3d4   : > { %1544 = vtanh.f32 %v815_v39 }
 0x3d9   : > { %v824_v44 = vpop.permute.xlu2 %823 }
 0x3da   : > { %v1545_v40 = vpop.eup %1544  ;;  %v826_v1 = vmul.f32 %v824_v44, %v804_v59 }
 0x3db   : > { %819 = vrot.lane.b32.xlu1 %v1545_v40, %s1686_s24 }
 0x407   : > { %v861_v41 = vpop.permute.xlu0 %860 }
 0x408   : > { %v863_v42 = vadd.f32 %v861_v41, %v784_v52 }
 0x40a   : > { %1546 = vtanh.f32 %v863_v42 }
 0x410   : > { %v1547_v43 = vpop.eup %1546 }
 0x411   : > { %867 = vrot.lane.b32.xlu0 %v1547_v43, %s1686_s24 }
 0x44d   : > { %v820_v45 = vpop.permute.xlu1 %819 }
 0x44e   : > { %v822_v2 = vmul.f32 %v820_v45, %v817_v33 }
 0x450   : > { %v827_v3 = vadd.f32 %v826_v1, %v822_v2 }
 0x452   : > { %874 = vrot.lane.b32.xlu1 %v827_v3, %s1686_s24 }
 0x483   : > { %v868_v9 = vpop.permute.xlu0 %867 }
 0x484   : > { %v870_v13 = vmul.f32 %v868_v9, %v865_v12 }
 0x486   : > { %v2013_v17 = vadd.f32 %v871_v15, %v870_v13 }
 0x4c4   : > { %v875_v7 = vpop.permute.xlu1 %874 }
 0x4c5   : > { %v877_v14 = vsel %vm636_vm7, %v875_v7, %v2013_v17  ;;  %1455 = vst.msk [vmem:[%s1796_s28 + $0x2] sm:$0x3] %vm684_vm12, %v875_v7  ;;  %v1469_v7 = vld [vmem:[%s1786_s21 + $0x6] sm:$0x3] }
 0x4c6   : > { %878 = vst.msk [vmem:[#allocation2] sm:$0x3] %vm682_vm13, %v877_v14  ;;  %v1151_v14 = vld [vmem:[%s1791_s25] sm:$0x3] }
 0x4cd   : > { %v2020_v8 = vld [vmem:[#allocation2] sm:$0x3] }
 0x4ce   : > { %1457 = vmatmul.msk.f32.vlgmr.msra.gmra.mxu2 %vm495_vm2, %v2020_v8  ;;  %1458 = vmatmul.msk.f32.vlgmr.msra.gmra.mxu3 %vm495_vm2, %v2020_v8 }
 0x4d6   : > { %1470 = vmatmul.msk.f32.vlgmr.msrb.gmra.mxu2 %vm540_vm1, %v1469_v7  ;;  %1471 = vmatmul.msk.f32.vlgmr.msrb.gmra.mxu3 %vm540_vm1, %v1151_v14 }
 0x551   : > { %v908_v19 = vpop.f32.mrf.mxu2  ;;  %v928_v10 = vpop.f32.mrf.mxu3 }
 0x552   : > { %v909_v16 = vadd.f32 %v908_v19, %v1927_v25  ;;  %v929_v20 = vadd.f32 %v928_v10, %v1929_v26 }
 0x554   : > { %1026 = vrot.lane.b32.xlu1 %v929_v20, %s1684_s22  ;;  %1024 = vrot.lane.b32.xlu0 %v909_v16, %s1684_s22  ;;  %v981_v23 = vadd.f32 %v954_v22, %v909_v16 }
 0x555   : > { %1002 = vrot.lane.b32.xlu2 %v909_v16, %s1685_s23 }
 0x556   : > { %v1463_v46 = vmul.f32 -1.442695, %v981_v23 }
 0x558   : > { %1548 = vpow2.f32 %v1463_v46 }
 0x55d   : > { %1050 = vrot.lane.b32.xlu2 %v929_v20, %s1686_s24 }
 0x55e   : > { %v1549_v47 = vpop.eup %1548 }
 0x55f   : > { %v985_v48 = vadd.f32 1.0, %v1549_v47 }
 0x561   : > { %1550 = vrcp.f32 %v985_v48  ;;  %v997_v55 = vand.u32 2147483648, %v985_v48  ;;  %vm991_vm10 = vweird.f32 %v985_v48  ;;  %v995_v56 = vand.u32 2147483647, %v985_v48 }
 0x563   : > { %v998_v58 = vor.u32 1.1754944e-38, %v997_v55  ;;  %vm996_vm14 = vcmp.eq.f32.partialorder %v995_v56, 8.507059e+37 }
 0x567   : > { %v1551_v49 = vpop.eup %1550 }
 0x568   : > { %v987_v51 = vmul.f32 %v1551_v49, %v985_v48  ;;  %vm992_vm9 = vweird.f32 %v1551_v49 }
 0x569   : > { %vm993_vm11 = vmor %vm991_vm10, %vm992_vm9 }
 0x56a   : > { %v988_v52 = vsub.f32 1.0, %v987_v51  ;;  %v1148_v51 = vpop.f32.mrf.mxu2 }
 0x56c   : > { %v989_v53 = vmul.f32 %v1551_v49, %v988_v52  ;;  %v1149_v52 = vadd.f32 %v1942_v31, %v1148_v51 }
 0x56e   : > { %v990_v54 = vadd.f32 %v1551_v49, %v989_v53 }
 0x570   : > { %v994_v57 = vsel %vm993_vm11, %v1551_v49, %v990_v54 }
 0x571   : > { %v999_v60 = vsel %vm996_vm14, %v998_v58, %v994_v57 }
 0x572   : > { %v1012_v6 = vsub.f32 1.0, %v999_v60 }
 0x5af   : > { %v1003_v59 = vpop.permute.xlu2 %1002 }
 0x5b0   : > { %v1005_v61 = vmul.f32 %v1003_v59, %v999_v60 }
 0x5b2   : > { %1007 = vrot.lane.b32.xlu0 %v1005_v61, %s1685_s23 }
 0x5b7   : > { %v1051_v41 = vpop.permute.xlu2 %1050 }
 0x5ba   : > { %1018 = vrot.lane.b32.xlu0 %v2020_v8, %s1684_s22 }
 0x5c6   : > { %v1027_v0 = vpop.permute.xlu1 %1026  ;;  %v1025_v11 = vpop.permute.xlu0 %1024 }
 0x5c7   : > { %v1028_v18 = vsel %vm636_vm7, %v1025_v11, %v1027_v0 }
 0x5c8   : > { %v1030_v24 = vadd.f32 %v1028_v18, %v979_v63  ;;  %v1172_v18 = vpop.f32.mrf.mxu3 }
 0x5ca   : > { %v1464_v27 = vmul.f32 -1.442695, %v1030_v24  ;;  %v1173_v24 = vadd.f32 %v1945_v50, %v1172_v18 }
 0x5cc   : > { %1552 = vpow2.f32 %v1464_v27 }
 0x5d2   : > { %v1553_v28 = vpop.eup %1552 }
 0x5d3   : > { %v1034_v29 = vadd.f32 1.0, %v1553_v28 }
 0x5d5   : > { %1554 = vrcp.f32 %v1034_v29  ;;  %v1046_v35 = vand.u32 2147483648, %v1034_v29  ;;  %v1044_v37 = vand.u32 2147483647, %v1034_v29  ;;  %vm1040_vm0 = vweird.f32 %v1034_v29 }
 0x5d7   : > { %v1047_v39 = vor.u32 1.1754944e-38, %v1046_v35  ;;  %vm1045_vm4 = vcmp.eq.f32.partialorder %v1044_v37, 8.507059e+37 }
 0x5db   : > { %v1555_v30 = vpop.eup %1554 }
 0x5dc   : > { %v1036_v32 = vmul.f32 %v1555_v30, %v1034_v29  ;;  %vm1041_vm15 = vweird.f32 %v1555_v30 }
 0x5dd   : > { %vm1042_vm3 = vmor %vm1040_vm0, %vm1041_vm15 }
 0x5de   : > { %v1037_v34 = vsub.f32 1.0, %v1036_v32 }
 0x5e0   : > { %v1038_v36 = vmul.f32 %v1555_v30, %v1037_v34 }
 0x5e2   : > { %v1039_v38 = vadd.f32 %v1555_v30, %v1038_v36 }
 0x5e4   : > { %v1043_v40 = vsel %vm1042_vm3, %v1555_v30, %v1039_v38 }
 0x5e5   : > { %v1048_v42 = vsel %vm1045_vm4, %v1047_v39, %v1043_v40 }
 0x5e6   : > { %v1053_v43 = vmul.f32 %v1051_v41, %v1048_v42  ;;  %v1060_v10 = vsub.f32 1.0, %v1048_v42  ;;  %v1066_v20 = vmul.f32 %v1048_v42, %v2020_v8 }
 0x5e8   : > { %1055 = vrot.lane.b32.xlu1 %v1053_v43, %s1685_s23 }
 0x624   : > { %v1008_v44 = vpop.permute.xlu0 %1007 }
 0x625   : > { %v1010_v33 = vadd.f32 %v1008_v44, %v954_v22 }
 0x627   : > { %1556 = vtanh.f32 %v1010_v33 }
 0x62c   : > { %v1019_v4 = vpop.permute.xlu0 %1018 }
 0x62d   : > { %v1557_v45 = vpop.eup %1556  ;;  %v1021_v12 = vmul.f32 %v1019_v4, %v999_v60 }
 0x62e   : > { %1014 = vrot.lane.b32.xlu2 %v1557_v45, %s1686_s24 }
 0x65a   : > { %v1056_v1 = vpop.permute.xlu1 %1055 }
 0x65b   : > { %v1058_v2 = vadd.f32 %v1056_v1, %v979_v63 }
 0x65d   : > { %1558 = vtanh.f32 %v1058_v2 }
 0x663   : > { %v1559_v3 = vpop.eup %1558 }
 0x664   : > { %1062 = vrot.lane.b32.xlu1 %v1559_v3, %s1686_s24 }
 0x688   : > { %v1015_v9 = vpop.permute.xlu2 %1014 }
 0x689   : > { %v1017_v13 = vmul.f32 %v1015_v9, %v1012_v6 }
 0x68b   : > { %v1022_v15 = vadd.f32 %v1021_v12, %v1017_v13 }
 0x68d   : > { %1069 = vrot.lane.b32.xlu2 %v1022_v15, %s1686_s24 }
 0x6d6   : > { %v1063_v19 = vpop.permute.xlu1 %1062 }
 0x6d7   : > { %v1065_v16 = vmul.f32 %v1063_v19, %v1060_v10 }
 0x6d9   : > { %v2047_v21 = vadd.f32 %v1066_v20, %v1065_v16 }
 0x6e7   : > { %v1070_v22 = vpop.permute.xlu2 %1069 }
 0x6e8   : > { %v1072_v23 = vsel %vm636_vm7, %v1070_v22, %v2047_v21  ;;  %1465 = vst.msk [vmem:[%s1796_s28 + $0x4] sm:$0x3] %vm684_vm12, %v1070_v22 }
 0x6e9   : > { %1073 = vst.msk [vmem:[#allocation2] sm:$0x3] %vm682_vm13, %v1072_v23 }
 0x6f0   : > { %v2054_v46 = vld [vmem:[#allocation2] sm:$0x3] }
 0x6f1   : > { %1467 = vmatmul.msk.f32.vlgmr.msrb.gmra.mxu0 %vm495_vm2, %v2054_v46  ;;  %1468 = vmatmul.msk.f32.vlgmr.msrb.gmra.mxu1 %vm495_vm2, %v2054_v46 }
 0x76e   : > { %v1103_v47 = vpop.f32.mrf.mxu0  ;;  %v1123_v8 = vpop.f32.mrf.mxu1 }
 0x76f   : > { %v1104_v48 = vadd.f32 %v1103_v47, %v1927_v25  ;;  %v1124_v49 = vadd.f32 %v1123_v8, %v1929_v26 }
 0x771   : > { %1220 = vrot.lane.b32.xlu1 %v1124_v49, %s1684_s22  ;;  %1196 = vrot.lane.b32.xlu2 %v1104_v48, %s1685_s23  ;;  %v1175_v53 = vadd.f32 %v1149_v52, %v1104_v48 }
 0x772   : > { %1218 = vrot.lane.b32.xlu0 %v1104_v48, %s1684_s22 }
 0x773   : > { %v1472_v54 = vmul.f32 -1.442695, %v1175_v53 }
 0x775   : > { %1560 = vpow2.f32 %v1472_v54 }
 0x77a   : > { %1244 = vrot.lane.b32.xlu0 %v1124_v49, %s1686_s24 }
 0x77b   : > { %v1561_v55 = vpop.eup %1560 }
 0x77c   : > { %v1179_v56 = vadd.f32 1.0, %v1561_v55 }
 0x77e   : > { %1562 = vrcp.f32 %v1179_v56  ;;  %v1191_v60 = vand.u32 2147483648, %v1179_v56  ;;  %vm1185_vm2 = vweird.f32 %v1179_v56  ;;  %v1189_v61 = vand.u32 2147483647, %v1179_v56 }
 0x780   : > { %v1192_v63 = vor.u32 1.1754944e-38, %v1191_v60  ;;  %vm1190_vm6 = vcmp.eq.f32.partialorder %v1189_v61, 8.507059e+37 }
 0x784   : > { %v1563_v25 = vpop.eup %1562 }
 0x785   : > { %v1181_v57 = vmul.f32 %v1563_v25, %v1179_v56  ;;  %vm1186_vm1 = vweird.f32 %v1563_v25 }
 0x786   : > { %vm1187_vm5 = vmor %vm1185_vm2, %vm1186_vm1 }
 0x787   : > { %v1182_v26 = vsub.f32 1.0, %v1181_v57 }
 0x789   : > { %v1183_v58 = vmul.f32 %v1563_v25, %v1182_v26 }
 0x78b   : > { %v1184_v59 = vadd.f32 %v1563_v25, %v1183_v58 }
 0x78d   : > { %v1188_v62 = vsel %vm1187_vm5, %v1563_v25, %v1184_v59 }
 0x78e   : > { %v1193_v0 = vsel %vm1190_vm6, %v1192_v63, %v1188_v62 }
 0x78f   : > { %v1206_v13 = vsub.f32 1.0, %v1193_v0 }
 0x7cb   : > { %v1197_v31 = vpop.permute.xlu2 %1196 }
 0x7cc   : > { %v1199_v11 = vmul.f32 %v1197_v31, %v1193_v0 }
 0x7ce   : > { %1201 = vrot.lane.b32.xlu1 %v1199_v11, %s1685_s23 }
 0x7d6   : > { %1212 = vrot.lane.b32.xlu1 %v2054_v46, %s1684_s22 }
 0x7de   : > { %687 = vrot.lane.b32.xlu1 %v1975_v5, %s1686_s24 }
 0x7e3   : > { %v1221_v27 = vpop.permute.xlu1 %1220 }
 0x7e4   : > { %v1219_v28 = vpop.permute.xlu0 %1218 }
 0x7e5   : > { %v1222_v29 = vsel %vm636_vm7, %v1219_v28, %v1221_v27 }
 0x7e6   : > { %v1224_v30 = vadd.f32 %v1222_v29, %v1173_v24 }
 0x7e8   : > { %v1473_v32 = vmul.f32 -1.442695, %v1224_v30 }
 0x7ea   : > { %1564 = vpow2.f32 %v1473_v32 }
 0x7ec   : > { %v1245_v44 = vpop.permute.xlu0 %1244 }
 0x7f0   : > { %v1565_v34 = vpop.eup %1564 }
 0x7f1   : > { %v1228_v35 = vadd.f32 1.0, %v1565_v34 }
 0x7f3   : > { %1566 = vrcp.f32 %v1228_v35  ;;  %v1240_v39 = vand.u32 2147483648, %v1228_v35  ;;  %v1238_v5 = vand.u32 2147483647, %v1228_v35  ;;  %vm1234_vm9 = vweird.f32 %v1228_v35 }
 0x7f5   : > { %v1241_v50 = vor.u32 1.1754944e-38, %v1240_v39  ;;  %vm1239_vm11 = vcmp.eq.f32.partialorder %v1238_v5, 8.507059e+37 }
 0x7f9   : > { %v1567_v36 = vpop.eup %1566 }
 0x7fa   : > { %v1230_v37 = vmul.f32 %v1567_v36, %v1228_v35  ;;  %vm1235_vm8 = vweird.f32 %v1567_v36 }
 0x7fb   : > { %vm1236_vm10 = vmor %vm1234_vm9, %vm1235_vm8 }
 0x7fc   : > { %v1231_v38 = vsub.f32 1.0, %v1230_v37 }
 0x7fe   : > { %v1232_v40 = vmul.f32 %v1567_v36, %v1231_v38 }
 0x800   : > { %v1233_v41 = vadd.f32 %v1567_v36, %v1232_v40 }
 0x802   : > { %v1237_v42 = vsel %vm1236_vm10, %v1567_v36, %v1233_v41 }
 0x803   : > { %v1242_v43 = vsel %vm1239_vm11, %v1241_v50, %v1237_v42 }
 0x804   : > { %v1247_v33 = vmul.f32 %v1245_v44, %v1242_v43  ;;  %v1254_v10 = vsub.f32 1.0, %v1242_v43  ;;  %v1260_v20 = vmul.f32 %v1242_v43, %v2054_v46 }
 0x806   : > { %1249 = vrot.lane.b32.xlu2 %v1247_v33, %s1685_s23 }
 0x840   : > { %v1202_v45 = vpop.permute.xlu1 %1201 }
 0x841   : > { %v1204_v1 = vadd.f32 %v1202_v45, %v1149_v52 }
 0x843   : > { %1568 = vtanh.f32 %v1204_v1 }
 0x848   : > { %v1213_v2 = vpop.permute.xlu1 %1212 }
 0x849   : > { %v1569_v3 = vpop.eup %1568  ;;  %v1215_v7 = vmul.f32 %v1213_v2, %v1193_v0 }
 0x84a   : > { %1208 = vrot.lane.b32.xlu0 %v1569_v3, %s1686_s24 }
 0x850   : > { %v688_v4 = vpop.permute.xlu1 %687 }
 0x851   : > { %1446 = vst.msk [vmem:[%s1801_s11 + $0x6] sm:$0x3] %vm684_vm12, %v688_v4 }
 0x860   : > { %v1250_v6 = vpop.permute.xlu2 %1249 }
 0x861   : > { %v1252_v9 = vadd.f32 %v1250_v6, %v1173_v24 }
 0x863   : > { %1570 = vtanh.f32 %v1252_v9 }
 0x869   : > { %v1571_v12 = vpop.eup %1570 }
 0x86a   : > { %1256 = vrot.lane.b32.xlu2 %v1571_v12, %s1686_s24 }
 0x872   : > { %882 = vrot.lane.b32.xlu2 %v2013_v17, %s1686_s24 }
 0x8bc   : > { %v1209_v15 = vpop.permute.xlu0 %1208 }
 0x8bd   : > { %v1211_v14 = vmul.f32 %v1209_v15, %v1206_v13 }
 0x8bf   : > { %v1216_v19 = vadd.f32 %v1215_v7, %v1211_v14 }
 0x8c1   : > { %1263 = vrot.lane.b32.xlu0 %v1216_v19, %s1686_s24 }
 0x8c4   : > { %v1257_v16 = vpop.permute.xlu2 %1256 }
 0x8c5   : > { %v1259_v22 = vmul.f32 %v1257_v16, %v1254_v10 }
 0x8c7   : > { %v1261_v23 = vadd.f32 %v1260_v20, %v1259_v22 }
 0x8c9   : > { %1271 = vrot.lane.b32.xlu1 %v1261_v23, %s1686_s24  ;;  %1077 = vrot.lane.b32.xlu0 %v2047_v21, %s1686_s24 }
 0x8cc   : > { %v883_v17 = vpop.permute.xlu2 %882 }
 0x8cd   : > { %1456 = vst.msk [vmem:[%s1801_s11 + $0x4] sm:$0x3] %vm684_vm12, %v883_v17 }
 0x933   : > { %v1264_v47 = vpop.permute.xlu0 %1263 }
 0x934   : > { %v1266_v8 = vsel %vm636_vm7, %v1264_v47, %v1261_v23  ;;  %1474 = vst.msk [vmem:[%s1796_s28 + $0x6] sm:$0x3] %vm684_vm12, %v1264_v47 }
 0x935   : > { %1267 = vst.msk [vmem:[#allocation2] sm:$0x3] %vm682_vm13, %v1266_v8 }
 0x93b   : > { %v1078_v48 = vpop.permute.xlu0 %1077  ;;  %v1272_v21 = vpop.permute.xlu1 %1271 }
 0x93c   : > { %v1275_v46 = vld [vmem:[#allocation2] sm:$0x3]  ;;  %1466 = vst.msk [vmem:[%s1801_s11 + $0x2] sm:$0x3] %vm684_vm12, %v1078_v48 }
 0x93d   : > { %1276 = vst.msk [vmem:[%s2113_s10] sm:$0x3] %vm682_vm13, %v1275_v46 }
 0x93e   : > { %1274 = vst.msk [vmem:[%s1801_s11] sm:$0x3] %vm684_vm12, %v1272_v21 }
 0x93f PF: > { %s23_s13 = sadd.s32 1, %s1676_s13  }
 0x940   : > { %p20_p9 = scmp.ge.s32.totalorder %s23_s13, 4  }
 0x942   :  { %22 = sbr.rel (!%p20_p9) target bundleno = 2 (0x2), region = 134 }
 0x947   :  { %1325 = vsyncpa [#allocation4], 1 }
 0x948   :  { %1327 = vsyncpa [#allocation4 + $0x1], 1 }
 0x949   :  { %1328 = vsyncpa [#allocation6], 1 }

// kernel: utterance_net_forward.3
= control target key start
LH: loop header
LB: loop body
LE: loop exit
PB: predicated region body
PF: predicated region fallthrough
CT: control target
= control target key end

     0   :  { %17 = vsyncpa [#allocation5], 0  ;;  %s2330_s0 = inlined_call_operand.vmem [shape: f32[8,2,32], index: 0, kind: input, shape index: {}, may-alias: {0,2}]   ;;  %s2331_s1 = inlined_call_operand.vmem [shape: f32[8,2,32], index: 1, kind: input, shape index: {}, may-alias: {1,3}]   ;;  %s2332_s2 = inlined_call_operand.vmem [shape: f32[8,2,32], index: 2, kind: input, shape index: {}, may-alias: {0,2}]   ;;  %s2333_s3 = inlined_call_operand.vmem [shape: f32[8,2,32], index: 3, kind: input, shape index: {}, may-alias: {1,3}]   ;;  %s2334_s4 = inlined_call_operand.hbm [shape: f32[64,96], index: 4, kind: input, shape index: {}]   ;;  %s2335_s5 = inlined_call_operand.hbm [shape: f32[64,96], index: 5, kind: input, shape index: {}]   ;;  %s2336_s6 = inlined_call_operand.hbm [shape: f32[64,192], index: 6, kind: input, shape index: {}]   ;;  %s2337_s7 = inlined_call_operand.vmem [shape: f32[1,96], index: 7, kind: input, shape index: {}]   ;;  %s2338_s8 = inlined_call_operand.vmem [shape: f32[1,96], index: 8, kind: input, shape index: {}]   ;;  %s2339_s9 = inlined_call_operand.vmem [shape: f32[1,192], index: 9, kind: input, shape index: {}]   ;;  %s2340_s10 = inlined_call_operand.hbm [shape: f32[2,64], index: 10, kind: output, shape index: {0}]   ;;  %s2341_s11 = inlined_call_operand.vmem [shape: f32[2,64], index: 11, kind: output, shape index: {1}]  }
   0x1   :  { %18 = vsyncpa [#allocation8], 0 }
   0x2   :  { %19 = vsyncpa [#allocation6], 0  ;;  %s1891_s17 = smov 0  }
   0x3 LB: > { %s1897_s18 = sadd.s32 4294967295, %s1816_s17   ;;  %p1506_p0 = scmp.ge.s32.totalorder %s1816_s17, 1  ;;  %s1816_s17 = sphi %s1891_s17, %s25_s17  }
   0x4   : > { %p306_p1 = scmp.lt.s32.totalorder %s1816_s17, 3  ;;  %p1507_p2 = scmp.ne.s32.totalorder %s1897_s18, 0 }
   0x5   : > { %p1591_p3 = scmp.eq.s32.totalorder %s1897_s18, 0  ;;  %s331_s21 = sshll.u32 %s2335_s5, 4  ;;  %s332_s21 = int_to_ptr.hbm [resolvable:$true] %s331_s21 }
   0x6   : > { %p1906_p4 = pnand %p1506_p0, %p306_p1  ;;  %s317_s25 = sshll.u32 %s2334_s4, 4  ;;  %s318_s25 = int_to_ptr.hbm [resolvable:$true] %s317_s25 }
   0x7   : > { %s1818_s26 = smov [#allocation7]   ;;  %s1819_s29 = smov [#allocation4]  }
   0x8   : > { %p1581_p5 = pneg %p1906_p4  ;;  %s333_s27 = sshll.u32 %s1818_s26, 4  ;;  %s334_s27 = int_to_ptr.vmem [resolvable:$true] %s333_s27 }
   0x9   : > { %s319_s30 = sshll.u32 %s1819_s29, 4  ;;  %s345_s14 = sshll.u32 %s2336_s6, 4  ;;  %s320_s30 = int_to_ptr.vmem [resolvable:$true] %s319_s30  ;;  %s346_s14 = int_to_ptr.hbm [resolvable:$true] %s345_s14 }
   0xa   : > { %p1917_p6 = pnand %p1591_p3, %p1581_p5  ;;  %s1820_s15 = smov 128  }
   0xb   : > { %s1821_s16 = smov 8   ;;  %s1822_s19 = smov [#allocation9]  }
   0xc   : > { %1587 = dma.hbm_to_vmem [thread:$0]  (!%p1917_p6), %s332_s21, 1024, %s334_s27, [#allocation8], %s1820_s15, %s1820_s15, %s1821_s16  }
   0xd   : > { %1584 = dma.hbm_to_vmem [thread:$0]  (!%p1917_p6), %s318_s25, 1024, %s320_s30, [#allocation5], %s1820_s15, %s1820_s15, %s1821_s16  }
   0xe   : > { %s347_s20 = sshll.u32 %s1822_s19, 4  ;;  %s1823_s23 = smov 256   ;;  %s348_s20 = int_to_ptr.vmem [resolvable:$true] %s347_s20 }
   0xf   : > { %s1824_s24 = smov 16   ;;  %412 = sbr.rel (%p1906_p4) target bundleno = 2281 (0x8e9), region = 60 }
  0x10   : > { %1590 = dma.hbm_to_vmem [thread:$0]  (!%p1917_p6), %s346_s14, 2048, %s348_s20, [#allocation8], %s1823_s23, %s1823_s23, %s1824_s24  }
  0x14   : > { %1803 = dma.done.wait (%p1591_p3), [#allocation5], 1024  }
  0x15   : > { %1805 = vsyncadd (%p1591_p3), [#allocation5], 4294966272 }
  0x16   : > { %1807 = dma.done.wait (%p1591_p3), [#allocation8], 3072  }
  0x17   : > { %1809 = vsyncadd (%p1591_p3), [#allocation8], 4294964224  ;;  %s1515_s21 = sshll.u32 %s1897_s18, 2  ;;  %s487_s25 = ssub.s32 1, %s1897_s18 }
  0x18   : > { %p476_p7 = scmp.lt.s32.totalorder %s1515_s21, 7  ;;  %s1519_s26 = sshll.u32 %s487_s25, 2 }
  0x19   : > { %p489_p8 = scmp.lt.s32.totalorder %s1519_s26, 7 }
  0x1a   : > { %s2345_s21 = smov (!%p476_p7, %s1515_s21), 7  ;;  %506 = sbr.rel (%p1507_p2) target bundleno = 34 (0x22), region = 76 }
  0x1b   : > { %s2347_s26 = smov (!%p489_p8, %s1519_s26), 7  ;;  %s1516_s22 = sshll.u32 %s2345_s21, 1 }
  0x1c   : > { %s1945_s29 = scalar_lea.vmem %s2330_s0, %s1516_s22  ;;  %s1950_s13 = scalar_lea.vmem %s2331_s1, %s1516_s22 }
  0x1d   : > { %s1520_s14 = sshll.u32 %s2347_s26, 1 }
  0x1e   : > { %s1955_s19 = scalar_lea.vmem %s2332_s2, %s1520_s14  ;;  %s1960_s24 = scalar_lea.vmem %s2333_s3, %s1520_s14 }
  0x1f   : > { %vm507_vm0 = vcmask 517120   ;;  %v1825_v0 = vmov 0.0   ;;  %v1826_v1 = vmov -inf  }
  0x20   : > { %508 = vst.msk [vmem:[#allocation2] sm:$0x3] %vm507_vm0, %v1825_v0 }
  0x21   : > { %509 = vst.msk [vmem:[#allocation3] sm:$0x3] %vm507_vm0, %v1826_v1 }
  0x22 PF: > { %v602_v2 = vld [vmem:[%s1950_s13] sm:$0x3]  ;;  %v1965_v3 = vld [vmem:[#allocation9 + $0x70] sm:$0xff]  ;;  %v1967_v4 = vld [vmem:[#allocation9 + $0x60] sm:$0xff]  ;;  %s1827_s21 = smov 32   ;;  %vm557_vm1 = vcmask 523264  }
  0x23   : > { %604 = vrot.lane.b32.xlu0 %v602_v2, %s1827_s21  ;;  %569 = vmatpush.msra.mxu0 %v1965_v3  ;;  %v1971_v5 = vld [vmem:[#allocation9 + $0x50] sm:$0xff]  ;;  %v1974_v6 = vld [vmem:[#allocation9 + $0x78] sm:$0xff]  ;;  %v1976_v7 = vld [vmem:[#allocation9 + $0x40] sm:$0xff]  ;;  %vm607_vm2 = vcmask 261120   ;;  %s1828_s22 = smov 64   ;;  %s1829_s27 = smov 96  }
  0x24   : > { %589 = vmatpush.msra.mxu1 %v1974_v6  ;;  %v1979_v8 = vld [vmem:[#allocation9 + $0x68] sm:$0xff]  ;;  %v1982_v9 = vld [vmem:[#allocation9 + $0x58] sm:$0xff]  ;;  %v1984_v10 = vld [vmem:[#allocation9 + $0x30] sm:$0xff]  ;;  %vm756_vm11 = vcmask 517120   ;;  %p1560_p9 = scmp.ne.s32.totalorder %s1897_s18, 1 }
  0x25   : > { %570 = vmatpush.msra.mxu0 %v1967_v4  ;;  %v1528_v11 = vld [vmem:[%s1960_s24 + $0x6] sm:$0x3]  ;;  %v1988_v12 = vld [vmem:[#allocation4 + $0x38] sm:$0xff]  ;;  %v1991_v13 = vld [vmem:[#allocation9 + $0x48] sm:$0xff] }
  0x26   : > { %590 = vmatpush.msra.mxu1 %v1979_v8  ;;  %620 = vmatpush.msra.mxu2 %v1988_v12  ;;  %v1994_v14 = vld [vmem:[#allocation4 + $0x30] sm:$0xff]  ;;  %v1996_v15 = vld [vmem:[#allocation9 + $0x20] sm:$0xff]  ;;  %v2001_v16 = vld [vmem:[#allocation9 + $0x38] sm:$0xff] }
  0x27   : > { %571 = vmatpush.msra.mxu0 %v1971_v5  ;;  %v2003_v17 = vld [vmem:[#allocation4 + $0x28] sm:$0xff]  ;;  %v2005_v18 = vld [vmem:[#allocation9 + $0x10] sm:$0xff]  ;;  %v2012_v20 = vld [vmem:[#allocation4 + $0x20] sm:$0xff] }
  0x28   : > { %591 = vmatpush.msra.mxu1 %v1982_v9  ;;  %621 = vmatpush.msra.mxu2 %v1994_v14  ;;  %v2010_v19 = vld [vmem:[#allocation9 + $0x28] sm:$0xff]  ;;  %v2014_v21 = vld [vmem:[#allocation9] sm:$0xff]  ;;  %v2019_v22 = vld [vmem:[#allocation2] sm:$0x3] }
  0x29   : > { %572 = vmatpush.msra.mxu0 %v1976_v7  ;;  %v2021_v23 = vld [vmem:[#allocation9 + $0x18] sm:$0xff]  ;;  %v2028_v25 = vld [vmem:[#allocation9 + $0x8] sm:$0xff]  ;;  %v2033_v26 = vld [vmem:[#allocation4 + $0x10] sm:$0xff] }
  0x2a   : > { %592 = vmatpush.msra.mxu1 %v1991_v13  ;;  %622 = vmatpush.msra.mxu2 %v2003_v17  ;;  %v2025_v24 = vld [vmem:[#allocation4 + $0x18] sm:$0xff]  ;;  %v2038_v27 = vld [vmem:[#allocation4 + $0x8] sm:$0xff]  ;;  %v2075_v28 = vld [vmem:[#allocation4] sm:$0xff] }
  0x2b   : > { %573 = vmatpush.msra.mxu0 %v1984_v10  ;;  %637 = vrot.lane.b32.xlu0 %v1528_v11, %s1827_s21  ;;  %v2078_v29 = vld [vmem:[#allocation7 + $0x38] sm:$0xff]  ;;  %v2080_v30 = vld [vmem:[#allocation7 + $0x30] sm:$0xff]  ;;  %v2084_v31 = vld [vmem:[#allocation7 + $0x28] sm:$0xff] }
  0x2c   : > { %593 = vmatpush.msra.mxu1 %v2001_v16  ;;  %623 = vmatpush.msra.mxu2 %v2012_v20  ;;  %v2088_v32 = vld [vmem:[#allocation7 + $0x20] sm:$0xff]  ;;  %v2092_v33 = vld [vmem:[#allocation7 + $0x18] sm:$0xff]  ;;  %v2096_v34 = vld [vmem:[#allocation7 + $0x10] sm:$0xff] }
  0x2d   : > { %574 = vmatpush.msra.mxu0 %v1996_v15  ;;  %652 = vmatpush.msra.mxu3 %v2078_v29  ;;  %v2100_v35 = vld [vmem:[#allocation7 + $0x8] sm:$0xff]  ;;  %v2104_v36 = vld [vmem:[#allocation7] sm:$0xff]  ;;  %v601_v37 = vld [vmem:[%s1945_s29] sm:$0x3] }
  0x2e   : > { %594 = vmatpush.msra.mxu1 %v2010_v19  ;;  %624 = vmatpush.msra.mxu2 %v2025_v24  ;;  %v1527_v40 = vld [vmem:[%s1955_s19 + $0x6] sm:$0x3]  ;;  %v550_v43 = vld [vmem:[%s2339_s9] sm:$0x3] }
  0x2f   : > { %575 = vmatpush.msra.mxu0 %v2005_v18  ;;  %653 = vmatpush.msra.mxu3 %v2080_v30  ;;  %v2141_v44 = vperm.slane %v550_v43, 0  ;;  %v2145_v46 = vperm.slane %v550_v43, 1  ;;  %v2156_v50 = vld [vmem:[%s2337_s7] ss:$0 sm:$0xff] }
  0x30   : > { %595 = vmatpush.msra.mxu1 %v2021_v23  ;;  %625 = vmatpush.msra.mxu2 %v2033_v26  ;;  %v2162_v56 = vld [vmem:[%s2338_s8] ss:$0 sm:$0xff] }
  0x31   : > { %576 = vmatpush.msra.mxu0 %v2014_v21  ;;  %654 = vmatpush.msra.mxu3 %v2084_v31 }
  0x32   : > { %1524 = vmatmul.msk.f32.vlgmr.msra.gmra.mxu0 %vm557_vm1, %v2019_v22  ;;  %596 = vmatpush.msra.mxu1 %v2028_v25 }
  0x33   : > { %774 = vmatpush.msrb.mxu0 %v1965_v3  ;;  %1525 = vmatmul.msk.f32.vlgmr.msra.gmra.mxu1 %vm557_vm1, %v2019_v22 }
  0x34   : > { %794 = vmatpush.msrb.mxu1 %v1974_v6  ;;  %626 = vmatpush.msra.mxu2 %v2038_v27 }
  0x35   : > { %775 = vmatpush.msrb.mxu0 %v1967_v4  ;;  %655 = vmatpush.msra.mxu3 %v2088_v32 }
  0x36   : > { %795 = vmatpush.msrb.mxu1 %v1979_v8  ;;  %627 = vmatpush.msra.mxu2 %v2075_v28 }
  0x37   : > { %776 = vmatpush.msrb.mxu0 %v1971_v5  ;;  %656 = vmatpush.msra.mxu3 %v2092_v33 }
  0x38   : > { %796 = vmatpush.msrb.mxu1 %v1982_v9  ;;  %826 = vmatpush.msrb.mxu2 %v1988_v12 }
  0x39   : > { %777 = vmatpush.msrb.mxu0 %v1976_v7  ;;  %657 = vmatpush.msra.mxu3 %v2096_v34 }
  0x3a   : > { %797 = vmatpush.msrb.mxu1 %v1991_v13  ;;  %827 = vmatpush.msrb.mxu2 %v1994_v14 }
  0x3b   : > { %778 = vmatpush.msrb.mxu0 %v1984_v10  ;;  %658 = vmatpush.msra.mxu3 %v2100_v35 }
  0x3c   : > { %798 = vmatpush.msrb.mxu1 %v2001_v16  ;;  %828 = vmatpush.msrb.mxu2 %v2003_v17 }
  0x3d   : > { %779 = vmatpush.msrb.mxu0 %v1996_v15  ;;  %659 = vmatpush.msra.mxu3 %v2104_v36 }
  0x3e   : > { %799 = vmatpush.msrb.mxu1 %v2010_v19  ;;  %829 = vmatpush.msrb.mxu2 %v2012_v20 }
  0x3f   : > { %780 = vmatpush.msrb.mxu0 %v2005_v18  ;;  %858 = vmatpush.msrb.mxu3 %v2078_v29 }
  0x40   : > { %800 = vmatpush.msrb.mxu1 %v2021_v23  ;;  %830 = vmatpush.msrb.mxu2 %v2025_v24 }
  0x41   : > { %781 = vmatpush.msrb.mxu0 %v2014_v21  ;;  %859 = vmatpush.msrb.mxu3 %v2080_v30 }
  0x42   : > { %801 = vmatpush.msrb.mxu1 %v2028_v25  ;;  %831 = vmatpush.msrb.mxu2 %v2033_v26 }
  0x43   : > { %979 = vmatpush.msra.mxu0 %v1965_v3  ;;  %860 = vmatpush.msrb.mxu3 %v2084_v31 }
  0x44   : > { %999 = vmatpush.msra.mxu1 %v1974_v6  ;;  %832 = vmatpush.msrb.mxu2 %v2038_v27 }
  0x45   : > { %980 = vmatpush.msra.mxu0 %v1967_v4  ;;  %861 = vmatpush.msrb.mxu3 %v2088_v32 }
  0x46   : > { %1000 = vmatpush.msra.mxu1 %v1979_v8  ;;  %833 = vmatpush.msrb.mxu2 %v2075_v28 }
  0x47   : > { %981 = vmatpush.msra.mxu0 %v1971_v5  ;;  %862 = vmatpush.msrb.mxu3 %v2092_v33 }
  0x48   : > { %1001 = vmatpush.msra.mxu1 %v1982_v9 }
  0x49   : > { %982 = vmatpush.msra.mxu0 %v1976_v7  ;;  %863 = vmatpush.msrb.mxu3 %v2096_v34 }
  0x4a   : > { %1002 = vmatpush.msra.mxu1 %v1991_v13 }
  0x4b   : > { %983 = vmatpush.msra.mxu0 %v1984_v10  ;;  %864 = vmatpush.msrb.mxu3 %v2100_v35 }
  0x4c   : > { %1003 = vmatpush.msra.mxu1 %v2001_v16 }
  0x4d   : > { %984 = vmatpush.msra.mxu0 %v1996_v15  ;;  %865 = vmatpush.msrb.mxu3 %v2104_v36 }
  0x4e   : > { %1004 = vmatpush.msra.mxu1 %v2010_v19 }
  0x4f   : > { %985 = vmatpush.msra.mxu0 %v2005_v18 }
  0x50   : > { %1005 = vmatpush.msra.mxu1 %v2021_v23 }
  0x51   : > { %986 = vmatpush.msra.mxu0 %v2014_v21 }
  0x52   : > { %1006 = vmatpush.msra.mxu1 %v2028_v25 }
  0x95   : > { %v605_v38 = vpop.permute.xlu0 %604 }
  0x96   : > { %v608_v39 = vsel %vm607_vm2, %v601_v37, %v605_v38 }
  0x97   : > { %1526 = vmatmul.msk.f32.vlgmr.msra.gmra.mxu2 %vm557_vm1, %v608_v39 }
  0x98   : > { %1031 = vmatpush.msra.mxu2 %v1988_v12 }
  0x9a   : > { %1032 = vmatpush.msra.mxu2 %v1994_v14 }
  0x9c   : > { %1033 = vmatpush.msra.mxu2 %v2003_v17 }
  0x9d   : > { %v638_v41 = vpop.permute.xlu0 %637 }
  0x9e   : > { %v640_v42 = vsel %vm607_vm2, %v1527_v40, %v638_v41  ;;  %1034 = vmatpush.msra.mxu2 %v2012_v20 }
  0x9f   : > { %1529 = vmatmul.msk.f32.vlgmr.msra.gmra.mxu3 %vm557_vm1, %v640_v42 }
  0xa0   : > { %1035 = vmatpush.msra.mxu2 %v2025_v24  ;;  %1063 = vmatpush.msra.mxu3 %v2078_v29 }
  0xa2   : > { %1036 = vmatpush.msra.mxu2 %v2033_v26  ;;  %1064 = vmatpush.msra.mxu3 %v2080_v30 }
  0xa4   : > { %1037 = vmatpush.msra.mxu2 %v2038_v27  ;;  %1065 = vmatpush.msra.mxu3 %v2084_v31 }
  0xa6   : > { %1038 = vmatpush.msra.mxu2 %v2075_v28  ;;  %1066 = vmatpush.msra.mxu3 %v2088_v32 }
  0xa8   : > { %1067 = vmatpush.msra.mxu3 %v2092_v33 }
  0xaa   : > { %1068 = vmatpush.msra.mxu3 %v2096_v34 }
  0xac   : > { %1069 = vmatpush.msra.mxu3 %v2100_v35 }
  0xae   : > { %1070 = vmatpush.msra.mxu3 %v2104_v36 }
  0xaf   : > { %v578_v45 = vpop.f32.mrf.mxu0 }
  0xb0   : > { %v579_v47 = vadd.f32 %v578_v45, %v2141_v44  ;;  %v598_v48 = vpop.f32.mrf.mxu1 }
  0xb1   : > { %v599_v49 = vadd.f32 %v598_v48, %v2145_v46 }
  0xb2   : > { %685 = vrot.lane.b32.xlu1 %v579_v47, %s1828_s22 }
  0xb3   : > { %709 = vrot.lane.b32.xlu2 %v599_v49, %s1827_s21 }
  0xba   : > { %707 = vrot.lane.b32.xlu1 %v579_v47, %s1827_s21 }
  0xbb   : > { %733 = vrot.lane.b32.xlu2 %v599_v49, %s1829_s27 }
 0x10d   : > { %v710_v61 = vpop.permute.xlu2 %709 }
 0x11a   : > { %v629_v51 = vpop.f32.mrf.mxu2 }
 0x11b   : > { %v630_v52 = vadd.f32 %v2156_v50, %v629_v51 }
 0x11d   : > { %v664_v53 = vadd.f32 %v630_v52, %v579_v47 }
 0x11f   : > { %v1530_v54 = vmul.f32 -1.442695, %v664_v53 }
 0x121   : > { %1622 = vpow2.f32 %v1530_v54 }
 0x122   : > { %v661_v58 = vpop.f32.mrf.mxu3 }
 0x123   : > { %v662_v60 = vadd.f32 %v2162_v56, %v661_v58 }
 0x124   : > { %v686_v55 = vpop.permute.xlu1 %685 }
 0x127   : > { %v1623_v57 = vpop.eup %1622 }
 0x128   : > { %v668_v59 = vadd.f32 1.0, %v1623_v57 }
 0x12a   : > { %1624 = vrcp.f32 %v668_v59  ;;  %v680_v38 = vand.u32 2147483648, %v668_v59  ;;  %v678_v40 = vand.u32 2147483647, %v668_v59  ;;  %vm674_vm4 = vweird.f32 %v668_v59 }
 0x12c   : > { %v708_v62 = vpop.permute.xlu1 %707  ;;  %v681_v43 = vor.u32 1.1754944e-38, %v680_v38  ;;  %vm679_vm6 = vcmp.eq.f32.partialorder %v678_v40, 8.507059e+37 }
 0x12d   : > { %v711_v63 = vsel %vm607_vm2, %v708_v62, %v710_v61 }
 0x12e   : > { %v713_v0 = vadd.f32 %v711_v63, %v662_v60 }
 0x130   : > { %v1625_v1 = vpop.eup %1624  ;;  %v1531_v2 = vmul.f32 -1.442695, %v713_v0 }
 0x131   : > { %v670_v11 = vmul.f32 %v1625_v1, %v668_v59  ;;  %vm675_vm3 = vweird.f32 %v1625_v1 }
 0x132   : > { %1626 = vpow2.f32 %v1531_v2  ;;  %vm676_vm5 = vmor %vm674_vm4, %vm675_vm3  ;;  %v1535_v2 = vld [vmem:[%s1950_s13 + $0x2] sm:$0x3] }
 0x133   : > { %v671_v37 = vsub.f32 1.0, %v670_v11 }
 0x135   : > { %v672_v39 = vmul.f32 %v1625_v1, %v671_v37 }
 0x137   : > { %v673_v41 = vadd.f32 %v1625_v1, %v672_v39 }
 0x138   : > { %v1627_v42 = vpop.eup %1626 }
 0x139   : > { %v677_v45 = vsel %vm676_vm5, %v1625_v1, %v673_v41  ;;  %v717_v47 = vadd.f32 1.0, %v1627_v42 }
 0x13a   : > { %v682_v48 = vsel %vm679_vm6, %v681_v43, %v677_v45 }
 0x13b   : > { %v688_v49 = vmul.f32 %v686_v55, %v682_v48  ;;  %1628 = vrcp.f32 %v717_v47  ;;  %v729_v54 = vand.u32 2147483648, %v717_v47  ;;  %vm723_vm7 = vweird.f32 %v717_v47  ;;  %v734_v55 = vpop.permute.xlu2 %733 }
 0x13c   : > { %v727_v58 = vand.u32 2147483647, %v717_v47  ;;  %v695_v43 = vsub.f32 1.0, %v682_v48 }
 0x13d   : > { %690 = vrot.lane.b32.xlu0 %v688_v49, %s1828_s22  ;;  %v730_v61 = vor.u32 1.1754944e-38, %v729_v54 }
 0x13e   : > { %vm728_vm10 = vcmp.eq.f32.partialorder %v727_v58, 8.507059e+37 }
 0x141   : > { %v1629_v51 = vpop.eup %1628 }
 0x142   : > { %v719_v53 = vmul.f32 %v1629_v51, %v717_v47  ;;  %vm724_vm8 = vweird.f32 %v1629_v51 }
 0x143   : > { %vm725_vm9 = vmor %vm723_vm7, %vm724_vm8 }
 0x144   : > { %v720_v57 = vsub.f32 1.0, %v719_v53 }
 0x145   : > { %701 = vrot.lane.b32.xlu0 %v2019_v22, %s1827_s21 }
 0x146   : > { %v721_v59 = vmul.f32 %v1629_v51, %v720_v57  ;;  %v1538_v57 = vld [vmem:[%s1960_s24 + $0x4] sm:$0x3] }
 0x148   : > { %v722_v62 = vadd.f32 %v1629_v51, %v721_v59 }
 0x14a   : > { %v726_v63 = vsel %vm725_vm9, %v1629_v51, %v722_v62 }
 0x14b   : > { %v731_v0 = vsel %vm728_vm10, %v730_v61, %v726_v63 }
 0x14c   : > { %v736_v1 = vmul.f32 %v734_v55, %v731_v0  ;;  %v749_v59 = vmul.f32 %v731_v0, %v2019_v22 }
 0x14d   : > { %811 = vrot.lane.b32.xlu0 %v1535_v2, %s1827_s21 }
 0x14e   : > { %738 = vrot.lane.b32.xlu1 %v736_v1, %s1828_s22 }
 0x1af   : > { %v691_v11 = vpop.permute.xlu0 %690 }
 0x1b0   : > { %v693_v37 = vadd.f32 %v691_v11, %v630_v52  ;;  %v1534_v52 = vld [vmem:[%s1945_s29 + $0x2] sm:$0x3] }
 0x1b2   : > { %1630 = vtanh.f32 %v693_v37 }
 0x1b7   : > { %v702_v42 = vpop.permute.xlu0 %701 }
 0x1b8   : > { %v1631_v38 = vpop.eup %1630  ;;  %v704_v47 = vmul.f32 %v702_v42, %v682_v48  ;;  %v743_v48 = vsub.f32 1.0, %v731_v0 }
 0x1b9   : > { %697 = vrot.lane.b32.xlu2 %v1631_v38, %s1829_s27 }
 0x1bf   : > { %v812_v53 = vpop.permute.xlu0 %811 }
 0x1c0   : > { %v739_v39 = vpop.permute.xlu1 %738  ;;  %v814_v54 = vsel %vm607_vm2, %v1534_v52, %v812_v53 }
 0x1c1   : > { %v741_v40 = vadd.f32 %v739_v39, %v662_v60  ;;  %1536 = vmatmul.msk.f32.vlgmr.msrb.gmra.mxu2 %vm557_vm1, %v814_v54 }
 0x1c2   : > { %1236 = vmatpush.msrb.mxu2 %v1988_v12 }
 0x1c3   : > { %1632 = vtanh.f32 %v741_v40 }
 0x1c4   : > { %1237 = vmatpush.msrb.mxu2 %v1994_v14 }
 0x1c6   : > { %1238 = vmatpush.msrb.mxu2 %v2003_v17 }
 0x1c8   : > { %1239 = vmatpush.msrb.mxu2 %v2012_v20  ;;  %v758_v20 = vld [vmem:[#allocation3] sm:$0x3] }
 0x1c9   : > { %v1633_v41 = vpop.eup %1632 }
 0x1ca   : > { %745 = vrot.lane.b32.xlu1 %v1633_v41, %s1829_s27  ;;  %1240 = vmatpush.msrb.mxu2 %v2025_v24 }
 0x1cc   : > { %1241 = vmatpush.msrb.mxu2 %v2033_v26 }
 0x1ce   : > { %1242 = vmatpush.msrb.mxu2 %v2038_v27 }
 0x1d0   : > { %1243 = vmatpush.msrb.mxu2 %v2075_v28 }
 0x1d2   : > { %843 = vrot.lane.b32.xlu1 %v1538_v57, %s1827_s21 }
 0x213   : > { %v698_v45 = vpop.permute.xlu2 %697 }
 0x214   : > { %v700_v49 = vmul.f32 %v698_v45, %v695_v43 }
 0x216   : > { %v705_v51 = vadd.f32 %v704_v47, %v700_v49 }
 0x218   : > { %752 = vrot.lane.b32.xlu2 %v705_v51, %s1829_s27 }
 0x23c   : > { %v746_v60 = vpop.permute.xlu1 %745 }
 0x23d   : > { %v748_v58 = vmul.f32 %v746_v60, %v743_v48  ;;  %v1545_v60 = vld [vmem:[%s1950_s13 + $0x4] sm:$0x3] }
 0x23f   : > { %v750_v12 = vadd.f32 %v749_v59, %v748_v58 }
 0x272   : > { %v753_v14 = vpop.permute.xlu2 %752 }
 0x273   : > { %v755_v17 = vsel %vm607_vm2, %v753_v14, %v750_v12 }
 0x274   : > { %757 = vst.msk [vmem:[#allocation2] sm:$0x3] %vm756_vm11, %v755_v17  ;;  %1634 = vtanh.f32 %v755_v17 }
 0x27a   : > { %v1635_v24 = vpop.eup %1634 }
 0x27b   : > { %v760_v26 = vmax.f32 %v758_v20, %v1635_v24  ;;  %v2191_v61 = vld [vmem:[#allocation2] sm:$0x3] }
 0x27c   : > { %1532 = vmatmul.msk.f32.vlgmr.msrb.gmra.mxu0 %vm557_vm1, %v2191_v61  ;;  %1533 = vmatmul.msk.f32.vlgmr.msrb.gmra.mxu1 %vm557_vm1, %v2191_v61 }
 0x27d   : > { %761 = vst.msk [vmem:[#allocation3] sm:$0x3] %vm756_vm11, %v760_v26  ;;  %1184 = vmatpush.msrb.mxu0 %v1965_v3  ;;  %1204 = vmatpush.msrb.mxu1 %v1974_v6  ;;  %v1537_v3 = vld [vmem:[%s1955_s19 + $0x4] sm:$0x3] }
 0x27f   : > { %1185 = vmatpush.msrb.mxu0 %v1967_v4  ;;  %1205 = vmatpush.msrb.mxu1 %v1979_v8  ;;  %v844_v4 = vpop.permute.xlu1 %843 }
 0x281   : > { %1186 = vmatpush.msrb.mxu0 %v1971_v5  ;;  %1206 = vmatpush.msrb.mxu1 %v1982_v9  ;;  %v846_v5 = vsel %vm607_vm2, %v1537_v3, %v844_v4  ;;  %v1544_v3 = vld [vmem:[%s1945_s29 + $0x4] sm:$0x3] }
 0x282   : > { %1539 = vmatmul.msk.f32.vlgmr.msrb.gmra.mxu3 %vm557_vm1, %v846_v5 }
 0x283   : > { %1187 = vmatpush.msrb.mxu0 %v1976_v7  ;;  %1207 = vmatpush.msrb.mxu1 %v1991_v13 }
 0x284   : > { %1266 = vmatpush.msrb.mxu3 %v2078_v29 }
 0x285   : > { %1188 = vmatpush.msrb.mxu0 %v1984_v10  ;;  %1208 = vmatpush.msrb.mxu1 %v2001_v16  ;;  %v835_v10 = vpop.f32.mrf.mxu2 }
 0x286   : > { %1267 = vmatpush.msrb.mxu3 %v2080_v30  ;;  %v836_v13 = vadd.f32 %v2156_v50, %v835_v10 }
 0x287   : > { %1189 = vmatpush.msrb.mxu0 %v1996_v15  ;;  %1209 = vmatpush.msrb.mxu1 %v2010_v19 }
 0x288   : > { %1268 = vmatpush.msrb.mxu3 %v2084_v31 }
 0x289   : > { %1190 = vmatpush.msrb.mxu0 %v2005_v18  ;;  %1210 = vmatpush.msrb.mxu1 %v2021_v23 }
 0x28a   : > { %1269 = vmatpush.msrb.mxu3 %v2088_v32 }
 0x28b   : > { %1191 = vmatpush.msrb.mxu0 %v2014_v21  ;;  %1211 = vmatpush.msrb.mxu1 %v2028_v25 }
 0x28c   : > { %1270 = vmatpush.msrb.mxu3 %v2092_v33 }
 0x28e   : > { %1271 = vmatpush.msrb.mxu3 %v2096_v34 }
 0x290   : > { %1272 = vmatpush.msrb.mxu3 %v2100_v35 }
 0x292   : > { %1273 = vmatpush.msrb.mxu3 %v2104_v36 }
 0x2f9   : > { %v783_v6 = vpop.f32.mrf.mxu0  ;;  %v803_v7 = vpop.f32.mrf.mxu1 }
 0x2fa   : > { %v784_v8 = vadd.f32 %v783_v6, %v2141_v44  ;;  %v804_v9 = vadd.f32 %v803_v7, %v2145_v46  ;;  %v1548_v6 = vld [vmem:[%s1960_s24 + $0x2] sm:$0x3] }
 0x2fc   : > { %915 = vrot.lane.b32.xlu1 %v804_v9, %s1827_s21  ;;  %913 = vrot.lane.b32.xlu0 %v784_v8, %s1827_s21  ;;  %v870_v15 = vadd.f32 %v836_v13, %v784_v8 }
 0x2fd   : > { %891 = vrot.lane.b32.xlu2 %v784_v8, %s1828_s22 }
 0x2fe   : > { %v1540_v16 = vmul.f32 -1.442695, %v870_v15 }
 0x300   : > { %1636 = vpow2.f32 %v1540_v16 }
 0x305   : > { %939 = vrot.lane.b32.xlu2 %v804_v9, %s1829_s27  ;;  %v867_v35 = vpop.f32.mrf.mxu3 }
 0x306   : > { %v1637_v18 = vpop.eup %1636  ;;  %v868_v36 = vadd.f32 %v2162_v56, %v867_v35 }
 0x307   : > { %v874_v19 = vadd.f32 1.0, %v1637_v18 }
 0x309   : > { %1638 = vrcp.f32 %v874_v19  ;;  %v886_v28 = vand.u32 2147483648, %v874_v19  ;;  %vm880_vm13 = vweird.f32 %v874_v19  ;;  %v884_v29 = vand.u32 2147483647, %v874_v19 }
 0x30b   : > { %v887_v31 = vor.u32 1.1754944e-38, %v886_v28  ;;  %vm885_vm15 = vcmp.eq.f32.partialorder %v884_v29, 8.507059e+37 }
 0x30f   : > { %v1639_v21 = vpop.eup %1638 }
 0x310   : > { %v876_v22 = vmul.f32 %v1639_v21, %v874_v19  ;;  %vm881_vm12 = vweird.f32 %v1639_v21  ;;  %v963_v19 = vld [vmem:[#allocation3] sm:$0x3] }
 0x311   : > { %vm882_vm14 = vmor %vm880_vm13, %vm881_vm12 }
 0x312   : > { %v877_v23 = vsub.f32 1.0, %v876_v22 }
 0x314   : > { %v878_v25 = vmul.f32 %v1639_v21, %v877_v23 }
 0x316   : > { %v879_v27 = vadd.f32 %v1639_v21, %v878_v25 }
 0x318   : > { %v883_v30 = vsel %vm882_vm14, %v1639_v21, %v879_v27 }
 0x319   : > { %v888_v33 = vsel %vm885_vm15, %v887_v31, %v883_v30 }
 0x31a   : > { %v901_v14 = vsub.f32 1.0, %v888_v33 }
 0x357   : > { %v892_v32 = vpop.permute.xlu2 %891 }
 0x358   : > { %v894_v34 = vmul.f32 %v892_v32, %v888_v33 }
 0x35a   : > { %896 = vrot.lane.b32.xlu0 %v894_v34, %s1828_s22 }
 0x35f   : > { %v940_v49 = vpop.permute.xlu2 %939 }
 0x362   : > { %907 = vrot.lane.b32.xlu0 %v2191_v61, %s1827_s21 }
 0x36a   : > { %1016 = vrot.lane.b32.xlu0 %v1545_v60, %s1827_s21 }
 0x36e   : > { %v916_v62 = vpop.permute.xlu1 %915  ;;  %v914_v55 = vpop.permute.xlu0 %913 }
 0x36f   : > { %v917_v63 = vsel %vm607_vm2, %v914_v55, %v916_v62 }
 0x370   : > { %v919_v0 = vadd.f32 %v917_v63, %v868_v36 }
 0x372   : > { %v1541_v1 = vmul.f32 -1.442695, %v919_v0 }
 0x374   : > { %1640 = vpow2.f32 %v1541_v1 }
 0x37a   : > { %v1641_v2 = vpop.eup %1640 }
 0x37b   : > { %v923_v11 = vadd.f32 1.0, %v1641_v2 }
 0x37d   : > { %1642 = vrcp.f32 %v923_v11  ;;  %v935_v40 = vand.u32 2147483648, %v923_v11  ;;  %v933_v42 = vand.u32 2147483647, %v923_v11  ;;  %vm929_vm3 = vweird.f32 %v923_v11 }
 0x37f   : > { %v936_v45 = vor.u32 1.1754944e-38, %v935_v40  ;;  %vm934_vm5 = vcmp.eq.f32.partialorder %v933_v42, 8.507059e+37 }
 0x383   : > { %v1643_v37 = vpop.eup %1642 }
 0x384   : > { %v925_v38 = vmul.f32 %v1643_v37, %v923_v11  ;;  %vm930_vm0 = vweird.f32 %v1643_v37 }
 0x385   : > { %vm931_vm4 = vmor %vm929_vm3, %vm930_vm0 }
 0x386   : > { %v926_v39 = vsub.f32 1.0, %v925_v38 }
 0x388   : > { %v927_v41 = vmul.f32 %v1643_v37, %v926_v39 }
 0x38a   : > { %v928_v43 = vadd.f32 %v1643_v37, %v927_v41 }
 0x38c   : > { %v932_v47 = vsel %vm931_vm4, %v1643_v37, %v928_v43 }
 0x38d   : > { %v937_v51 = vsel %vm934_vm5, %v936_v45, %v932_v47 }
 0x38e   : > { %v942_v52 = vmul.f32 %v940_v49, %v937_v51  ;;  %v949_v8 = vsub.f32 1.0, %v937_v51  ;;  %v955_v10 = vmul.f32 %v937_v51, %v2191_v61  ;;  %v1547_v61 = vld [vmem:[%s1955_s19 + $0x2] sm:$0x3] }
 0x390   : > { %944 = vrot.lane.b32.xlu1 %v942_v52, %s1828_s22 }
 0x3cc   : > { %v897_v53 = vpop.permute.xlu0 %896 }
 0x3cd   : > { %v899_v54 = vadd.f32 %v897_v53, %v836_v13 }
 0x3cf   : > { %1644 = vtanh.f32 %v899_v54 }
 0x3d4   : > { %v908_v12 = vpop.permute.xlu0 %907 }
 0x3d5   : > { %v1645_v57 = vpop.eup %1644  ;;  %v910_v20 = vmul.f32 %v908_v12, %v888_v33 }
 0x3d6   : > { %903 = vrot.lane.b32.xlu2 %v1645_v57, %s1829_s27 }
 0x3dc   : > { %v1017_v4 = vpop.permute.xlu0 %1016 }
 0x3dd   : > { %v1019_v5 = vsel %vm607_vm2, %v1544_v3, %v1017_v4 }
 0x3de   : > { %1546 = vmatmul.msk.f32.vlgmr.msra.gmra.mxu2 %vm557_vm1, %v1019_v5 }
 0x402   : > { %v945_v48 = vpop.permute.xlu1 %944 }
 0x403   : > { %v947_v58 = vadd.f32 %v945_v48, %v868_v36 }
 0x405   : > { %1646 = vtanh.f32 %v947_v58 }
 0x40b   : > { %v1647_v59 = vpop.eup %1646 }
 0x40c   : > { %951 = vrot.lane.b32.xlu1 %v1647_v59, %s1829_s27 }
 0x414   : > { %1048 = vrot.lane.b32.xlu1 %v1548_v6, %s1827_s21 }
 0x430   : > { %v904_v17 = vpop.permute.xlu2 %903 }
 0x431   : > { %v906_v24 = vmul.f32 %v904_v17, %v901_v14 }
 0x433   : > { %v911_v26 = vadd.f32 %v910_v20, %v906_v24 }
 0x435   : > { %958 = vrot.lane.b32.xlu2 %v911_v26, %s1829_s27 }
 0x461   : > { %v1040_v31 = vpop.f32.mrf.mxu2 }
 0x462   : > { %v1041_v32 = vadd.f32 %v2156_v50, %v1040_v31 }
 0x47e   : > { %v952_v7 = vpop.permute.xlu1 %951 }
 0x47f   : > { %v954_v9 = vmul.f32 %v952_v7, %v949_v8  ;;  %v1555_v7 = vld [vmem:[%s1950_s13 + $0x6] sm:$0x3] }
 0x481   : > { %v956_v13 = vadd.f32 %v955_v10, %v954_v9 }
 0x486   : > { %v1049_v23 = vpop.permute.xlu1 %1048 }
 0x487   : > { %v1051_v25 = vsel %vm607_vm2, %v1547_v61, %v1049_v23  ;;  %v1554_v61 = vld [vmem:[%s1945_s29 + $0x6] sm:$0x3] }
 0x488   : > { %1549 = vmatmul.msk.f32.vlgmr.msra.gmra.mxu3 %vm557_vm1, %v1051_v25 }
 0x48f   : > { %v959_v15 = vpop.permute.xlu2 %958 }
 0x490   : > { %v961_v16 = vsel %vm607_vm2, %v959_v15, %v956_v13 }
 0x491   : > { %962 = vst.msk [vmem:[#allocation2] sm:$0x3] %vm756_vm11, %v961_v16  ;;  %1648 = vtanh.f32 %v961_v16 }
 0x497   : > { %v1649_v18 = vpop.eup %1648 }
 0x498   : > { %v965_v21 = vmax.f32 %v963_v19, %v1649_v18  ;;  %v2251_v22 = vld [vmem:[#allocation2] sm:$0x3] }
 0x499   : > { %1542 = vmatmul.msk.f32.vlgmr.msra.gmra.mxu0 %vm557_vm1, %v2251_v22  ;;  %1543 = vmatmul.msk.f32.vlgmr.msra.gmra.mxu1 %vm557_vm1, %v2251_v22 }
 0x49a   : > { %966 = vst.msk [vmem:[#allocation3] sm:$0x3] %vm756_vm11, %v965_v21 }
 0x50b   : > { %v1072_v42 = vpop.f32.mrf.mxu3 }
 0x50c   : > { %v1073_v43 = vadd.f32 %v2162_v56, %v1072_v42 }
 0x516   : > { %v988_v27 = vpop.f32.mrf.mxu0  ;;  %v1008_v28 = vpop.f32.mrf.mxu1 }
 0x517   : > { %v989_v29 = vadd.f32 %v988_v27, %v2141_v44  ;;  %v1009_v30 = vadd.f32 %v1008_v28, %v2145_v46  ;;  %v1249_v27 = vld [vmem:[%s1960_s24] sm:$0x3] }
 0x519   : > { %1120 = vrot.lane.b32.xlu1 %v1009_v30, %s1827_s21  ;;  %1118 = vrot.lane.b32.xlu0 %v989_v29, %s1827_s21  ;;  %v1075_v33 = vadd.f32 %v1041_v32, %v989_v29 }
 0x51a   : > { %1096 = vrot.lane.b32.xlu2 %v989_v29, %s1828_s22 }
 0x51b   : > { %v1550_v34 = vmul.f32 -1.442695, %v1075_v33 }
 0x51d   : > { %1650 = vpow2.f32 %v1550_v34 }
 0x522   : > { %1144 = vrot.lane.b32.xlu2 %v1009_v30, %s1829_s27 }
 0x523   : > { %v1651_v35 = vpop.eup %1650 }
 0x524   : > { %v1079_v36 = vadd.f32 1.0, %v1651_v35 }
 0x526   : > { %1652 = vrcp.f32 %v1079_v36  ;;  %v1091_v2 = vand.u32 2147483648, %v1079_v36  ;;  %vm1085_vm7 = vweird.f32 %v1079_v36  ;;  %v1089_v11 = vand.u32 2147483647, %v1079_v36 }
 0x528   : > { %v1092_v38 = vor.u32 1.1754944e-38, %v1091_v2  ;;  %vm1090_vm9 = vcmp.eq.f32.partialorder %v1089_v11, 8.507059e+37 }
 0x52c   : > { %v1653_v62 = vpop.eup %1652 }
 0x52d   : > { %v1081_v55 = vmul.f32 %v1653_v62, %v1079_v36  ;;  %vm1086_vm6 = vweird.f32 %v1653_v62  ;;  %v1168_v36 = vld [vmem:[#allocation3] sm:$0x3] }
 0x52e   : > { %vm1087_vm8 = vmor %vm1085_vm7, %vm1086_vm6 }
 0x52f   : > { %v1082_v63 = vsub.f32 1.0, %v1081_v55 }
 0x531   : > { %v1083_v0 = vmul.f32 %v1653_v62, %v1082_v63 }
 0x533   : > { %v1084_v1 = vadd.f32 %v1653_v62, %v1083_v0 }
 0x535   : > { %v1088_v37 = vsel %vm1087_vm8, %v1653_v62, %v1084_v1 }
 0x536   : > { %v1093_v40 = vsel %vm1090_vm9, %v1092_v38, %v1088_v37 }
 0x537   : > { %v1106_v15 = vsub.f32 1.0, %v1093_v40 }
 0x574   : > { %v1097_v39 = vpop.permute.xlu2 %1096 }
 0x575   : > { %v1099_v41 = vmul.f32 %v1097_v39, %v1093_v40 }
 0x577   : > { %1101 = vrot.lane.b32.xlu0 %v1099_v41, %s1828_s22 }
 0x57c   : > { %v1145_v24 = vpop.permute.xlu2 %1144 }
 0x57f   : > { %1112 = vrot.lane.b32.xlu0 %v2251_v22, %s1827_s21 }
 0x587   : > { %1221 = vrot.lane.b32.xlu0 %v1555_v7, %s1827_s21 }
 0x58b   : > { %v1121_v45 = vpop.permute.xlu1 %1120  ;;  %v1119_v47 = vpop.permute.xlu0 %1118 }
 0x58c   : > { %v1122_v49 = vsel %vm607_vm2, %v1119_v47, %v1121_v45 }
 0x58d   : > { %v1124_v51 = vadd.f32 %v1122_v49, %v1073_v43 }
 0x58f   : > { %v1551_v52 = vmul.f32 -1.442695, %v1124_v51 }
 0x591   : > { %1654 = vpow2.f32 %v1551_v52 }
 0x597   : > { %v1655_v53 = vpop.eup %1654 }
 0x598   : > { %v1128_v54 = vadd.f32 1.0, %v1655_v53 }
 0x59a   : > { %1656 = vrcp.f32 %v1128_v54  ;;  %v1140_v58 = vand.u32 2147483648, %v1128_v54  ;;  %v1138_v12 = vand.u32 2147483647, %v1128_v54  ;;  %vm1134_vm12 = vweird.f32 %v1128_v54 }
 0x59c   : > { %v1141_v17 = vor.u32 1.1754944e-38, %v1140_v58  ;;  %vm1139_vm14 = vcmp.eq.f32.partialorder %v1138_v12, 8.507059e+37 }
 0x5a0   : > { %v1657_v57 = vpop.eup %1656 }
 0x5a1   : > { %v1130_v60 = vmul.f32 %v1657_v57, %v1128_v54  ;;  %vm1135_vm10 = vweird.f32 %v1657_v57 }
 0x5a2   : > { %vm1136_vm13 = vmor %vm1134_vm12, %vm1135_vm10 }
 0x5a3   : > { %v1131_v48 = vsub.f32 1.0, %v1130_v60 }
 0x5a5   : > { %v1132_v59 = vmul.f32 %v1657_v57, %v1131_v48 }
 0x5a7   : > { %v1133_v14 = vadd.f32 %v1657_v57, %v1132_v59 }
 0x5a9   : > { %v1137_v20 = vsel %vm1136_vm13, %v1657_v57, %v1133_v14 }
 0x5aa   : > { %v1142_v26 = vsel %vm1139_vm14, %v1141_v17, %v1137_v20 }
 0x5ab   : > { %v1147_v3 = vmul.f32 %v1145_v24, %v1142_v26  ;;  %v1154_v29 = vsub.f32 1.0, %v1142_v26  ;;  %v1160_v31 = vmul.f32 %v1142_v26, %v2251_v22  ;;  %v1248_v22 = vld [vmem:[%s1955_s19] sm:$0x3] }
 0x5ad   : > { %1149 = vrot.lane.b32.xlu1 %v1147_v3, %s1828_s22 }
 0x5e9   : > { %v1102_v4 = vpop.permute.xlu0 %1101 }
 0x5ea   : > { %v1104_v5 = vadd.f32 %v1102_v4, %v1041_v32 }
 0x5ec   : > { %1658 = vtanh.f32 %v1104_v5 }
 0x5f1   : > { %v1113_v13 = vpop.permute.xlu0 %1112 }
 0x5f2   : > { %v1659_v6 = vpop.eup %1658  ;;  %v1115_v18 = vmul.f32 %v1113_v13, %v1093_v40 }
 0x5f3   : > { %1108 = vrot.lane.b32.xlu2 %v1659_v6, %s1829_s27 }
 0x5f9   : > { %v1222_v23 = vpop.permute.xlu0 %1221 }
 0x5fa   : > { %v1224_v25 = vsel %vm607_vm2, %v1554_v61, %v1222_v23 }
 0x5fb   : > { %1556 = vmatmul.msk.f32.vlgmr.msrb.gmra.mxu2 %vm557_vm1, %v1224_v25 }
 0x61f   : > { %v1150_v8 = vpop.permute.xlu1 %1149 }
 0x620   : > { %v1152_v9 = vadd.f32 %v1150_v8, %v1073_v43 }
 0x622   : > { %1660 = vtanh.f32 %v1152_v9 }
 0x628   : > { %v1661_v10 = vpop.eup %1660 }
 0x629   : > { %1156 = vrot.lane.b32.xlu1 %v1661_v10, %s1829_s27 }
 0x631   : > { %1251 = vrot.lane.b32.xlu1 %v1249_v27, %s1827_s21 }
 0x64d   : > { %v1109_v16 = vpop.permute.xlu2 %1108 }
 0x64e   : > { %v1111_v19 = vmul.f32 %v1109_v16, %v1106_v15 }
 0x650   : > { %v1116_v21 = vadd.f32 %v1115_v18, %v1111_v19 }
 0x652   : > { %1163 = vrot.lane.b32.xlu2 %v1116_v21, %s1829_s27 }
 0x67e   : > { %v1245_v38 = vpop.f32.mrf.mxu2 }
 0x67f   : > { %v1246_v39 = vadd.f32 %v2156_v50, %v1245_v38 }
 0x69b   : > { %v1157_v28 = vpop.permute.xlu1 %1156 }
 0x69c   : > { %v1159_v30 = vmul.f32 %v1157_v28, %v1154_v29 }
 0x69e   : > { %v1161_v32 = vadd.f32 %v1160_v31, %v1159_v30 }
 0x6a3   : > { %v1252_v63 = vpop.permute.xlu1 %1251 }
 0x6a4   : > { %v1254_v0 = vsel %vm607_vm2, %v1248_v22, %v1252_v63 }
 0x6a5   : > { %1557 = vmatmul.msk.f32.vlgmr.msrb.gmra.mxu3 %vm557_vm1, %v1254_v0 }
 0x6ac   : > { %v1164_v33 = vpop.permute.xlu2 %1163 }
 0x6ad   : > { %v1166_v34 = vsel %vm607_vm2, %v1164_v33, %v1161_v32 }
 0x6ae   : > { %1167 = vst.msk [vmem:[#allocation2] sm:$0x3] %vm756_vm11, %v1166_v34  ;;  %1662 = vtanh.f32 %v1166_v34 }
 0x6b4   : > { %v1663_v35 = vpop.eup %1662 }
 0x6b5   : > { %v1170_v62 = vmax.f32 %v1168_v36, %v1663_v35  ;;  %v2287_v55 = vld [vmem:[#allocation2] sm:$0x3] }
 0x6b6   : > { %1552 = vmatmul.msk.f32.vlgmr.msrb.gmra.mxu0 %vm557_vm1, %v2287_v55  ;;  %1553 = vmatmul.msk.f32.vlgmr.msrb.gmra.mxu1 %vm557_vm1, %v2287_v55 }
 0x6b7   : > { %1171 = vst.msk [vmem:[#allocation3] sm:$0x3] %vm756_vm11, %v1170_v62 }
 0x728   : > { %v1275_v48 = vpop.f32.mrf.mxu3 }
 0x729   : > { %v1276_v58 = vadd.f32 %v2162_v56, %v1275_v48 }
 0x733   : > { %v1193_v1 = vpop.f32.mrf.mxu0  ;;  %v1213_v2 = vpop.f32.mrf.mxu1 }
 0x734   : > { %v1194_v11 = vadd.f32 %v1193_v1, %v2141_v44  ;;  %v1214_v37 = vadd.f32 %v1213_v2, %v2145_v46  ;;  %v1371_v1 = vld [vmem:[#allocation3] sm:$0x3] }
 0x736   : > { %1323 = vrot.lane.b32.xlu1 %v1214_v37, %s1827_s21  ;;  %1321 = vrot.lane.b32.xlu0 %v1194_v11, %s1827_s21  ;;  %v1278_v40 = vadd.f32 %v1246_v39, %v1194_v11 }
 0x737   : > { %1299 = vrot.lane.b32.xlu2 %v1194_v11, %s1828_s22 }
 0x738   : > { %v1558_v41 = vmul.f32 -1.442695, %v1278_v40 }
 0x73a   : > { %1664 = vpow2.f32 %v1558_v41 }
 0x73f   : > { %1347 = vrot.lane.b32.xlu2 %v1214_v37, %s1829_s27 }
 0x740   : > { %v1665_v42 = vpop.eup %1664 }
 0x741   : > { %v1282_v43 = vadd.f32 1.0, %v1665_v42 }
 0x743   : > { %1666 = vrcp.f32 %v1282_v43  ;;  %v1294_v51 = vand.u32 2147483648, %v1282_v43  ;;  %vm1288_vm15 = vweird.f32 %v1282_v43  ;;  %v1292_v52 = vand.u32 2147483647, %v1282_v43 }
 0x745   : > { %v1295_v54 = vor.u32 1.1754944e-38, %v1294_v51  ;;  %vm1293_vm3 = vcmp.eq.f32.partialorder %v1292_v52, 8.507059e+37 }
 0x749   : > { %v1667_v44 = vpop.eup %1666 }
 0x74a   : > { %v1284_v45 = vmul.f32 %v1667_v44, %v1282_v43  ;;  %vm1289_vm1 = vweird.f32 %v1667_v44 }
 0x74b   : > { %vm1290_vm0 = vmor %vm1288_vm15, %vm1289_vm1 }
 0x74c   : > { %v1285_v46 = vsub.f32 1.0, %v1284_v45 }
 0x74e   : > { %v1286_v47 = vmul.f32 %v1667_v44, %v1285_v46 }
 0x750   : > { %v1287_v49 = vadd.f32 %v1667_v44, %v1286_v47 }
 0x752   : > { %v1291_v53 = vsel %vm1290_vm0, %v1667_v44, %v1287_v49 }
 0x753   : > { %v1296_v57 = vsel %vm1293_vm3, %v1295_v54, %v1291_v53 }
 0x754   : > { %v1309_v28 = vsub.f32 1.0, %v1296_v57 }
 0x791   : > { %v1300_v50 = vpop.permute.xlu2 %1299 }
 0x792   : > { %v1302_v60 = vmul.f32 %v1300_v50, %v1296_v57 }
 0x794   : > { %1304 = vrot.lane.b32.xlu0 %v1302_v60, %s1828_s22 }
 0x799   : > { %v1348_v13 = vpop.permute.xlu2 %1347 }
 0x79c   : > { %1315 = vrot.lane.b32.xlu0 %v2287_v55, %s1827_s21 }
 0x7a8   : > { %v1324_v59 = vpop.permute.xlu1 %1323  ;;  %v1322_v12 = vpop.permute.xlu0 %1321 }
 0x7a9   : > { %v1325_v14 = vsel %vm607_vm2, %v1322_v12, %v1324_v59 }
 0x7aa   : > { %v1327_v17 = vadd.f32 %v1325_v14, %v1276_v58 }
 0x7ac   : > { %v1559_v20 = vmul.f32 -1.442695, %v1327_v17 }
 0x7ae   : > { %1668 = vpow2.f32 %v1559_v20 }
 0x7b4   : > { %v1669_v24 = vpop.eup %1668 }
 0x7b5   : > { %v1331_v26 = vadd.f32 1.0, %v1669_v24 }
 0x7b7   : > { %1670 = vrcp.f32 %v1331_v26  ;;  %v1343_v6 = vand.u32 2147483648, %v1331_v26  ;;  %v1341_v8 = vand.u32 2147483647, %v1331_v26  ;;  %vm1337_vm5 = vweird.f32 %v1331_v26 }
 0x7b9   : > { %v1344_v56 = vor.u32 1.1754944e-38, %v1343_v6  ;;  %vm1342_vm7 = vcmp.eq.f32.partialorder %v1341_v8, 8.507059e+37 }
 0x7bd   : > { %v1671_v3 = vpop.eup %1670 }
 0x7be   : > { %v1333_v4 = vmul.f32 %v1671_v3, %v1331_v26  ;;  %vm1338_vm4 = vweird.f32 %v1671_v3 }
 0x7bf   : > { %vm1339_vm6 = vmor %vm1337_vm5, %vm1338_vm4 }
 0x7c0   : > { %v1334_v5 = vsub.f32 1.0, %v1333_v4 }
 0x7c2   : > { %v1335_v7 = vmul.f32 %v1671_v3, %v1334_v5 }
 0x7c4   : > { %v1336_v9 = vadd.f32 %v1671_v3, %v1335_v7 }
 0x7c6   : > { %v1340_v10 = vsel %vm1339_vm6, %v1671_v3, %v1336_v9 }
 0x7c7   : > { %v1345_v15 = vsel %vm1342_vm7, %v1344_v56, %v1340_v10 }
 0x7c8   : > { %v1350_v16 = vmul.f32 %v1348_v13, %v1345_v15  ;;  %v1357_v34 = vsub.f32 1.0, %v1345_v15  ;;  %v1363_v36 = vmul.f32 %v1345_v15, %v2287_v55 }
 0x7ca   : > { %1352 = vrot.lane.b32.xlu1 %v1350_v16, %s1828_s22 }
 0x806   : > { %v1305_v18 = vpop.permute.xlu0 %1304 }
 0x807   : > { %v1307_v19 = vadd.f32 %v1305_v18, %v1246_v39 }
 0x809   : > { %1672 = vtanh.f32 %v1307_v19 }
 0x80e   : > { %v1316_v27 = vpop.permute.xlu0 %1315 }
 0x80f   : > { %v1673_v21 = vpop.eup %1672  ;;  %v1318_v30 = vmul.f32 %v1316_v27, %v1296_v57 }
 0x810   : > { %1311 = vrot.lane.b32.xlu2 %v1673_v21, %s1829_s27 }
 0x83c   : > { %v1353_v61 = vpop.permute.xlu1 %1352 }
 0x83d   : > { %v1355_v23 = vadd.f32 %v1353_v61, %v1276_v58 }
 0x83f   : > { %1674 = vtanh.f32 %v1355_v23 }
 0x845   : > { %v1675_v25 = vpop.eup %1674 }
 0x846   : > { %1359 = vrot.lane.b32.xlu1 %v1675_v25, %s1829_s27 }
 0x86a   : > { %v1312_v29 = vpop.permute.xlu2 %1311 }
 0x86b   : > { %v1314_v31 = vmul.f32 %v1312_v29, %v1309_v28 }
 0x86d   : > { %v1319_v32 = vadd.f32 %v1318_v30, %v1314_v31 }
 0x86f   : > { %1366 = vrot.lane.b32.xlu2 %v1319_v32, %s1829_s27 }
 0x8b8   : > { %v1360_v33 = vpop.permute.xlu1 %1359 }
 0x8b9   : > { %v1362_v35 = vmul.f32 %v1360_v33, %v1357_v34 }
 0x8bb   : > { %v1364_v62 = vadd.f32 %v1363_v36, %v1362_v35 }
 0x8c9   : > { %v1367_v22 = vpop.permute.xlu2 %1366 }
 0x8ca   : > { %v1369_v63 = vsel %vm607_vm2, %v1367_v22, %v1364_v62 }
 0x8cb   : > { %1370 = vst.msk [vmem:[#allocation2] sm:$0x3] %vm756_vm11, %v1369_v63  ;;  %1676 = vtanh.f32 %v1369_v63 }
 0x8d0   : > { %1380 = sbr.rel (%p1560_p9) target bundleno = 2276 (0x8e4), region = 80 }
 0x8d1   : > { %v1677_v0 = vpop.eup %1676 }
 0x8d2   : > { %v1373_v2 = vmax.f32 %v1371_v1, %v1677_v0  ;;  %v1375_v11 = vld [vmem:[#allocation2] sm:$0x3] }
 0x8d3   : > { %1376 = vst.msk [vmem:[%s2341_s11] sm:$0x3] %vm756_vm11, %v1375_v11 }
 0x8d4   : > { %1374 = vst.msk [vmem:[#allocation3] sm:$0x3] %vm756_vm11, %v1373_v2 }
 0x8db   : > { %v1381_v55 = vld [vmem:[#allocation3] sm:$0x3] }
 0x8dc   : > { %1678 = vtanh.f32 %v1381_v55 }
 0x8e2   : > { %v1679_v37 = vpop.eup %1678 }
 0x8e3   : > { %1383 = vst.msk [vmem:[#allocation10] sm:$0x3] %vm756_vm11, %v1679_v37 }
 0x8e4 PF: > { %p1597_p10 = scmp.eq.s32.totalorder %s1897_s18, 1  ;;  %s1830_s15 = smov [#allocation10]  }
 0x8e5   : > { %s1390_s16 = sshll.u32 %s1830_s15, 4  ;;  %s1392_s23 = sshll.u32 %s2340_s10, 4  ;;  %s1391_s16 = int_to_ptr.vmem [resolvable:$true] %s1390_s16  ;;  %s1393_s23 = int_to_ptr.hbm [resolvable:$true] %s1392_s23 }
 0x8e6   : > { %1578 = dma.vmem_to_hbm [thread:$0]  (%p1597_p10), %s1391_s16, 32, %s1393_s23, [#allocation6]  }
 0x8e7   : > { %1811 = dma.done.wait (%p1597_p10), [#allocation6], 32  }
 0x8e8   : > { %1813 = vsyncadd (%p1597_p10), [#allocation6], 4294967264 }
 0x8e9 PF: > { %s25_s17 = sadd.s32 1, %s1816_s17  }
 0x8ea   : > { %p22_p11 = scmp.ge.s32.totalorder %s25_s17, 4  }
 0x8ec   :  { %24 = sbr.rel (!%p22_p11) target bundleno = 3 (0x3), region = 137 }
 0x8f1   :  { %1412 = vsyncpa [#allocation5], 1 }
 0x8f2   :  { %1414 = vsyncpa [#allocation5 + $0x1], 1 }
 0x8f3   :  { %1415 = vsyncpa [#allocation8], 1 }
 0x8f4   :  { %1416 = vsyncpa [#allocation6], 1 }
 0x8f5   :  { %1418 = vsyncpa [#allocation6 + $0x1], 1 }

</bundles_post_ra>
